<compile_context>
chip_gen: v6e
topology: v6e:2x2x1
jax: 0.10.0
libtpu: 0.0.40
codegen_flags: <defaults>
</compile_context>

<pallas_src>
import functools
import math

import jax
import jax.numpy as jnp
from jax import lax
from jax.experimental import pallas as pl
from jax.experimental.pallas import tpu as pltpu

BN_EPS = 1e-5


def _round_up(x, m):
    return (x + m - 1) // m * m


def _row_tile(ho, target=16):
    """Largest divisor of `ho` that is <= target; for awkward (e.g. prime) ho
    fall back to the whole height so the tile never degenerates to 1 when the
    image still fits comfortably in VMEM."""
    best = 1
    for t in range(1, min(target, ho) + 1):
        if ho % t == 0:
            best = t
    if best < max(2, target // 4) and ho <= 2 * target:
        return ho
    # TODO(synk): large prime Ho still yields th==1; pad Ho / mask last tile.
    return best


def _vmem_limit_bytes():
    """Generation-dependent scoped-VMEM limit (perf feedback): ~96 MiB on
    v5e/v6e (128 MiB physical), ~40 MiB on v7x (64 MiB physical)."""
    mib = 1024 * 1024
    try:
        cap = int(pltpu.get_tpu_info().vmem_capacity_bytes)
    except Exception:
        return 32 * mib                      # unknown chip / interpret mode
    return int(min(96 * mib, max(32 * mib, cap - 24 * mib)))


# ---------------------------------------------------------------------------
# Fused InvertedResidual kernel
# ---------------------------------------------------------------------------
def _ir_kernel(*refs, stride, th, w, wpad, wo, rt, has_expand, use_res,
               zero_bottom):
    if has_expand:
        (x_ref, we_ref, be_ref, wd_ref, bd_ref, wp_ref, bp_ref,
         o_ref, hid_ref, dw_ref) = refs
    else:
        (x_ref, wd_ref, bd_ref, wp_ref, bp_ref, o_ref, dw_ref) = refs
        hid_ref = None

    r = pl.program_id(1)
    rin = (th - 1) * stride + 3                   # padded input rows this tile
    row0 = pl.multiple_of(r * (th * stride), th * stride)
    chid = dw_ref.shape[-1]
    cout = o_ref.shape[-1]

    # ---- stage 1: 1x1 expand conv (bf16 MXU) + folded BN + ReLU6 -> VMEM -----
    if has_expand:
        cin = x_ref.shape[-1]
        lhs = x_ref[0, pl.ds(row0, rin), :, :].reshape(rin * wpad, cin)  # bf16
        e = jnp.dot(lhs, we_ref[...], preferred_element_type=jnp.float32)
        hid_ref[...] = jnp.clip(e + be_ref[...], 0.0, 6.0).reshape(rin, wpad, chid)

        # Re-zero the conv zero-padding halo (ReLU6(bias) of a padded zero is
        # not zero).  Columns are grid-invariant; rows only on boundary tiles.
        zcol = jnp.zeros((rin, 1, chid), jnp.float32)
        hid_ref[:, 0:1, :] = zcol
        hid_ref[:, w + 1:w + 2, :] = zcol
        zrow = jnp.zeros((1, wpad, chid), jnp.float32)

        @pl.when(r == 0)
        def _():
            hid_ref[0:1] = zrow

        if zero_bottom:                           # bottom pad row is only read
            @pl.when(r == rt - 1)                 # when (Ho-1)*s + 2 == H + 1
            def _():
                hid_ref[rin - 1:rin] = zrow

    # ---- stage 2: depthwise 3x3 (stride 1|2) + folded BN + ReLU6 -------------
    # Per-output-row accumulation (small vreg footprint), bias folded into the
    # accumulator init, weight slices / broadcasts hoisted out of the loop,
    # result stored in the (bf16 where possible) dw scratch.
    wtap = [wd_ref[k] for k in range(9)]                    # (1, chid) f32 each
    bias0 = jnp.broadcast_to(bd_ref[...], (wo, chid))       # hoisted broadcast

    def col_slice(dj):
        return pl.ds(dj, wo, stride=stride) if stride > 1 else pl.ds(dj, wo)

    def dw_row(ho, carry):
        acc = bias0
        for di in range(3):
            for dj in range(3):
                if has_expand:
                    tap = hid_ref[ho * stride + di, col_slice(dj), :]
                else:
                    # expand_ratio == 1: taps come straight from the (bf16)
                    # padded input, no staging copy.
                    tap = x_ref[0, row0 + ho * stride + di, col_slice(dj), :]
                acc = acc + tap.astype(jnp.float32) * wtap[3 * di + dj]
        dw_ref[ho] = jnp.clip(acc, 0.0, 6.0).astype(dw_ref.dtype)
        return carry

    lax.fori_loop(0, th, dw_row, None, unroll=True)

    # ---- stage 3: 1x1 projection (bf16 MXU) + folded BN (+ fused residual) ---
    lhs = dw_ref[...].reshape(th * wo, chid)
    if lhs.dtype != jnp.bfloat16:
        lhs = lhs.astype(jnp.bfloat16)
    p = jnp.dot(lhs, wp_ref[...], preferred_element_type=jnp.float32)
    p = (p + bp_ref[...]).reshape(th, wo, cout)
    if use_res:                                   # stride == 1 and cin == cout
        p = p + x_ref[0, pl.ds(row0 + 1, th), pl.ds(1, w), :].astype(jnp.float32)
    o_ref[0] = p.astype(o_ref.dtype)


# ---------------------------------------------------------------------------
# pallas_call wrapper (NCHW in / NCHW out, like the PyTorch module)
# ---------------------------------------------------------------------------
def inverted_residual(x_nchw, params, cfg):
    stride, use_res = cfg['stride'], cfg['use_res']
    # NCHW (PyTorch boundary) -> NHWC so channels sit on the 128-lane axis;
    # activations are carried in bf16 (the MXU consumes bf16 anyway).
    # TODO(synk): a full backbone should keep activations NHWC(+halo) in HBM
    #             across blocks so this transpose/pad is not paid per block.
    x = jnp.transpose(x_nchw, (0, 2, 3, 1)).astype(jnp.bfloat16)
    N, H, W, Cin = x.shape

    # width padded to a multiple of 16 so the (rows, wpad) merge before the
    # expand matmul is a free view for bf16 sublane packing.
    wpad = _round_up(W + 2, 16)
    hpad = H + 2
    x_pad = jnp.pad(x, ((0, 0), (1, 1), (1, wpad - W - 1), (0, 0)))

    Ho = (H - 1) // stride + 1
    Wo = (W - 1) // stride + 1
    th = _row_tile(Ho, target=16)
    rt = Ho // th
    rin = (th - 1) * stride + 3

    has_expand = params['expand'] is not None
    wd, bd = params['dw']
    wp, bp = params['proj']
    chid = wd.shape[-1]
    cout = wp.shape[-1]

    # bottom zero-padding row is actually read only when (Ho-1)*s + 2 == H + 1
    zero_bottom = ((Ho - 1) * stride + 2 == H + 1)
    # bf16 depthwise scratch when its (th, Wo, chid) -> (th*Wo, chid) reshape
    # is a free view under bf16 sublane packing; otherwise keep f32 and cast
    # at the projection matmul.
    dw_dtype = jnp.bfloat16 if Wo % 16 == 0 else jnp.float32

    kernel = functools.partial(
        _ir_kernel, stride=stride, th=th, w=W, wpad=wpad, wo=Wo, rt=rt,
        has_expand=has_expand, use_res=use_res, zero_bottom=zero_bottom)

    inputs = [x_pad]
    in_specs = [pl.BlockSpec((1, hpad, wpad, Cin), lambda n, r: (n, 0, 0, 0))]
    if has_expand:
        we, be = params['expand']
        inputs += [we, be]
        in_specs += [pl.BlockSpec((Cin, chid), lambda n, r: (0, 0)),
                     pl.BlockSpec((1, chid), lambda n, r: (0, 0))]
    inputs += [wd, bd, wp, bp]
    in_specs += [pl.BlockSpec((9, 1, chid), lambda n, r: (0, 0, 0)),
                 pl.BlockSpec((1, chid), lambda n, r: (0, 0)),
                 pl.BlockSpec((chid, cout), lambda n, r: (0, 0)),
                 pl.BlockSpec((1, cout), lambda n, r: (0, 0))]

    scratch = []
    if has_expand:
        scratch.append(pltpu.VMEM((rin, wpad, chid), jnp.float32))  # expanded act
    scratch.append(pltpu.VMEM((th, Wo, chid), dw_dtype))            # dw output

    out = pl.pallas_call(
        kernel,
        out_shape=jax.ShapeDtypeStruct((N, Ho, Wo, cout), jnp.float32),
        grid=(N, rt),
        in_specs=in_specs,
        out_specs=pl.BlockSpec((1, th, Wo, cout), lambda n, r: (n, r, 0, 0)),
        scratch_shapes=scratch,
        compiler_params=pltpu.CompilerParams(
            dimension_semantics=("parallel", "parallel"),
            vmem_limit_bytes=_vmem_limit_bytes()),
    )(*inputs)
    return jnp.transpose(out, (0, 3, 1, 2))       # NHWC -> NCHW


# ---------------------------------------------------------------------------
# Deterministic parameter construction (Conv bias=False + BN folded offline)
# ---------------------------------------------------------------------------
def make_inverted_residual_params(key, inp, oup, stride, expand_ratio):
    hidden = int(round(inp * expand_ratio))
    keys = jax.random.split(key, 6)

    def bn(k, c):                                 # non-trivial running stats
        kg, kb, km, kv = jax.random.split(k, 4)
        gamma = 1.0 + 0.25 * jax.random.normal(kg, (c,), jnp.float32)
        beta = 0.1 * jax.random.normal(kb, (c,), jnp.float32)
        mean = 0.1 * jax.random.normal(km, (c,), jnp.float32)
        var = jax.random.uniform(kv, (c,), jnp.float32, 0.5, 1.5)
        scale = gamma * jax.lax.rsqrt(var + BN_EPS)
        return scale, beta - mean * scale

    params = {'expand': None}
    if expand_ratio != 1:
        we = math.sqrt(2.0 / hidden) * jax.random.normal(keys[0], (inp, hidden), jnp.float32)
        se, be = bn(keys[1], hidden)
        params['expand'] = ((we * se).astype(jnp.bfloat16), be.reshape(1, hidden))
    wd = math.sqrt(2.0 / 9.0) * jax.random.normal(keys[2], (9, 1, hidden), jnp.float32)
    sd, bd = bn(keys[3], hidden)
    params['dw'] = (wd * sd, bd.reshape(1, hidden))
    wp = math.sqrt(2.0 / oup) * jax.random.normal(keys[4], (hidden, oup), jnp.float32)
    sp, bp = bn(keys[5], oup)
    params['proj'] = ((wp * sp).astype(jnp.bfloat16), bp.reshape(1, oup))
    return params, dict(stride=stride, use_res=(stride == 1 and inp == oup))


# ---------------------------------------------------------------------------
# Pure-JAX reference: emulates every bf16 rounding the kernel performs
# (inputs, weights, depthwise output) but runs the dots in f32 / HIGHEST, so
# the only kernel/reference difference left is MXU f32 accumulation order.
# ---------------------------------------------------------------------------
def reference_inverted_residual(x_nchw, params, cfg):
    s = cfg['stride']
    hi = jax.lax.Precision.HIGHEST
    x = jnp.transpose(x_nchw, (0, 2, 3, 1)).astype(jnp.bfloat16).astype(jnp.float32)
    if params['expand'] is not None:
        we, be = params['expand']
        hdn = jnp.dot(x.reshape(-1, x.shape[-1]), we.astype(jnp.float32),
                      precision=hi)
        hdn = jnp.clip(hdn + be, 0.0, 6.0).reshape(x.shape[:-1] + (we.shape[-1],))
    else:
        hdn = x
    wd, bd = params['dw']
    N, H, W, C = hdn.shape
    Ho = (H - 1) // s + 1
    Wo = (W - 1) // s + 1
    hp = jnp.pad(hdn, ((0, 0), (1, 1), (1, 1), (0, 0)))
    acc = jnp.broadcast_to(bd.reshape(1, 1, 1, C), (N, Ho, Wo, C))
    for di in range(3):
        for dj in range(3):
            tap = hp[:, di:di + (Ho - 1) * s + 1:s, dj:dj + (Wo - 1) * s + 1:s, :]
            acc = acc + tap * wd[3 * di + dj]
    # the kernel's depthwise result is consumed as bf16 by the projection
    y = jnp.clip(acc, 0.0, 6.0).astype(jnp.bfloat16).astype(jnp.float32)
    wp, bp = params['proj']
    out = jnp.dot(y.reshape(-1, C), wp.astype(jnp.float32), precision=hi) + bp
    out = out.reshape(N, Ho, Wo, wp.shape[-1])
    if cfg['use_res']:
        out = out + x
    return jnp.transpose(out, (0, 3, 1, 2))


# ---------------------------------------------------------------------------
if __name__ == "__main__":
    key = jax.random.PRNGKey(0)
    kx, kparams = jax.random.split(key)
    x = jax.random.normal(kx, (2, 16, 16, 16), jnp.float32)   # NCHW like PyTorch

    configs = [
        (16, 16, 1, 6),   # expand + dw(s=1) + project + residual
        (16, 24, 2, 6),   # expand + dw(s=2) + project (no residual)
        (16, 16, 1, 1),   # no expand conv, residual
    ]
    for i, (inp, oup, stride, t) in enumerate(configs):
        kp = jax.random.fold_in(kparams, i)
        params, cfg = make_inverted_residual_params(kp, inp, oup, stride, t)
        run = jax.jit(functools.partial(inverted_residual, params=params, cfg=cfg))
        out = jax.block_until_ready(run(x))
        ref = reference_inverted_residual(x, params, cfg)
        assert out.shape == ref.shape, (out.shape, ref.shape)
        diff = jnp.abs(out - ref)
        mean_err = float(jnp.mean(diff))
        max_err = float(jnp.max(diff))
        # bf16 MXU matmuls + one intermediate bf16 rounding (the depthwise
        # output) mean a handful of near-rounding-tie elements can differ from
        # the f32-emulated reference by ~1 bf16 ulp propagated through the 1x1
        # projection (~3e-2); the bulk agrees to f32-accumulation precision,
        # which the tight mean gate enforces.
        assert mean_err < 5e-4, f"config {i}: mean abs err {mean_err}"
        assert max_err < 1e-1, f"config {i}: max abs err {max_err}"
    print("KERNEL_OK")
</pallas_src>

<mosaic_0001>
module attributes {stable_mosaic.version = 11 : i64} {
  func.func @_ir_kernel(%arg0: i32, %arg1: i32, %arg2: memref<1x18x32x16xbf16, #tpu.memory_space<vmem>>, %arg3: memref<16x96xbf16, #tpu.memory_space<vmem>>, %arg4: memref<1x96xf32, #tpu.memory_space<vmem>>, %arg5: memref<9x1x96xf32, #tpu.memory_space<vmem>>, %arg6: memref<1x96xf32, #tpu.memory_space<vmem>>, %arg7: memref<96x16xbf16, #tpu.memory_space<vmem>>, %arg8: memref<1x16xf32, #tpu.memory_space<vmem>>, %arg9: memref<1x16x16x16xf32, #tpu.memory_space<vmem>>, %arg10: memref<18x32x96xf32, #tpu.memory_space<vmem>>, %arg11: memref<16x16x96xbf16, #tpu.memory_space<vmem>>) attributes {dimension_semantics = [#tpu.dimension_semantics<parallel>, #tpu.dimension_semantics<parallel>], iteration_bounds = array<i64: 2, 1>, scalar_prefetch = 0 : i64, scratch_operands = 2 : i64, tpu.core_type = #tpu.core_type<tc>, window_params = [{transform_indices = @transform_0, window_bounds = array<i64: 1, 18, 32, 16>}, {pipeline_mode = #tpu.pipeline_mode<synchronous>, transform_indices = @transform_1, window_bounds = array<i64: 16, 96>}, {pipeline_mode = #tpu.pipeline_mode<synchronous>, transform_indices = @transform_2, window_bounds = array<i64: 1, 96>}, {pipeline_mode = #tpu.pipeline_mode<synchronous>, transform_indices = @transform_3, window_bounds = array<i64: 9, 1, 96>}, {pipeline_mode = #tpu.pipeline_mode<synchronous>, transform_indices = @transform_4, window_bounds = array<i64: 1, 96>}, {pipeline_mode = #tpu.pipeline_mode<synchronous>, transform_indices = @transform_5, window_bounds = array<i64: 96, 16>}, {pipeline_mode = #tpu.pipeline_mode<synchronous>, transform_indices = @transform_6, window_bounds = array<i64: 1, 16>}, {transform_indices = @transform_7, window_bounds = array<i64: 1, 16, 16, 16>}]} {
    %c16_i32 = arith.constant 16 : i32
    %0 = arith.muli %arg1, %c16_i32 : i32
    %1 = tpu.assume_multiple %0, 16 : i32
    %c0 = arith.constant 0 : index
    %2 = arith.index_cast %1 : i32 to index
    %c0_0 = arith.constant 0 : index
    %c0_1 = arith.constant 0 : index
    %3 = vector.load %arg2[%c0, %2, %c0_0, %c0_1] : memref<1x18x32x16xbf16, #tpu.memory_space<vmem>>, vector<1x18x32x16xbf16>
    %4 = vector.shape_cast %3 : vector<1x18x32x16xbf16> to vector<18x32x16xbf16>
    %5 = vector.shape_cast %4 : vector<18x32x16xbf16> to vector<576x16xbf16>
    %c0_2 = arith.constant 0 : index
    %c0_3 = arith.constant 0 : index
    %6 = vector.load %arg3[%c0_2, %c0_3] : memref<16x96xbf16, #tpu.memory_space<vmem>>, vector<16x96xbf16>
    %cst = arith.constant dense<0.000000e+00> : vector<576x96xf32>
    %7 = tpu.matmul %5, %6, %cst {dimension_numbers = #tpu.dot_dimension_numbers<[1], [0], [0], [1], [0, 0, 1, 1], [], []>} : vector<576x16xbf16>, vector<16x96xbf16>, vector<576x96xf32> -> vector<576x96xf32>
    %c0_4 = arith.constant 0 : index
    %c0_5 = arith.constant 0 : index
    %8 = vector.load %arg4[%c0_4, %c0_5] : memref<1x96xf32, #tpu.memory_space<vmem>>, vector<1x96xf32>
    %9 = vector.broadcast %8 : vector<1x96xf32> to vector<576x96xf32>
    %10 = arith.addf %7, %9 : vector<576x96xf32>
    %cst_6 = arith.constant 0.000000e+00 : f32
    %cst_7 = arith.constant 6.000000e+00 : f32
    %11 = vector.broadcast %cst_6 : f32 to vector<576x96xf32>
    %12 = arith.maximumf %11, %10 : vector<576x96xf32>
    %13 = vector.broadcast %cst_7 : f32 to vector<576x96xf32>
    %14 = arith.minimumf %13, %12 : vector<576x96xf32>
    %15 = vector.shape_cast %14 : vector<576x96xf32> to vector<18x32x96xf32>
    %c0_8 = arith.constant 0 : index
    %c0_9 = arith.constant 0 : index
    %c0_10 = arith.constant 0 : index
    %16 = vector.load %arg10[%c0_8, %c0_9, %c0_10] : memref<18x32x96xf32, #tpu.memory_space<vmem>>, vector<18x32x96xf32>
    tpu.vector_store %arg10[%c0_8, %c0_9, %c0_10], %15 {strides = array<i32>} : memref<18x32x96xf32, #tpu.memory_space<vmem>>, vector<18x32x96xf32>,
    %cst_11 = arith.constant 0.000000e+00 : f32
    %17 = vector.broadcast %cst_11 : f32 to vector<18x1x96xf32>
    %c0_12 = arith.constant 0 : index
    %c0_13 = arith.constant 0 : index
    %c0_14 = arith.constant 0 : index
    %18 = vector.load %arg10[%c0_12, %c0_13, %c0_14] : memref<18x32x96xf32, #tpu.memory_space<vmem>>, vector<18x1x96xf32>
    tpu.vector_store %arg10[%c0_12, %c0_13, %c0_14], %17 {strides = array<i32>} : memref<18x32x96xf32, #tpu.memory_space<vmem>>, vector<18x1x96xf32>,
    %c0_15 = arith.constant 0 : index
    %c17 = arith.constant 17 : index
    %c0_16 = arith.constant 0 : index
    %19 = vector.load %arg10[%c0_15, %c17, %c0_16] : memref<18x32x96xf32, #tpu.memory_space<vmem>>, vector<18x1x96xf32>
    tpu.vector_store %arg10[%c0_15, %c17, %c0_16], %17 {strides = array<i32>} : memref<18x32x96xf32, #tpu.memory_space<vmem>>, vector<18x1x96xf32>,
    %cst_17 = arith.constant 0.000000e+00 : f32
    %20 = vector.broadcast %cst_17 : f32 to vector<1x32x96xf32>
    %c0_i32 = arith.constant 0 : i32
    %21 = arith.cmpi eq, %arg1, %c0_i32 : i32
    %22 = arith.extui %21 : i1 to i32
    %c0_i32_18 = arith.constant 0 : i32
    %23 = arith.cmpi ne, %22, %c0_i32_18 : i32
    scf.if %23 {
      %c0_700 = arith.constant 0 : index
      %c0_701 = arith.constant 0 : index
      %c0_702 = arith.constant 0 : index
      %1361 = vector.load %arg10[%c0_700, %c0_701, %c0_702] : memref<18x32x96xf32, #tpu.memory_space<vmem>>, vector<1x32x96xf32>
      tpu.vector_store %arg10[%c0_700, %c0_701, %c0_702], %20 {strides = array<i32>} : memref<18x32x96xf32, #tpu.memory_space<vmem>>, vector<1x32x96xf32>,
    } else {
    }
    %c0_i32_19 = arith.constant 0 : i32
    %24 = arith.cmpi eq, %arg1, %c0_i32_19 : i32
    %25 = arith.extui %24 : i1 to i32
    %c0_i32_20 = arith.constant 0 : i32
    %26 = arith.cmpi ne, %25, %c0_i32_20 : i32
    scf.if %26 {
      %c17_700 = arith.constant 17 : index
      %c0_701 = arith.constant 0 : index
      %c0_702 = arith.constant 0 : index
      %1361 = vector.load %arg10[%c17_700, %c0_701, %c0_702] : memref<18x32x96xf32, #tpu.memory_space<vmem>>, vector<1x32x96xf32>
      tpu.vector_store %arg10[%c17_700, %c0_701, %c0_702], %20 {strides = array<i32>} : memref<18x32x96xf32, #tpu.memory_space<vmem>>, vector<1x32x96xf32>,
    } else {
    }
    %c0_21 = arith.constant 0 : index
    %c0_22 = arith.constant 0 : index
    %c0_23 = arith.constant 0 : index
    %27 = vector.load %arg5[%c0_21, %c0_22, %c0_23] : memref<9x1x96xf32, #tpu.memory_space<vmem>>, vector<1x1x96xf32>
    %28 = vector.shape_cast %27 : vector<1x1x96xf32> to vector<1x96xf32>
    %c1 = arith.constant 1 : index
    %c0_24 = arith.constant 0 : index
    %c0_25 = arith.constant 0 : index
    %29 = vector.load %arg5[%c1, %c0_24, %c0_25] : memref<9x1x96xf32, #tpu.memory_space<vmem>>, vector<1x1x96xf32>
    %30 = vector.shape_cast %29 : vector<1x1x96xf32> to vector<1x96xf32>
    %c2 = arith.constant 2 : index
    %c0_26 = arith.constant 0 : index
    %c0_27 = arith.constant 0 : index
    %31 = vector.load %arg5[%c2, %c0_26, %c0_27] : memref<9x1x96xf32, #tpu.memory_space<vmem>>, vector<1x1x96xf32>
    %32 = vector.shape_cast %31 : vector<1x1x96xf32> to vector<1x96xf32>
    %c3 = arith.constant 3 : index
    %c0_28 = arith.constant 0 : index
    %c0_29 = arith.constant 0 : index
    %33 = vector.load %arg5[%c3, %c0_28, %c0_29] : memref<9x1x96xf32, #tpu.memory_space<vmem>>, vector<1x1x96xf32>
    %34 = vector.shape_cast %33 : vector<1x1x96xf32> to vector<1x96xf32>
    %c4 = arith.constant 4 : index
    %c0_30 = arith.constant 0 : index
    %c0_31 = arith.constant 0 : index
    %35 = vector.load %arg5[%c4, %c0_30, %c0_31] : memref<9x1x96xf32, #tpu.memory_space<vmem>>, vector<1x1x96xf32>
    %36 = vector.shape_cast %35 : vector<1x1x96xf32> to vector<1x96xf32>
    %c5 = arith.constant 5 : index
    %c0_32 = arith.constant 0 : index
    %c0_33 = arith.constant 0 : index
    %37 = vector.load %arg5[%c5, %c0_32, %c0_33] : memref<9x1x96xf32, #tpu.memory_space<vmem>>, vector<1x1x96xf32>
    %38 = vector.shape_cast %37 : vector<1x1x96xf32> to vector<1x96xf32>
    %c6 = arith.constant 6 : index
    %c0_34 = arith.constant 0 : index
    %c0_35 = arith.constant 0 : index
    %39 = vector.load %arg5[%c6, %c0_34, %c0_35] : memref<9x1x96xf32, #tpu.memory_space<vmem>>, vector<1x1x96xf32>
    %40 = vector.shape_cast %39 : vector<1x1x96xf32> to vector<1x96xf32>
    %c7 = arith.constant 7 : index
    %c0_36 = arith.constant 0 : index
    %c0_37 = arith.constant 0 : index
    %41 = vector.load %arg5[%c7, %c0_36, %c0_37] : memref<9x1x96xf32, #tpu.memory_space<vmem>>, vector<1x1x96xf32>
    %42 = vector.shape_cast %41 : vector<1x1x96xf32> to vector<1x96xf32>
    %c8 = arith.constant 8 : index
    %c0_38 = arith.constant 0 : index
    %c0_39 = arith.constant 0 : index
    %43 = vector.load %arg5[%c8, %c0_38, %c0_39] : memref<9x1x96xf32, #tpu.memory_space<vmem>>, vector<1x1x96xf32>
    %44 = vector.shape_cast %43 : vector<1x1x96xf32> to vector<1x96xf32>
    %c0_40 = arith.constant 0 : index
    %c0_41 = arith.constant 0 : index
    %45 = vector.load %arg6[%c0_40, %c0_41] : memref<1x96xf32, #tpu.memory_space<vmem>>, vector<1x96xf32>
    %46 = vector.shape_cast %45 : vector<1x96xf32> to vector<1x96xf32>
    %47 = vector.broadcast %46 : vector<1x96xf32> to vector<16x96xf32>
    %c0_i32_42 = arith.constant 0 : i32
    %c1_i32 = arith.constant 1 : i32
    %48 = arith.muli %c0_i32_42, %c1_i32 : i32
    %c0_i32_43 = arith.constant 0 : i32
    %49 = arith.addi %48, %c0_i32_43 : i32
    %50 = arith.index_cast %49 : i32 to index
    %c0_44 = arith.constant 0 : index
    %c0_45 = arith.constant 0 : index
    %51 = vector.load %arg10[%50, %c0_44, %c0_45] : memref<18x32x96xf32, #tpu.memory_space<vmem>>, vector<1x16x96xf32>
    %52 = vector.shape_cast %51 : vector<1x16x96xf32> to vector<16x96xf32>
    %53 = vector.broadcast %28 : vector<1x96xf32> to vector<16x96xf32>
    %54 = arith.mulf %52, %53 : vector<16x96xf32>
    %55 = arith.addf %47, %54 : vector<16x96xf32>
    %c1_i32_46 = arith.constant 1 : i32
    %56 = arith.muli %c0_i32_42, %c1_i32_46 : i32
    %c0_i32_47 = arith.constant 0 : i32
    %57 = arith.addi %56, %c0_i32_47 : i32
    %58 = arith.index_cast %57 : i32 to index
    %c1_48 = arith.constant 1 : index
    %c0_49 = arith.constant 0 : index
    %59 = vector.load %arg10[%58, %c1_48, %c0_49] : memref<18x32x96xf32, #tpu.memory_space<vmem>>, vector<1x16x96xf32>
    %60 = vector.shape_cast %59 : vector<1x16x96xf32> to vector<16x96xf32>
    %61 = vector.broadcast %30 : vector<1x96xf32> to vector<16x96xf32>
    %62 = arith.mulf %60, %61 : vector<16x96xf32>
    %63 = arith.addf %55, %62 : vector<16x96xf32>
    %c1_i32_50 = arith.constant 1 : i32
    %64 = arith.muli %c0_i32_42, %c1_i32_50 : i32
    %c0_i32_51 = arith.constant 0 : i32
    %65 = arith.addi %64, %c0_i32_51 : i32
    %66 = arith.index_cast %65 : i32 to index
    %c2_52 = arith.constant 2 : index
    %c0_53 = arith.constant 0 : index
    %67 = vector.load %arg10[%66, %c2_52, %c0_53] : memref<18x32x96xf32, #tpu.memory_space<vmem>>, vector<1x16x96xf32>
    %68 = vector.shape_cast %67 : vector<1x16x96xf32> to vector<16x96xf32>
    %69 = vector.broadcast %32 : vector<1x96xf32> to vector<16x96xf32>
    %70 = arith.mulf %68, %69 : vector<16x96xf32>
    %71 = arith.addf %63, %70 : vector<16x96xf32>
    %c1_i32_54 = arith.constant 1 : i32
    %72 = arith.muli %c0_i32_42, %c1_i32_54 : i32
    %c1_i32_55 = arith.constant 1 : i32
    %73 = arith.addi %72, %c1_i32_55 : i32
    %74 = arith.index_cast %73 : i32 to index
    %c0_56 = arith.constant 0 : index
    %c0_57 = arith.constant 0 : index
    %75 = vector.load %arg10[%74, %c0_56, %c0_57] : memref<18x32x96xf32, #tpu.memory_space<vmem>>, vector<1x16x96xf32>
    %76 = vector.shape_cast %75 : vector<1x16x96xf32> to vector<16x96xf32>
    %77 = vector.broadcast %34 : vector<1x96xf32> to vector<16x96xf32>
    %78 = arith.mulf %76, %77 : vector<16x96xf32>
    %79 = arith.addf %71, %78 : vector<16x96xf32>
    %c1_i32_58 = arith.constant 1 : i32
    %80 = arith.muli %c0_i32_42, %c1_i32_58 : i32
    %c1_i32_59 = arith.constant 1 : i32
    %81 = arith.addi %80, %c1_i32_59 : i32
    %82 = arith.index_cast %81 : i32 to index
    %c1_60 = arith.constant 1 : index
    %c0_61 = arith.constant 0 : index
    %83 = vector.load %arg10[%82, %c1_60, %c0_61] : memref<18x32x96xf32, #tpu.memory_space<vmem>>, vector<1x16x96xf32>
    %84 = vector.shape_cast %83 : vector<1x16x96xf32> to vector<16x96xf32>
    %85 = vector.broadcast %36 : vector<1x96xf32> to vector<16x96xf32>
    %86 = arith.mulf %84, %85 : vector<16x96xf32>
    %87 = arith.addf %79, %86 : vector<16x96xf32>
    %c1_i32_62 = arith.constant 1 : i32
    %88 = arith.muli %c0_i32_42, %c1_i32_62 : i32
    %c1_i32_63 = arith.constant 1 : i32
    %89 = arith.addi %88, %c1_i32_63 : i32
    %90 = arith.index_cast %89 : i32 to index
    %c2_64 = arith.constant 2 : index
    %c0_65 = arith.constant 0 : index
    %91 = vector.load %arg10[%90, %c2_64, %c0_65] : memref<18x32x96xf32, #tpu.memory_space<vmem>>, vector<1x16x96xf32>
    %92 = vector.shape_cast %91 : vector<1x16x96xf32> to vector<16x96xf32>
    %93 = vector.broadcast %38 : vector<1x96xf32> to vector<16x96xf32>
    %94 = arith.mulf %92, %93 : vector<16x96xf32>
    %95 = arith.addf %87, %94 : vector<16x96xf32>
    %c1_i32_66 = arith.constant 1 : i32
    %96 = arith.muli %c0_i32_42, %c1_i32_66 : i32
    %c2_i32 = arith.constant 2 : i32
    %97 = arith.addi %96, %c2_i32 : i32
    %98 = arith.index_cast %97 : i32 to index
    %c0_67 = arith.constant 0 : index
    %c0_68 = arith.constant 0 : index
    %99 = vector.load %arg10[%98, %c0_67, %c0_68] : memref<18x32x96xf32, #tpu.memory_space<vmem>>, vector<1x16x96xf32>
    %100 = vector.shape_cast %99 : vector<1x16x96xf32> to vector<16x96xf32>
    %101 = vector.broadcast %40 : vector<1x96xf32> to vector<16x96xf32>
    %102 = arith.mulf %100, %101 : vector<16x96xf32>
    %103 = arith.addf %95, %102 : vector<16x96xf32>
    %c1_i32_69 = arith.constant 1 : i32
    %104 = arith.muli %c0_i32_42, %c1_i32_69 : i32
    %c2_i32_70 = arith.constant 2 : i32
    %105 = arith.addi %104, %c2_i32_70 : i32
    %106 = arith.index_cast %105 : i32 to index
    %c1_71 = arith.constant 1 : index
    %c0_72 = arith.constant 0 : index
    %107 = vector.load %arg10[%106, %c1_71, %c0_72] : memref<18x32x96xf32, #tpu.memory_space<vmem>>, vector<1x16x96xf32>
    %108 = vector.shape_cast %107 : vector<1x16x96xf32> to vector<16x96xf32>
    %109 = vector.broadcast %42 : vector<1x96xf32> to vector<16x96xf32>
    %110 = arith.mulf %108, %109 : vector<16x96xf32>
    %111 = arith.addf %103, %110 : vector<16x96xf32>
    %c1_i32_73 = arith.constant 1 : i32
    %112 = arith.muli %c0_i32_42, %c1_i32_73 : i32
    %c2_i32_74 = arith.constant 2 : i32
    %113 = arith.addi %112, %c2_i32_74 : i32
    %114 = arith.index_cast %113 : i32 to index
    %c2_75 = arith.constant 2 : index
    %c0_76 = arith.constant 0 : index
    %115 = vector.load %arg10[%114, %c2_75, %c0_76] : memref<18x32x96xf32, #tpu.memory_space<vmem>>, vector<1x16x96xf32>
    %116 = vector.shape_cast %115 : vector<1x16x96xf32> to vector<16x96xf32>
    %117 = vector.broadcast %44 : vector<1x96xf32> to vector<16x96xf32>
    %118 = arith.mulf %116, %117 : vector<16x96xf32>
    %119 = arith.addf %111, %118 : vector<16x96xf32>
    %cst_77 = arith.constant 0.000000e+00 : f32
    %cst_78 = arith.constant 6.000000e+00 : f32
    %120 = vector.broadcast %cst_77 : f32 to vector<16x96xf32>
    %121 = arith.maximumf %120, %119 : vector<16x96xf32>
    %122 = vector.broadcast %cst_78 : f32 to vector<16x96xf32>
    %123 = arith.minimumf %122, %121 : vector<16x96xf32>
    %124 = arith.truncf %123 : vector<16x96xf32> to vector<16x96xbf16>
    %125 = arith.index_cast %c0_i32_42 : i32 to index
    %c0_79 = arith.constant 0 : index
    %c0_80 = arith.constant 0 : index
    %126 = vector.load %arg11[%125, %c0_79, %c0_80] : memref<16x16x96xbf16, #tpu.memory_space<vmem>>, vector<1x16x96xbf16>
    %127 = vector.shape_cast %126 : vector<1x16x96xbf16> to vector<16x96xbf16>
    %128 = vector.shape_cast %124 : vector<16x96xbf16> to vector<1x16x96xbf16>
    tpu.vector_store %arg11[%125, %c0_79, %c0_80], %128 {strides = array<i32>} : memref<16x16x96xbf16, #tpu.memory_space<vmem>>, vector<1x16x96xbf16>,
    %c1_i32_81 = arith.constant 1 : i32
    %c1_i32_82 = arith.constant 1 : i32
    %129 = arith.muli %c1_i32_81, %c1_i32_82 : i32
    %c0_i32_83 = arith.constant 0 : i32
    %130 = arith.addi %129, %c0_i32_83 : i32
    %131 = arith.index_cast %130 : i32 to index
    %c0_84 = arith.constant 0 : index
    %c0_85 = arith.constant 0 : index
    %132 = vector.load %arg10[%131, %c0_84, %c0_85] : memref<18x32x96xf32, #tpu.memory_space<vmem>>, vector<1x16x96xf32>
    %133 = vector.shape_cast %132 : vector<1x16x96xf32> to vector<16x96xf32>
    %134 = vector.broadcast %28 : vector<1x96xf32> to vector<16x96xf32>
    %135 = arith.mulf %133, %134 : vector<16x96xf32>
    %136 = arith.addf %47, %135 : vector<16x96xf32>
    %c1_i32_86 = arith.constant 1 : i32
    %137 = arith.muli %c1_i32_81, %c1_i32_86 : i32
    %c0_i32_87 = arith.constant 0 : i32
    %138 = arith.addi %137, %c0_i32_87 : i32
    %139 = arith.index_cast %138 : i32 to index
    %c1_88 = arith.constant 1 : index
    %c0_89 = arith.constant 0 : index
    %140 = vector.load %arg10[%139, %c1_88, %c0_89] : memref<18x32x96xf32, #tpu.memory_space<vmem>>, vector<1x16x96xf32>
    %141 = vector.shape_cast %140 : vector<1x16x96xf32> to vector<16x96xf32>
    %142 = vector.broadcast %30 : vector<1x96xf32> to vector<16x96xf32>
    %143 = arith.mulf %141, %142 : vector<16x96xf32>
    %144 = arith.addf %136, %143 : vector<16x96xf32>
    %c1_i32_90 = arith.constant 1 : i32
    %145 = arith.muli %c1_i32_81, %c1_i32_90 : i32
    %c0_i32_91 = arith.constant 0 : i32
    %146 = arith.addi %145, %c0_i32_91 : i32
    %147 = arith.index_cast %146 : i32 to index
    %c2_92 = arith.constant 2 : index
    %c0_93 = arith.constant 0 : index
    %148 = vector.load %arg10[%147, %c2_92, %c0_93] : memref<18x32x96xf32, #tpu.memory_space<vmem>>, vector<1x16x96xf32>
    %149 = vector.shape_cast %148 : vector<1x16x96xf32> to vector<16x96xf32>
    %150 = vector.broadcast %32 : vector<1x96xf32> to vector<16x96xf32>
    %151 = arith.mulf %149, %150 : vector<16x96xf32>
    %152 = arith.addf %144, %151 : vector<16x96xf32>
    %c1_i32_94 = arith.constant 1 : i32
    %153 = arith.muli %c1_i32_81, %c1_i32_94 : i32
    %c1_i32_95 = arith.constant 1 : i32
    %154 = arith.addi %153, %c1_i32_95 : i32
    %155 = arith.index_cast %154 : i32 to index
    %c0_96 = arith.constant 0 : index
    %c0_97 = arith.constant 0 : index
    %156 = vector.load %arg10[%155, %c0_96, %c0_97] : memref<18x32x96xf32, #tpu.memory_space<vmem>>, vector<1x16x96xf32>
    %157 = vector.shape_cast %156 : vector<1x16x96xf32> to vector<16x96xf32>
    %158 = vector.broadcast %34 : vector<1x96xf32> to vector<16x96xf32>
    %159 = arith.mulf %157, %158 : vector<16x96xf32>
    %160 = arith.addf %152, %159 : vector<16x96xf32>
    %c1_i32_98 = arith.constant 1 : i32
    %161 = arith.muli %c1_i32_81, %c1_i32_98 : i32
    %c1_i32_99 = arith.constant 1 : i32
    %162 = arith.addi %161, %c1_i32_99 : i32
    %163 = arith.index_cast %162 : i32 to index
    %c1_100 = arith.constant 1 : index
    %c0_101 = arith.constant 0 : index
    %164 = vector.load %arg10[%163, %c1_100, %c0_101] : memref<18x32x96xf32, #tpu.memory_space<vmem>>, vector<1x16x96xf32>
    %165 = vector.shape_cast %164 : vector<1x16x96xf32> to vector<16x96xf32>
    %166 = vector.broadcast %36 : vector<1x96xf32> to vector<16x96xf32>
    %167 = arith.mulf %165, %166 : vector<16x96xf32>
    %168 = arith.addf %160, %167 : vector<16x96xf32>
    %c1_i32_102 = arith.constant 1 : i32
    %169 = arith.muli %c1_i32_81, %c1_i32_102 : i32
    %c1_i32_103 = arith.constant 1 : i32
    %170 = arith.addi %169, %c1_i32_103 : i32
    %171 = arith.index_cast %170 : i32 to index
    %c2_104 = arith.constant 2 : index
    %c0_105 = arith.constant 0 : index
    %172 = vector.load %arg10[%171, %c2_104, %c0_105] : memref<18x32x96xf32, #tpu.memory_space<vmem>>, vector<1x16x96xf32>
    %173 = vector.shape_cast %172 : vector<1x16x96xf32> to vector<16x96xf32>
    %174 = vector.broadcast %38 : vector<1x96xf32> to vector<16x96xf32>
    %175 = arith.mulf %173, %174 : vector<16x96xf32>
    %176 = arith.addf %168, %175 : vector<16x96xf32>
    %c1_i32_106 = arith.constant 1 : i32
    %177 = arith.muli %c1_i32_81, %c1_i32_106 : i32
    %c2_i32_107 = arith.constant 2 : i32
    %178 = arith.addi %177, %c2_i32_107 : i32
    %179 = arith.index_cast %178 : i32 to index
    %c0_108 = arith.constant 0 : index
    %c0_109 = arith.constant 0 : index
    %180 = vector.load %arg10[%179, %c0_108, %c0_109] : memref<18x32x96xf32, #tpu.memory_space<vmem>>, vector<1x16x96xf32>
    %181 = vector.shape_cast %180 : vector<1x16x96xf32> to vector<16x96xf32>
    %182 = vector.broadcast %40 : vector<1x96xf32> to vector<16x96xf32>
    %183 = arith.mulf %181, %182 : vector<16x96xf32>
    %184 = arith.addf %176, %183 : vector<16x96xf32>
    %c1_i32_110 = arith.constant 1 : i32
    %185 = arith.muli %c1_i32_81, %c1_i32_110 : i32
    %c2_i32_111 = arith.constant 2 : i32
    %186 = arith.addi %185, %c2_i32_111 : i32
    %187 = arith.index_cast %186 : i32 to index
    %c1_112 = arith.constant 1 : index
    %c0_113 = arith.constant 0 : index
    %188 = vector.load %arg10[%187, %c1_112, %c0_113] : memref<18x32x96xf32, #tpu.memory_space<vmem>>, vector<1x16x96xf32>
    %189 = vector.shape_cast %188 : vector<1x16x96xf32> to vector<16x96xf32>
    %190 = vector.broadcast %42 : vector<1x96xf32> to vector<16x96xf32>
    %191 = arith.mulf %189, %190 : vector<16x96xf32>
    %192 = arith.addf %184, %191 : vector<16x96xf32>
    %c1_i32_114 = arith.constant 1 : i32
    %193 = arith.muli %c1_i32_81, %c1_i32_114 : i32
    %c2_i32_115 = arith.constant 2 : i32
    %194 = arith.addi %193, %c2_i32_115 : i32
    %195 = arith.index_cast %194 : i32 to index
    %c2_116 = arith.constant 2 : index
    %c0_117 = arith.constant 0 : index
    %196 = vector.load %arg10[%195, %c2_116, %c0_117] : memref<18x32x96xf32, #tpu.memory_space<vmem>>, vector<1x16x96xf32>
    %197 = vector.shape_cast %196 : vector<1x16x96xf32> to vector<16x96xf32>
    %198 = vector.broadcast %44 : vector<1x96xf32> to vector<16x96xf32>
    %199 = arith.mulf %197, %198 : vector<16x96xf32>
    %200 = arith.addf %192, %199 : vector<16x96xf32>
    %cst_118 = arith.constant 0.000000e+00 : f32
    %cst_119 = arith.constant 6.000000e+00 : f32
    %201 = vector.broadcast %cst_118 : f32 to vector<16x96xf32>
    %202 = arith.maximumf %201, %200 : vector<16x96xf32>
    %203 = vector.broadcast %cst_119 : f32 to vector<16x96xf32>
    %204 = arith.minimumf %203, %202 : vector<16x96xf32>
    %205 = arith.truncf %204 : vector<16x96xf32> to vector<16x96xbf16>
    %206 = arith.index_cast %c1_i32_81 : i32 to index
    %c0_120 = arith.constant 0 : index
    %c0_121 = arith.constant 0 : index
    %207 = vector.load %arg11[%206, %c0_120, %c0_121] : memref<16x16x96xbf16, #tpu.memory_space<vmem>>, vector<1x16x96xbf16>
    %208 = vector.shape_cast %207 : vector<1x16x96xbf16> to vector<16x96xbf16>
    %209 = vector.shape_cast %205 : vector<16x96xbf16> to vector<1x16x96xbf16>
    tpu.vector_store %arg11[%206, %c0_120, %c0_121], %209 {strides = array<i32>} : memref<16x16x96xbf16, #tpu.memory_space<vmem>>, vector<1x16x96xbf16>,
    %c2_i32_122 = arith.constant 2 : i32
    %c1_i32_123 = arith.constant 1 : i32
    %210 = arith.muli %c2_i32_122, %c1_i32_123 : i32
    %c0_i32_124 = arith.constant 0 : i32
    %211 = arith.addi %210, %c0_i32_124 : i32
    %212 = arith.index_cast %211 : i32 to index
    %c0_125 = arith.constant 0 : index
    %c0_126 = arith.constant 0 : index
    %213 = vector.load %arg10[%212, %c0_125, %c0_126] : memref<18x32x96xf32, #tpu.memory_space<vmem>>, vector<1x16x96xf32>
    %214 = vector.shape_cast %213 : vector<1x16x96xf32> to vector<16x96xf32>
    %215 = vector.broadcast %28 : vector<1x96xf32> to vector<16x96xf32>
    %216 = arith.mulf %214, %215 : vector<16x96xf32>
    %217 = arith.addf %47, %216 : vector<16x96xf32>
    %c1_i32_127 = arith.constant 1 : i32
    %218 = arith.muli %c2_i32_122, %c1_i32_127 : i32
    %c0_i32_128 = arith.constant 0 : i32
    %219 = arith.addi %218, %c0_i32_128 : i32
    %220 = arith.index_cast %219 : i32 to index
    %c1_129 = arith.constant 1 : index
    %c0_130 = arith.constant 0 : index
    %221 = vector.load %arg10[%220, %c1_129, %c0_130] : memref<18x32x96xf32, #tpu.memory_space<vmem>>, vector<1x16x96xf32>
    %222 = vector.shape_cast %221 : vector<1x16x96xf32> to vector<16x96xf32>
    %223 = vector.broadcast %30 : vector<1x96xf32> to vector<16x96xf32>
    %224 = arith.mulf %222, %223 : vector<16x96xf32>
    %225 = arith.addf %217, %224 : vector<16x96xf32>
    %c1_i32_131 = arith.constant 1 : i32
    %226 = arith.muli %c2_i32_122, %c1_i32_131 : i32
    %c0_i32_132 = arith.constant 0 : i32
    %227 = arith.addi %226, %c0_i32_132 : i32
    %228 = arith.index_cast %227 : i32 to index
    %c2_133 = arith.constant 2 : index
    %c0_134 = arith.constant 0 : index
    %229 = vector.load %arg10[%228, %c2_133, %c0_134] : memref<18x32x96xf32, #tpu.memory_space<vmem>>, vector<1x16x96xf32>
    %230 = vector.shape_cast %229 : vector<1x16x96xf32> to vector<16x96xf32>
    %231 = vector.broadcast %32 : vector<1x96xf32> to vector<16x96xf32>
    %232 = arith.mulf %230, %231 : vector<16x96xf32>
    %233 = arith.addf %225, %232 : vector<16x96xf32>
    %c1_i32_135 = arith.constant 1 : i32
    %234 = arith.muli %c2_i32_122, %c1_i32_135 : i32
    %c1_i32_136 = arith.constant 1 : i32
    %235 = arith.addi %234, %c1_i32_136 : i32
    %236 = arith.index_cast %235 : i32 to index
    %c0_137 = arith.constant 0 : index
    %c0_138 = arith.constant 0 : index
    %237 = vector.load %arg10[%236, %c0_137, %c0_138] : memref<18x32x96xf32, #tpu.memory_space<vmem>>, vector<1x16x96xf32>
    %238 = vector.shape_cast %237 : vector<1x16x96xf32> to vector<16x96xf32>
    %239 = vector.broadcast %34 : vector<1x96xf32> to vector<16x96xf32>
    %240 = arith.mulf %238, %239 : vector<16x96xf32>
    %241 = arith.addf %233, %240 : vector<16x96xf32>
    %c1_i32_139 = arith.constant 1 : i32
    %242 = arith.muli %c2_i32_122, %c1_i32_139 : i32
    %c1_i32_140 = arith.constant 1 : i32
    %243 = arith.addi %242, %c1_i32_140 : i32
    %244 = arith.index_cast %243 : i32 to index
    %c1_141 = arith.constant 1 : index
    %c0_142 = arith.constant 0 : index
    %245 = vector.load %arg10[%244, %c1_141, %c0_142] : memref<18x32x96xf32, #tpu.memory_space<vmem>>, vector<1x16x96xf32>
    %246 = vector.shape_cast %245 : vector<1x16x96xf32> to vector<16x96xf32>
    %247 = vector.broadcast %36 : vector<1x96xf32> to vector<16x96xf32>
    %248 = arith.mulf %246, %247 : vector<16x96xf32>
    %249 = arith.addf %241, %248 : vector<16x96xf32>
    %c1_i32_143 = arith.constant 1 : i32
    %250 = arith.muli %c2_i32_122, %c1_i32_143 : i32
    %c1_i32_144 = arith.constant 1 : i32
    %251 = arith.addi %250, %c1_i32_144 : i32
    %252 = arith.index_cast %251 : i32 to index
    %c2_145 = arith.constant 2 : index
    %c0_146 = arith.constant 0 : index
    %253 = vector.load %arg10[%252, %c2_145, %c0_146] : memref<18x32x96xf32, #tpu.memory_space<vmem>>, vector<1x16x96xf32>
    %254 = vector.shape_cast %253 : vector<1x16x96xf32> to vector<16x96xf32>
    %255 = vector.broadcast %38 : vector<1x96xf32> to vector<16x96xf32>
    %256 = arith.mulf %254, %255 : vector<16x96xf32>
    %257 = arith.addf %249, %256 : vector<16x96xf32>
    %c1_i32_147 = arith.constant 1 : i32
    %258 = arith.muli %c2_i32_122, %c1_i32_147 : i32
    %c2_i32_148 = arith.constant 2 : i32
    %259 = arith.addi %258, %c2_i32_148 : i32
    %260 = arith.index_cast %259 : i32 to index
    %c0_149 = arith.constant 0 : index
    %c0_150 = arith.constant 0 : index
    %261 = vector.load %arg10[%260, %c0_149, %c0_150] : memref<18x32x96xf32, #tpu.memory_space<vmem>>, vector<1x16x96xf32>
    %262 = vector.shape_cast %261 : vector<1x16x96xf32> to vector<16x96xf32>
    %263 = vector.broadcast %40 : vector<1x96xf32> to vector<16x96xf32>
    %264 = arith.mulf %262, %263 : vector<16x96xf32>
    %265 = arith.addf %257, %264 : vector<16x96xf32>
    %c1_i32_151 = arith.constant 1 : i32
    %266 = arith.muli %c2_i32_122, %c1_i32_151 : i32
    %c2_i32_152 = arith.constant 2 : i32
    %267 = arith.addi %266, %c2_i32_152 : i32
    %268 = arith.index_cast %267 : i32 to index
    %c1_153 = arith.constant 1 : index
    %c0_154 = arith.constant 0 : index
    %269 = vector.load %arg10[%268, %c1_153, %c0_154] : memref<18x32x96xf32, #tpu.memory_space<vmem>>, vector<1x16x96xf32>
    %270 = vector.shape_cast %269 : vector<1x16x96xf32> to vector<16x96xf32>
    %271 = vector.broadcast %42 : vector<1x96xf32> to vector<16x96xf32>
    %272 = arith.mulf %270, %271 : vector<16x96xf32>
    %273 = arith.addf %265, %272 : vector<16x96xf32>
    %c1_i32_155 = arith.constant 1 : i32
    %274 = arith.muli %c2_i32_122, %c1_i32_155 : i32
    %c2_i32_156 = arith.constant 2 : i32
    %275 = arith.addi %274, %c2_i32_156 : i32
    %276 = arith.index_cast %275 : i32 to index
    %c2_157 = arith.constant 2 : index
    %c0_158 = arith.constant 0 : index
    %277 = vector.load %arg10[%276, %c2_157, %c0_158] : memref<18x32x96xf32, #tpu.memory_space<vmem>>, vector<1x16x96xf32>
    %278 = vector.shape_cast %277 : vector<1x16x96xf32> to vector<16x96xf32>
    %279 = vector.broadcast %44 : vector<1x96xf32> to vector<16x96xf32>
    %280 = arith.mulf %278, %279 : vector<16x96xf32>
    %281 = arith.addf %273, %280 : vector<16x96xf32>
    %cst_159 = arith.constant 0.000000e+00 : f32
    %cst_160 = arith.constant 6.000000e+00 : f32
    %282 = vector.broadcast %cst_159 : f32 to vector<16x96xf32>
    %283 = arith.maximumf %282, %281 : vector<16x96xf32>
    %284 = vector.broadcast %cst_160 : f32 to vector<16x96xf32>
    %285 = arith.minimumf %284, %283 : vector<16x96xf32>
    %286 = arith.truncf %285 : vector<16x96xf32> to vector<16x96xbf16>
    %287 = arith.index_cast %c2_i32_122 : i32 to index
    %c0_161 = arith.constant 0 : index
    %c0_162 = arith.constant 0 : index
    %288 = vector.load %arg11[%287, %c0_161, %c0_162] : memref<16x16x96xbf16, #tpu.memory_space<vmem>>, vector<1x16x96xbf16>
    %289 = vector.shape_cast %288 : vector<1x16x96xbf16> to vector<16x96xbf16>
    %290 = vector.shape_cast %286 : vector<16x96xbf16> to vector<1x16x96xbf16>
    tpu.vector_store %arg11[%287, %c0_161, %c0_162], %290 {strides = array<i32>} : memref<16x16x96xbf16, #tpu.memory_space<vmem>>, vector<1x16x96xbf16>,
    %c3_i32 = arith.constant 3 : i32
    %c1_i32_163 = arith.constant 1 : i32
    %291 = arith.muli %c3_i32, %c1_i32_163 : i32
    %c0_i32_164 = arith.constant 0 : i32
    %292 = arith.addi %291, %c0_i32_164 : i32
    %293 = arith.index_cast %292 : i32 to index
    %c0_165 = arith.constant 0 : index
    %c0_166 = arith.constant 0 : index
    %294 = vector.load %arg10[%293, %c0_165, %c0_166] : memref<18x32x96xf32, #tpu.memory_space<vmem>>, vector<1x16x96xf32>
    %295 = vector.shape_cast %294 : vector<1x16x96xf32> to vector<16x96xf32>
    %296 = vector.broadcast %28 : vector<1x96xf32> to vector<16x96xf32>
    %297 = arith.mulf %295, %296 : vector<16x96xf32>
    %298 = arith.addf %47, %297 : vector<16x96xf32>
    %c1_i32_167 = arith.constant 1 : i32
    %299 = arith.muli %c3_i32, %c1_i32_167 : i32
    %c0_i32_168 = arith.constant 0 : i32
    %300 = arith.addi %299, %c0_i32_168 : i32
    %301 = arith.index_cast %300 : i32 to index
    %c1_169 = arith.constant 1 : index
    %c0_170 = arith.constant 0 : index
    %302 = vector.load %arg10[%301, %c1_169, %c0_170] : memref<18x32x96xf32, #tpu.memory_space<vmem>>, vector<1x16x96xf32>
    %303 = vector.shape_cast %302 : vector<1x16x96xf32> to vector<16x96xf32>
    %304 = vector.broadcast %30 : vector<1x96xf32> to vector<16x96xf32>
    %305 = arith.mulf %303, %304 : vector<16x96xf32>
    %306 = arith.addf %298, %305 : vector<16x96xf32>
    %c1_i32_171 = arith.constant 1 : i32
    %307 = arith.muli %c3_i32, %c1_i32_171 : i32
    %c0_i32_172 = arith.constant 0 : i32
    %308 = arith.addi %307, %c0_i32_172 : i32
    %309 = arith.index_cast %308 : i32 to index
    %c2_173 = arith.constant 2 : index
    %c0_174 = arith.constant 0 : index
    %310 = vector.load %arg10[%309, %c2_173, %c0_174] : memref<18x32x96xf32, #tpu.memory_space<vmem>>, vector<1x16x96xf32>
    %311 = vector.shape_cast %310 : vector<1x16x96xf32> to vector<16x96xf32>
    %312 = vector.broadcast %32 : vector<1x96xf32> to vector<16x96xf32>
    %313 = arith.mulf %311, %312 : vector<16x96xf32>
    %314 = arith.addf %306, %313 : vector<16x96xf32>
    %c1_i32_175 = arith.constant 1 : i32
    %315 = arith.muli %c3_i32, %c1_i32_175 : i32
    %c1_i32_176 = arith.constant 1 : i32
    %316 = arith.addi %315, %c1_i32_176 : i32
    %317 = arith.index_cast %316 : i32 to index
    %c0_177 = arith.constant 0 : index
    %c0_178 = arith.constant 0 : index
    %318 = vector.load %arg10[%317, %c0_177, %c0_178] : memref<18x32x96xf32, #tpu.memory_space<vmem>>, vector<1x16x96xf32>
    %319 = vector.shape_cast %318 : vector<1x16x96xf32> to vector<16x96xf32>
    %320 = vector.broadcast %34 : vector<1x96xf32> to vector<16x96xf32>
    %321 = arith.mulf %319, %320 : vector<16x96xf32>
    %322 = arith.addf %314, %321 : vector<16x96xf32>
    %c1_i32_179 = arith.constant 1 : i32
    %323 = arith.muli %c3_i32, %c1_i32_179 : i32
    %c1_i32_180 = arith.constant 1 : i32
    %324 = arith.addi %323, %c1_i32_180 : i32
    %325 = arith.index_cast %324 : i32 to index
    %c1_181 = arith.constant 1 : index
    %c0_182 = arith.constant 0 : index
    %326 = vector.load %arg10[%325, %c1_181, %c0_182] : memref<18x32x96xf32, #tpu.memory_space<vmem>>, vector<1x16x96xf32>
    %327 = vector.shape_cast %326 : vector<1x16x96xf32> to vector<16x96xf32>
    %328 = vector.broadcast %36 : vector<1x96xf32> to vector<16x96xf32>
    %329 = arith.mulf %327, %328 : vector<16x96xf32>
    %330 = arith.addf %322, %329 : vector<16x96xf32>
    %c1_i32_183 = arith.constant 1 : i32
    %331 = arith.muli %c3_i32, %c1_i32_183 : i32
    %c1_i32_184 = arith.constant 1 : i32
    %332 = arith.addi %331, %c1_i32_184 : i32
    %333 = arith.index_cast %332 : i32 to index
    %c2_185 = arith.constant 2 : index
    %c0_186 = arith.constant 0 : index
    %334 = vector.load %arg10[%333, %c2_185, %c0_186] : memref<18x32x96xf32, #tpu.memory_space<vmem>>, vector<1x16x96xf32>
    %335 = vector.shape_cast %334 : vector<1x16x96xf32> to vector<16x96xf32>
    %336 = vector.broadcast %38 : vector<1x96xf32> to vector<16x96xf32>
    %337 = arith.mulf %335, %336 : vector<16x96xf32>
    %338 = arith.addf %330, %337 : vector<16x96xf32>
    %c1_i32_187 = arith.constant 1 : i32
    %339 = arith.muli %c3_i32, %c1_i32_187 : i32
    %c2_i32_188 = arith.constant 2 : i32
    %340 = arith.addi %339, %c2_i32_188 : i32
    %341 = arith.index_cast %340 : i32 to index
    %c0_189 = arith.constant 0 : index
    %c0_190 = arith.constant 0 : index
    %342 = vector.load %arg10[%341, %c0_189, %c0_190] : memref<18x32x96xf32, #tpu.memory_space<vmem>>, vector<1x16x96xf32>
    %343 = vector.shape_cast %342 : vector<1x16x96xf32> to vector<16x96xf32>
    %344 = vector.broadcast %40 : vector<1x96xf32> to vector<16x96xf32>
    %345 = arith.mulf %343, %344 : vector<16x96xf32>
    %346 = arith.addf %338, %345 : vector<16x96xf32>
    %c1_i32_191 = arith.constant 1 : i32
    %347 = arith.muli %c3_i32, %c1_i32_191 : i32
    %c2_i32_192 = arith.constant 2 : i32
    %348 = arith.addi %347, %c2_i32_192 : i32
    %349 = arith.index_cast %348 : i32 to index
    %c1_193 = arith.constant 1 : index
    %c0_194 = arith.constant 0 : index
    %350 = vector.load %arg10[%349, %c1_193, %c0_194] : memref<18x32x96xf32, #tpu.memory_space<vmem>>, vector<1x16x96xf32>
    %351 = vector.shape_cast %350 : vector<1x16x96xf32> to vector<16x96xf32>
    %352 = vector.broadcast %42 : vector<1x96xf32> to vector<16x96xf32>
    %353 = arith.mulf %351, %352 : vector<16x96xf32>
    %354 = arith.addf %346, %353 : vector<16x96xf32>
    %c1_i32_195 = arith.constant 1 : i32
    %355 = arith.muli %c3_i32, %c1_i32_195 : i32
    %c2_i32_196 = arith.constant 2 : i32
    %356 = arith.addi %355, %c2_i32_196 : i32
    %357 = arith.index_cast %356 : i32 to index
    %c2_197 = arith.constant 2 : index
    %c0_198 = arith.constant 0 : index
    %358 = vector.load %arg10[%357, %c2_197, %c0_198] : memref<18x32x96xf32, #tpu.memory_space<vmem>>, vector<1x16x96xf32>
    %359 = vector.shape_cast %358 : vector<1x16x96xf32> to vector<16x96xf32>
    %360 = vector.broadcast %44 : vector<1x96xf32> to vector<16x96xf32>
    %361 = arith.mulf %359, %360 : vector<16x96xf32>
    %362 = arith.addf %354, %361 : vector<16x96xf32>
    %cst_199 = arith.constant 0.000000e+00 : f32
    %cst_200 = arith.constant 6.000000e+00 : f32
    %363 = vector.broadcast %cst_199 : f32 to vector<16x96xf32>
    %364 = arith.maximumf %363, %362 : vector<16x96xf32>
    %365 = vector.broadcast %cst_200 : f32 to vector<16x96xf32>
    %366 = arith.minimumf %365, %364 : vector<16x96xf32>
    %367 = arith.truncf %366 : vector<16x96xf32> to vector<16x96xbf16>
    %368 = arith.index_cast %c3_i32 : i32 to index
    %c0_201 = arith.constant 0 : index
    %c0_202 = arith.constant 0 : index
    %369 = vector.load %arg11[%368, %c0_201, %c0_202] : memref<16x16x96xbf16, #tpu.memory_space<vmem>>, vector<1x16x96xbf16>
    %370 = vector.shape_cast %369 : vector<1x16x96xbf16> to vector<16x96xbf16>
    %371 = vector.shape_cast %367 : vector<16x96xbf16> to vector<1x16x96xbf16>
    tpu.vector_store %arg11[%368, %c0_201, %c0_202], %371 {strides = array<i32>} : memref<16x16x96xbf16, #tpu.memory_space<vmem>>, vector<1x16x96xbf16>,
    %c4_i32 = arith.constant 4 : i32
    %c1_i32_203 = arith.constant 1 : i32
    %372 = arith.muli %c4_i32, %c1_i32_203 : i32
    %c0_i32_204 = arith.constant 0 : i32
    %373 = arith.addi %372, %c0_i32_204 : i32
    %374 = arith.index_cast %373 : i32 to index
    %c0_205 = arith.constant 0 : index
    %c0_206 = arith.constant 0 : index
    %375 = vector.load %arg10[%374, %c0_205, %c0_206] : memref<18x32x96xf32, #tpu.memory_space<vmem>>, vector<1x16x96xf32>
    %376 = vector.shape_cast %375 : vector<1x16x96xf32> to vector<16x96xf32>
    %377 = vector.broadcast %28 : vector<1x96xf32> to vector<16x96xf32>
    %378 = arith.mulf %376, %377 : vector<16x96xf32>
    %379 = arith.addf %47, %378 : vector<16x96xf32>
    %c1_i32_207 = arith.constant 1 : i32
    %380 = arith.muli %c4_i32, %c1_i32_207 : i32
    %c0_i32_208 = arith.constant 0 : i32
    %381 = arith.addi %380, %c0_i32_208 : i32
    %382 = arith.index_cast %381 : i32 to index
    %c1_209 = arith.constant 1 : index
    %c0_210 = arith.constant 0 : index
    %383 = vector.load %arg10[%382, %c1_209, %c0_210] : memref<18x32x96xf32, #tpu.memory_space<vmem>>, vector<1x16x96xf32>
    %384 = vector.shape_cast %383 : vector<1x16x96xf32> to vector<16x96xf32>
    %385 = vector.broadcast %30 : vector<1x96xf32> to vector<16x96xf32>
    %386 = arith.mulf %384, %385 : vector<16x96xf32>
    %387 = arith.addf %379, %386 : vector<16x96xf32>
    %c1_i32_211 = arith.constant 1 : i32
    %388 = arith.muli %c4_i32, %c1_i32_211 : i32
    %c0_i32_212 = arith.constant 0 : i32
    %389 = arith.addi %388, %c0_i32_212 : i32
    %390 = arith.index_cast %389 : i32 to index
    %c2_213 = arith.constant 2 : index
    %c0_214 = arith.constant 0 : index
    %391 = vector.load %arg10[%390, %c2_213, %c0_214] : memref<18x32x96xf32, #tpu.memory_space<vmem>>, vector<1x16x96xf32>
    %392 = vector.shape_cast %391 : vector<1x16x96xf32> to vector<16x96xf32>
    %393 = vector.broadcast %32 : vector<1x96xf32> to vector<16x96xf32>
    %394 = arith.mulf %392, %393 : vector<16x96xf32>
    %395 = arith.addf %387, %394 : vector<16x96xf32>
    %c1_i32_215 = arith.constant 1 : i32
    %396 = arith.muli %c4_i32, %c1_i32_215 : i32
    %c1_i32_216 = arith.constant 1 : i32
    %397 = arith.addi %396, %c1_i32_216 : i32
    %398 = arith.index_cast %397 : i32 to index
    %c0_217 = arith.constant 0 : index
    %c0_218 = arith.constant 0 : index
    %399 = vector.load %arg10[%398, %c0_217, %c0_218] : memref<18x32x96xf32, #tpu.memory_space<vmem>>, vector<1x16x96xf32>
    %400 = vector.shape_cast %399 : vector<1x16x96xf32> to vector<16x96xf32>
    %401 = vector.broadcast %34 : vector<1x96xf32> to vector<16x96xf32>
    %402 = arith.mulf %400, %401 : vector<16x96xf32>
    %403 = arith.addf %395, %402 : vector<16x96xf32>
    %c1_i32_219 = arith.constant 1 : i32
    %404 = arith.muli %c4_i32, %c1_i32_219 : i32
    %c1_i32_220 = arith.constant 1 : i32
    %405 = arith.addi %404, %c1_i32_220 : i32
    %406 = arith.index_cast %405 : i32 to index
    %c1_221 = arith.constant 1 : index
    %c0_222 = arith.constant 0 : index
    %407 = vector.load %arg10[%406, %c1_221, %c0_222] : memref<18x32x96xf32, #tpu.memory_space<vmem>>, vector<1x16x96xf32>
    %408 = vector.shape_cast %407 : vector<1x16x96xf32> to vector<16x96xf32>
    %409 = vector.broadcast %36 : vector<1x96xf32> to vector<16x96xf32>
    %410 = arith.mulf %408, %409 : vector<16x96xf32>
    %411 = arith.addf %403, %410 : vector<16x96xf32>
    %c1_i32_223 = arith.constant 1 : i32
    %412 = arith.muli %c4_i32, %c1_i32_223 : i32
    %c1_i32_224 = arith.constant 1 : i32
    %413 = arith.addi %412, %c1_i32_224 : i32
    %414 = arith.index_cast %413 : i32 to index
    %c2_225 = arith.constant 2 : index
    %c0_226 = arith.constant 0 : index
    %415 = vector.load %arg10[%414, %c2_225, %c0_226] : memref<18x32x96xf32, #tpu.memory_space<vmem>>, vector<1x16x96xf32>
    %416 = vector.shape_cast %415 : vector<1x16x96xf32> to vector<16x96xf32>
    %417 = vector.broadcast %38 : vector<1x96xf32> to vector<16x96xf32>
    %418 = arith.mulf %416, %417 : vector<16x96xf32>
    %419 = arith.addf %411, %418 : vector<16x96xf32>
    %c1_i32_227 = arith.constant 1 : i32
    %420 = arith.muli %c4_i32, %c1_i32_227 : i32
    %c2_i32_228 = arith.constant 2 : i32
    %421 = arith.addi %420, %c2_i32_228 : i32
    %422 = arith.index_cast %421 : i32 to index
    %c0_229 = arith.constant 0 : index
    %c0_230 = arith.constant 0 : index
    %423 = vector.load %arg10[%422, %c0_229, %c0_230] : memref<18x32x96xf32, #tpu.memory_space<vmem>>, vector<1x16x96xf32>
    %424 = vector.shape_cast %423 : vector<1x16x96xf32> to vector<16x96xf32>
    %425 = vector.broadcast %40 : vector<1x96xf32> to vector<16x96xf32>
    %426 = arith.mulf %424, %425 : vector<16x96xf32>
    %427 = arith.addf %419, %426 : vector<16x96xf32>
    %c1_i32_231 = arith.constant 1 : i32
    %428 = arith.muli %c4_i32, %c1_i32_231 : i32
    %c2_i32_232 = arith.constant 2 : i32
    %429 = arith.addi %428, %c2_i32_232 : i32
    %430 = arith.index_cast %429 : i32 to index
    %c1_233 = arith.constant 1 : index
    %c0_234 = arith.constant 0 : index
    %431 = vector.load %arg10[%430, %c1_233, %c0_234] : memref<18x32x96xf32, #tpu.memory_space<vmem>>, vector<1x16x96xf32>
    %432 = vector.shape_cast %431 : vector<1x16x96xf32> to vector<16x96xf32>
    %433 = vector.broadcast %42 : vector<1x96xf32> to vector<16x96xf32>
    %434 = arith.mulf %432, %433 : vector<16x96xf32>
    %435 = arith.addf %427, %434 : vector<16x96xf32>
    %c1_i32_235 = arith.constant 1 : i32
    %436 = arith.muli %c4_i32, %c1_i32_235 : i32
    %c2_i32_236 = arith.constant 2 : i32
    %437 = arith.addi %436, %c2_i32_236 : i32
    %438 = arith.index_cast %437 : i32 to index
    %c2_237 = arith.constant 2 : index
    %c0_238 = arith.constant 0 : index
    %439 = vector.load %arg10[%438, %c2_237, %c0_238] : memref<18x32x96xf32, #tpu.memory_space<vmem>>, vector<1x16x96xf32>
    %440 = vector.shape_cast %439 : vector<1x16x96xf32> to vector<16x96xf32>
    %441 = vector.broadcast %44 : vector<1x96xf32> to vector<16x96xf32>
    %442 = arith.mulf %440, %441 : vector<16x96xf32>
    %443 = arith.addf %435, %442 : vector<16x96xf32>
    %cst_239 = arith.constant 0.000000e+00 : f32
    %cst_240 = arith.constant 6.000000e+00 : f32
    %444 = vector.broadcast %cst_239 : f32 to vector<16x96xf32>
    %445 = arith.maximumf %444, %443 : vector<16x96xf32>
    %446 = vector.broadcast %cst_240 : f32 to vector<16x96xf32>
    %447 = arith.minimumf %446, %445 : vector<16x96xf32>
    %448 = arith.truncf %447 : vector<16x96xf32> to vector<16x96xbf16>
    %449 = arith.index_cast %c4_i32 : i32 to index
    %c0_241 = arith.constant 0 : index
    %c0_242 = arith.constant 0 : index
    %450 = vector.load %arg11[%449, %c0_241, %c0_242] : memref<16x16x96xbf16, #tpu.memory_space<vmem>>, vector<1x16x96xbf16>
    %451 = vector.shape_cast %450 : vector<1x16x96xbf16> to vector<16x96xbf16>
    %452 = vector.shape_cast %448 : vector<16x96xbf16> to vector<1x16x96xbf16>
    tpu.vector_store %arg11[%449, %c0_241, %c0_242], %452 {strides = array<i32>} : memref<16x16x96xbf16, #tpu.memory_space<vmem>>, vector<1x16x96xbf16>,
    %c5_i32 = arith.constant 5 : i32
    %c1_i32_243 = arith.constant 1 : i32
    %453 = arith.muli %c5_i32, %c1_i32_243 : i32
    %c0_i32_244 = arith.constant 0 : i32
    %454 = arith.addi %453, %c0_i32_244 : i32
    %455 = arith.index_cast %454 : i32 to index
    %c0_245 = arith.constant 0 : index
    %c0_246 = arith.constant 0 : index
    %456 = vector.load %arg10[%455, %c0_245, %c0_246] : memref<18x32x96xf32, #tpu.memory_space<vmem>>, vector<1x16x96xf32>
    %457 = vector.shape_cast %456 : vector<1x16x96xf32> to vector<16x96xf32>
    %458 = vector.broadcast %28 : vector<1x96xf32> to vector<16x96xf32>
    %459 = arith.mulf %457, %458 : vector<16x96xf32>
    %460 = arith.addf %47, %459 : vector<16x96xf32>
    %c1_i32_247 = arith.constant 1 : i32
    %461 = arith.muli %c5_i32, %c1_i32_247 : i32
    %c0_i32_248 = arith.constant 0 : i32
    %462 = arith.addi %461, %c0_i32_248 : i32
    %463 = arith.index_cast %462 : i32 to index
    %c1_249 = arith.constant 1 : index
    %c0_250 = arith.constant 0 : index
    %464 = vector.load %arg10[%463, %c1_249, %c0_250] : memref<18x32x96xf32, #tpu.memory_space<vmem>>, vector<1x16x96xf32>
    %465 = vector.shape_cast %464 : vector<1x16x96xf32> to vector<16x96xf32>
    %466 = vector.broadcast %30 : vector<1x96xf32> to vector<16x96xf32>
    %467 = arith.mulf %465, %466 : vector<16x96xf32>
    %468 = arith.addf %460, %467 : vector<16x96xf32>
    %c1_i32_251 = arith.constant 1 : i32
    %469 = arith.muli %c5_i32, %c1_i32_251 : i32
    %c0_i32_252 = arith.constant 0 : i32
    %470 = arith.addi %469, %c0_i32_252 : i32
    %471 = arith.index_cast %470 : i32 to index
    %c2_253 = arith.constant 2 : index
    %c0_254 = arith.constant 0 : index
    %472 = vector.load %arg10[%471, %c2_253, %c0_254] : memref<18x32x96xf32, #tpu.memory_space<vmem>>, vector<1x16x96xf32>
    %473 = vector.shape_cast %472 : vector<1x16x96xf32> to vector<16x96xf32>
    %474 = vector.broadcast %32 : vector<1x96xf32> to vector<16x96xf32>
    %475 = arith.mulf %473, %474 : vector<16x96xf32>
    %476 = arith.addf %468, %475 : vector<16x96xf32>
    %c1_i32_255 = arith.constant 1 : i32
    %477 = arith.muli %c5_i32, %c1_i32_255 : i32
    %c1_i32_256 = arith.constant 1 : i32
    %478 = arith.addi %477, %c1_i32_256 : i32
    %479 = arith.index_cast %478 : i32 to index
    %c0_257 = arith.constant 0 : index
    %c0_258 = arith.constant 0 : index
    %480 = vector.load %arg10[%479, %c0_257, %c0_258] : memref<18x32x96xf32, #tpu.memory_space<vmem>>, vector<1x16x96xf32>
    %481 = vector.shape_cast %480 : vector<1x16x96xf32> to vector<16x96xf32>
    %482 = vector.broadcast %34 : vector<1x96xf32> to vector<16x96xf32>
    %483 = arith.mulf %481, %482 : vector<16x96xf32>
    %484 = arith.addf %476, %483 : vector<16x96xf32>
    %c1_i32_259 = arith.constant 1 : i32
    %485 = arith.muli %c5_i32, %c1_i32_259 : i32
    %c1_i32_260 = arith.constant 1 : i32
    %486 = arith.addi %485, %c1_i32_260 : i32
    %487 = arith.index_cast %486 : i32 to index
    %c1_261 = arith.constant 1 : index
    %c0_262 = arith.constant 0 : index
    %488 = vector.load %arg10[%487, %c1_261, %c0_262] : memref<18x32x96xf32, #tpu.memory_space<vmem>>, vector<1x16x96xf32>
    %489 = vector.shape_cast %488 : vector<1x16x96xf32> to vector<16x96xf32>
    %490 = vector.broadcast %36 : vector<1x96xf32> to vector<16x96xf32>
    %491 = arith.mulf %489, %490 : vector<16x96xf32>
    %492 = arith.addf %484, %491 : vector<16x96xf32>
    %c1_i32_263 = arith.constant 1 : i32
    %493 = arith.muli %c5_i32, %c1_i32_263 : i32
    %c1_i32_264 = arith.constant 1 : i32
    %494 = arith.addi %493, %c1_i32_264 : i32
    %495 = arith.index_cast %494 : i32 to index
    %c2_265 = arith.constant 2 : index
    %c0_266 = arith.constant 0 : index
    %496 = vector.load %arg10[%495, %c2_265, %c0_266] : memref<18x32x96xf32, #tpu.memory_space<vmem>>, vector<1x16x96xf32>
    %497 = vector.shape_cast %496 : vector<1x16x96xf32> to vector<16x96xf32>
    %498 = vector.broadcast %38 : vector<1x96xf32> to vector<16x96xf32>
    %499 = arith.mulf %497, %498 : vector<16x96xf32>
    %500 = arith.addf %492, %499 : vector<16x96xf32>
    %c1_i32_267 = arith.constant 1 : i32
    %501 = arith.muli %c5_i32, %c1_i32_267 : i32
    %c2_i32_268 = arith.constant 2 : i32
    %502 = arith.addi %501, %c2_i32_268 : i32
    %503 = arith.index_cast %502 : i32 to index
    %c0_269 = arith.constant 0 : index
    %c0_270 = arith.constant 0 : index
    %504 = vector.load %arg10[%503, %c0_269, %c0_270] : memref<18x32x96xf32, #tpu.memory_space<vmem>>, vector<1x16x96xf32>
    %505 = vector.shape_cast %504 : vector<1x16x96xf32> to vector<16x96xf32>
    %506 = vector.broadcast %40 : vector<1x96xf32> to vector<16x96xf32>
    %507 = arith.mulf %505, %506 : vector<16x96xf32>
    %508 = arith.addf %500, %507 : vector<16x96xf32>
    %c1_i32_271 = arith.constant 1 : i32
    %509 = arith.muli %c5_i32, %c1_i32_271 : i32
    %c2_i32_272 = arith.constant 2 : i32
    %510 = arith.addi %509, %c2_i32_272 : i32
    %511 = arith.index_cast %510 : i32 to index
    %c1_273 = arith.constant 1 : index
    %c0_274 = arith.constant 0 : index
    %512 = vector.load %arg10[%511, %c1_273, %c0_274] : memref<18x32x96xf32, #tpu.memory_space<vmem>>, vector<1x16x96xf32>
    %513 = vector.shape_cast %512 : vector<1x16x96xf32> to vector<16x96xf32>
    %514 = vector.broadcast %42 : vector<1x96xf32> to vector<16x96xf32>
    %515 = arith.mulf %513, %514 : vector<16x96xf32>
    %516 = arith.addf %508, %515 : vector<16x96xf32>
    %c1_i32_275 = arith.constant 1 : i32
    %517 = arith.muli %c5_i32, %c1_i32_275 : i32
    %c2_i32_276 = arith.constant 2 : i32
    %518 = arith.addi %517, %c2_i32_276 : i32
    %519 = arith.index_cast %518 : i32 to index
    %c2_277 = arith.constant 2 : index
    %c0_278 = arith.constant 0 : index
    %520 = vector.load %arg10[%519, %c2_277, %c0_278] : memref<18x32x96xf32, #tpu.memory_space<vmem>>, vector<1x16x96xf32>
    %521 = vector.shape_cast %520 : vector<1x16x96xf32> to vector<16x96xf32>
    %522 = vector.broadcast %44 : vector<1x96xf32> to vector<16x96xf32>
    %523 = arith.mulf %521, %522 : vector<16x96xf32>
    %524 = arith.addf %516, %523 : vector<16x96xf32>
    %cst_279 = arith.constant 0.000000e+00 : f32
    %cst_280 = arith.constant 6.000000e+00 : f32
    %525 = vector.broadcast %cst_279 : f32 to vector<16x96xf32>
    %526 = arith.maximumf %525, %524 : vector<16x96xf32>
    %527 = vector.broadcast %cst_280 : f32 to vector<16x96xf32>
    %528 = arith.minimumf %527, %526 : vector<16x96xf32>
    %529 = arith.truncf %528 : vector<16x96xf32> to vector<16x96xbf16>
    %530 = arith.index_cast %c5_i32 : i32 to index
    %c0_281 = arith.constant 0 : index
    %c0_282 = arith.constant 0 : index
    %531 = vector.load %arg11[%530, %c0_281, %c0_282] : memref<16x16x96xbf16, #tpu.memory_space<vmem>>, vector<1x16x96xbf16>
    %532 = vector.shape_cast %531 : vector<1x16x96xbf16> to vector<16x96xbf16>
    %533 = vector.shape_cast %529 : vector<16x96xbf16> to vector<1x16x96xbf16>
    tpu.vector_store %arg11[%530, %c0_281, %c0_282], %533 {strides = array<i32>} : memref<16x16x96xbf16, #tpu.memory_space<vmem>>, vector<1x16x96xbf16>,
    %c6_i32 = arith.constant 6 : i32
    %c1_i32_283 = arith.constant 1 : i32
    %534 = arith.muli %c6_i32, %c1_i32_283 : i32
    %c0_i32_284 = arith.constant 0 : i32
    %535 = arith.addi %534, %c0_i32_284 : i32
    %536 = arith.index_cast %535 : i32 to index
    %c0_285 = arith.constant 0 : index
    %c0_286 = arith.constant 0 : index
    %537 = vector.load %arg10[%536, %c0_285, %c0_286] : memref<18x32x96xf32, #tpu.memory_space<vmem>>, vector<1x16x96xf32>
    %538 = vector.shape_cast %537 : vector<1x16x96xf32> to vector<16x96xf32>
    %539 = vector.broadcast %28 : vector<1x96xf32> to vector<16x96xf32>
    %540 = arith.mulf %538, %539 : vector<16x96xf32>
    %541 = arith.addf %47, %540 : vector<16x96xf32>
    %c1_i32_287 = arith.constant 1 : i32
    %542 = arith.muli %c6_i32, %c1_i32_287 : i32
    %c0_i32_288 = arith.constant 0 : i32
    %543 = arith.addi %542, %c0_i32_288 : i32
    %544 = arith.index_cast %543 : i32 to index
    %c1_289 = arith.constant 1 : index
    %c0_290 = arith.constant 0 : index
    %545 = vector.load %arg10[%544, %c1_289, %c0_290] : memref<18x32x96xf32, #tpu.memory_space<vmem>>, vector<1x16x96xf32>
    %546 = vector.shape_cast %545 : vector<1x16x96xf32> to vector<16x96xf32>
    %547 = vector.broadcast %30 : vector<1x96xf32> to vector<16x96xf32>
    %548 = arith.mulf %546, %547 : vector<16x96xf32>
    %549 = arith.addf %541, %548 : vector<16x96xf32>
    %c1_i32_291 = arith.constant 1 : i32
    %550 = arith.muli %c6_i32, %c1_i32_291 : i32
    %c0_i32_292 = arith.constant 0 : i32
    %551 = arith.addi %550, %c0_i32_292 : i32
    %552 = arith.index_cast %551 : i32 to index
    %c2_293 = arith.constant 2 : index
    %c0_294 = arith.constant 0 : index
    %553 = vector.load %arg10[%552, %c2_293, %c0_294] : memref<18x32x96xf32, #tpu.memory_space<vmem>>, vector<1x16x96xf32>
    %554 = vector.shape_cast %553 : vector<1x16x96xf32> to vector<16x96xf32>
    %555 = vector.broadcast %32 : vector<1x96xf32> to vector<16x96xf32>
    %556 = arith.mulf %554, %555 : vector<16x96xf32>
    %557 = arith.addf %549, %556 : vector<16x96xf32>
    %c1_i32_295 = arith.constant 1 : i32
    %558 = arith.muli %c6_i32, %c1_i32_295 : i32
    %c1_i32_296 = arith.constant 1 : i32
    %559 = arith.addi %558, %c1_i32_296 : i32
    %560 = arith.index_cast %559 : i32 to index
    %c0_297 = arith.constant 0 : index
    %c0_298 = arith.constant 0 : index
    %561 = vector.load %arg10[%560, %c0_297, %c0_298] : memref<18x32x96xf32, #tpu.memory_space<vmem>>, vector<1x16x96xf32>
    %562 = vector.shape_cast %561 : vector<1x16x96xf32> to vector<16x96xf32>
    %563 = vector.broadcast %34 : vector<1x96xf32> to vector<16x96xf32>
    %564 = arith.mulf %562, %563 : vector<16x96xf32>
    %565 = arith.addf %557, %564 : vector<16x96xf32>
    %c1_i32_299 = arith.constant 1 : i32
    %566 = arith.muli %c6_i32, %c1_i32_299 : i32
    %c1_i32_300 = arith.constant 1 : i32
    %567 = arith.addi %566, %c1_i32_300 : i32
    %568 = arith.index_cast %567 : i32 to index
    %c1_301 = arith.constant 1 : index
    %c0_302 = arith.constant 0 : index
    %569 = vector.load %arg10[%568, %c1_301, %c0_302] : memref<18x32x96xf32, #tpu.memory_space<vmem>>, vector<1x16x96xf32>
    %570 = vector.shape_cast %569 : vector<1x16x96xf32> to vector<16x96xf32>
    %571 = vector.broadcast %36 : vector<1x96xf32> to vector<16x96xf32>
    %572 = arith.mulf %570, %571 : vector<16x96xf32>
    %573 = arith.addf %565, %572 : vector<16x96xf32>
    %c1_i32_303 = arith.constant 1 : i32
    %574 = arith.muli %c6_i32, %c1_i32_303 : i32
    %c1_i32_304 = arith.constant 1 : i32
    %575 = arith.addi %574, %c1_i32_304 : i32
    %576 = arith.index_cast %575 : i32 to index
    %c2_305 = arith.constant 2 : index
    %c0_306 = arith.constant 0 : index
    %577 = vector.load %arg10[%576, %c2_305, %c0_306] : memref<18x32x96xf32, #tpu.memory_space<vmem>>, vector<1x16x96xf32>
    %578 = vector.shape_cast %577 : vector<1x16x96xf32> to vector<16x96xf32>
    %579 = vector.broadcast %38 : vector<1x96xf32> to vector<16x96xf32>
    %580 = arith.mulf %578, %579 : vector<16x96xf32>
    %581 = arith.addf %573, %580 : vector<16x96xf32>
    %c1_i32_307 = arith.constant 1 : i32
    %582 = arith.muli %c6_i32, %c1_i32_307 : i32
    %c2_i32_308 = arith.constant 2 : i32
    %583 = arith.addi %582, %c2_i32_308 : i32
    %584 = arith.index_cast %583 : i32 to index
    %c0_309 = arith.constant 0 : index
    %c0_310 = arith.constant 0 : index
    %585 = vector.load %arg10[%584, %c0_309, %c0_310] : memref<18x32x96xf32, #tpu.memory_space<vmem>>, vector<1x16x96xf32>
    %586 = vector.shape_cast %585 : vector<1x16x96xf32> to vector<16x96xf32>
    %587 = vector.broadcast %40 : vector<1x96xf32> to vector<16x96xf32>
    %588 = arith.mulf %586, %587 : vector<16x96xf32>
    %589 = arith.addf %581, %588 : vector<16x96xf32>
    %c1_i32_311 = arith.constant 1 : i32
    %590 = arith.muli %c6_i32, %c1_i32_311 : i32
    %c2_i32_312 = arith.constant 2 : i32
    %591 = arith.addi %590, %c2_i32_312 : i32
    %592 = arith.index_cast %591 : i32 to index
    %c1_313 = arith.constant 1 : index
    %c0_314 = arith.constant 0 : index
    %593 = vector.load %arg10[%592, %c1_313, %c0_314] : memref<18x32x96xf32, #tpu.memory_space<vmem>>, vector<1x16x96xf32>
    %594 = vector.shape_cast %593 : vector<1x16x96xf32> to vector<16x96xf32>
    %595 = vector.broadcast %42 : vector<1x96xf32> to vector<16x96xf32>
    %596 = arith.mulf %594, %595 : vector<16x96xf32>
    %597 = arith.addf %589, %596 : vector<16x96xf32>
    %c1_i32_315 = arith.constant 1 : i32
    %598 = arith.muli %c6_i32, %c1_i32_315 : i32
    %c2_i32_316 = arith.constant 2 : i32
    %599 = arith.addi %598, %c2_i32_316 : i32
    %600 = arith.index_cast %599 : i32 to index
    %c2_317 = arith.constant 2 : index
    %c0_318 = arith.constant 0 : index
    %601 = vector.load %arg10[%600, %c2_317, %c0_318] : memref<18x32x96xf32, #tpu.memory_space<vmem>>, vector<1x16x96xf32>
    %602 = vector.shape_cast %601 : vector<1x16x96xf32> to vector<16x96xf32>
    %603 = vector.broadcast %44 : vector<1x96xf32> to vector<16x96xf32>
    %604 = arith.mulf %602, %603 : vector<16x96xf32>
    %605 = arith.addf %597, %604 : vector<16x96xf32>
    %cst_319 = arith.constant 0.000000e+00 : f32
    %cst_320 = arith.constant 6.000000e+00 : f32
    %606 = vector.broadcast %cst_319 : f32 to vector<16x96xf32>
    %607 = arith.maximumf %606, %605 : vector<16x96xf32>
    %608 = vector.broadcast %cst_320 : f32 to vector<16x96xf32>
    %609 = arith.minimumf %608, %607 : vector<16x96xf32>
    %610 = arith.truncf %609 : vector<16x96xf32> to vector<16x96xbf16>
    %611 = arith.index_cast %c6_i32 : i32 to index
    %c0_321 = arith.constant 0 : index
    %c0_322 = arith.constant 0 : index
    %612 = vector.load %arg11[%611, %c0_321, %c0_322] : memref<16x16x96xbf16, #tpu.memory_space<vmem>>, vector<1x16x96xbf16>
    %613 = vector.shape_cast %612 : vector<1x16x96xbf16> to vector<16x96xbf16>
    %614 = vector.shape_cast %610 : vector<16x96xbf16> to vector<1x16x96xbf16>
    tpu.vector_store %arg11[%611, %c0_321, %c0_322], %614 {strides = array<i32>} : memref<16x16x96xbf16, #tpu.memory_space<vmem>>, vector<1x16x96xbf16>,
    %c7_i32 = arith.constant 7 : i32
    %c1_i32_323 = arith.constant 1 : i32
    %615 = arith.muli %c7_i32, %c1_i32_323 : i32
    %c0_i32_324 = arith.constant 0 : i32
    %616 = arith.addi %615, %c0_i32_324 : i32
    %617 = arith.index_cast %616 : i32 to index
    %c0_325 = arith.constant 0 : index
    %c0_326 = arith.constant 0 : index
    %618 = vector.load %arg10[%617, %c0_325, %c0_326] : memref<18x32x96xf32, #tpu.memory_space<vmem>>, vector<1x16x96xf32>
    %619 = vector.shape_cast %618 : vector<1x16x96xf32> to vector<16x96xf32>
    %620 = vector.broadcast %28 : vector<1x96xf32> to vector<16x96xf32>
    %621 = arith.mulf %619, %620 : vector<16x96xf32>
    %622 = arith.addf %47, %621 : vector<16x96xf32>
    %c1_i32_327 = arith.constant 1 : i32
    %623 = arith.muli %c7_i32, %c1_i32_327 : i32
    %c0_i32_328 = arith.constant 0 : i32
    %624 = arith.addi %623, %c0_i32_328 : i32
    %625 = arith.index_cast %624 : i32 to index
    %c1_329 = arith.constant 1 : index
    %c0_330 = arith.constant 0 : index
    %626 = vector.load %arg10[%625, %c1_329, %c0_330] : memref<18x32x96xf32, #tpu.memory_space<vmem>>, vector<1x16x96xf32>
    %627 = vector.shape_cast %626 : vector<1x16x96xf32> to vector<16x96xf32>
    %628 = vector.broadcast %30 : vector<1x96xf32> to vector<16x96xf32>
    %629 = arith.mulf %627, %628 : vector<16x96xf32>
    %630 = arith.addf %622, %629 : vector<16x96xf32>
    %c1_i32_331 = arith.constant 1 : i32
    %631 = arith.muli %c7_i32, %c1_i32_331 : i32
    %c0_i32_332 = arith.constant 0 : i32
    %632 = arith.addi %631, %c0_i32_332 : i32
    %633 = arith.index_cast %632 : i32 to index
    %c2_333 = arith.constant 2 : index
    %c0_334 = arith.constant 0 : index
    %634 = vector.load %arg10[%633, %c2_333, %c0_334] : memref<18x32x96xf32, #tpu.memory_space<vmem>>, vector<1x16x96xf32>
    %635 = vector.shape_cast %634 : vector<1x16x96xf32> to vector<16x96xf32>
    %636 = vector.broadcast %32 : vector<1x96xf32> to vector<16x96xf32>
    %637 = arith.mulf %635, %636 : vector<16x96xf32>
    %638 = arith.addf %630, %637 : vector<16x96xf32>
    %c1_i32_335 = arith.constant 1 : i32
    %639 = arith.muli %c7_i32, %c1_i32_335 : i32
    %c1_i32_336 = arith.constant 1 : i32
    %640 = arith.addi %639, %c1_i32_336 : i32
    %641 = arith.index_cast %640 : i32 to index
    %c0_337 = arith.constant 0 : index
    %c0_338 = arith.constant 0 : index
    %642 = vector.load %arg10[%641, %c0_337, %c0_338] : memref<18x32x96xf32, #tpu.memory_space<vmem>>, vector<1x16x96xf32>
    %643 = vector.shape_cast %642 : vector<1x16x96xf32> to vector<16x96xf32>
    %644 = vector.broadcast %34 : vector<1x96xf32> to vector<16x96xf32>
    %645 = arith.mulf %643, %644 : vector<16x96xf32>
    %646 = arith.addf %638, %645 : vector<16x96xf32>
    %c1_i32_339 = arith.constant 1 : i32
    %647 = arith.muli %c7_i32, %c1_i32_339 : i32
    %c1_i32_340 = arith.constant 1 : i32
    %648 = arith.addi %647, %c1_i32_340 : i32
    %649 = arith.index_cast %648 : i32 to index
    %c1_341 = arith.constant 1 : index
    %c0_342 = arith.constant 0 : index
    %650 = vector.load %arg10[%649, %c1_341, %c0_342] : memref<18x32x96xf32, #tpu.memory_space<vmem>>, vector<1x16x96xf32>
    %651 = vector.shape_cast %650 : vector<1x16x96xf32> to vector<16x96xf32>
    %652 = vector.broadcast %36 : vector<1x96xf32> to vector<16x96xf32>
    %653 = arith.mulf %651, %652 : vector<16x96xf32>
    %654 = arith.addf %646, %653 : vector<16x96xf32>
    %c1_i32_343 = arith.constant 1 : i32
    %655 = arith.muli %c7_i32, %c1_i32_343 : i32
    %c1_i32_344 = arith.constant 1 : i32
    %656 = arith.addi %655, %c1_i32_344 : i32
    %657 = arith.index_cast %656 : i32 to index
    %c2_345 = arith.constant 2 : index
    %c0_346 = arith.constant 0 : index
    %658 = vector.load %arg10[%657, %c2_345, %c0_346] : memref<18x32x96xf32, #tpu.memory_space<vmem>>, vector<1x16x96xf32>
    %659 = vector.shape_cast %658 : vector<1x16x96xf32> to vector<16x96xf32>
    %660 = vector.broadcast %38 : vector<1x96xf32> to vector<16x96xf32>
    %661 = arith.mulf %659, %660 : vector<16x96xf32>
    %662 = arith.addf %654, %661 : vector<16x96xf32>
    %c1_i32_347 = arith.constant 1 : i32
    %663 = arith.muli %c7_i32, %c1_i32_347 : i32
    %c2_i32_348 = arith.constant 2 : i32
    %664 = arith.addi %663, %c2_i32_348 : i32
    %665 = arith.index_cast %664 : i32 to index
    %c0_349 = arith.constant 0 : index
    %c0_350 = arith.constant 0 : index
    %666 = vector.load %arg10[%665, %c0_349, %c0_350] : memref<18x32x96xf32, #tpu.memory_space<vmem>>, vector<1x16x96xf32>
    %667 = vector.shape_cast %666 : vector<1x16x96xf32> to vector<16x96xf32>
    %668 = vector.broadcast %40 : vector<1x96xf32> to vector<16x96xf32>
    %669 = arith.mulf %667, %668 : vector<16x96xf32>
    %670 = arith.addf %662, %669 : vector<16x96xf32>
    %c1_i32_351 = arith.constant 1 : i32
    %671 = arith.muli %c7_i32, %c1_i32_351 : i32
    %c2_i32_352 = arith.constant 2 : i32
    %672 = arith.addi %671, %c2_i32_352 : i32
    %673 = arith.index_cast %672 : i32 to index
    %c1_353 = arith.constant 1 : index
    %c0_354 = arith.constant 0 : index
    %674 = vector.load %arg10[%673, %c1_353, %c0_354] : memref<18x32x96xf32, #tpu.memory_space<vmem>>, vector<1x16x96xf32>
    %675 = vector.shape_cast %674 : vector<1x16x96xf32> to vector<16x96xf32>
    %676 = vector.broadcast %42 : vector<1x96xf32> to vector<16x96xf32>
    %677 = arith.mulf %675, %676 : vector<16x96xf32>
    %678 = arith.addf %670, %677 : vector<16x96xf32>
    %c1_i32_355 = arith.constant 1 : i32
    %679 = arith.muli %c7_i32, %c1_i32_355 : i32
    %c2_i32_356 = arith.constant 2 : i32
    %680 = arith.addi %679, %c2_i32_356 : i32
    %681 = arith.index_cast %680 : i32 to index
    %c2_357 = arith.constant 2 : index
    %c0_358 = arith.constant 0 : index
    %682 = vector.load %arg10[%681, %c2_357, %c0_358] : memref<18x32x96xf32, #tpu.memory_space<vmem>>, vector<1x16x96xf32>
    %683 = vector.shape_cast %682 : vector<1x16x96xf32> to vector<16x96xf32>
    %684 = vector.broadcast %44 : vector<1x96xf32> to vector<16x96xf32>
    %685 = arith.mulf %683, %684 : vector<16x96xf32>
    %686 = arith.addf %678, %685 : vector<16x96xf32>
    %cst_359 = arith.constant 0.000000e+00 : f32
    %cst_360 = arith.constant 6.000000e+00 : f32
    %687 = vector.broadcast %cst_359 : f32 to vector<16x96xf32>
    %688 = arith.maximumf %687, %686 : vector<16x96xf32>
    %689 = vector.broadcast %cst_360 : f32 to vector<16x96xf32>
    %690 = arith.minimumf %689, %688 : vector<16x96xf32>
    %691 = arith.truncf %690 : vector<16x96xf32> to vector<16x96xbf16>
    %692 = arith.index_cast %c7_i32 : i32 to index
    %c0_361 = arith.constant 0 : index
    %c0_362 = arith.constant 0 : index
    %693 = vector.load %arg11[%692, %c0_361, %c0_362] : memref<16x16x96xbf16, #tpu.memory_space<vmem>>, vector<1x16x96xbf16>
    %694 = vector.shape_cast %693 : vector<1x16x96xbf16> to vector<16x96xbf16>
    %695 = vector.shape_cast %691 : vector<16x96xbf16> to vector<1x16x96xbf16>
    tpu.vector_store %arg11[%692, %c0_361, %c0_362], %695 {strides = array<i32>} : memref<16x16x96xbf16, #tpu.memory_space<vmem>>, vector<1x16x96xbf16>,
    %c8_i32 = arith.constant 8 : i32
    %c1_i32_363 = arith.constant 1 : i32
    %696 = arith.muli %c8_i32, %c1_i32_363 : i32
    %c0_i32_364 = arith.constant 0 : i32
    %697 = arith.addi %696, %c0_i32_364 : i32
    %698 = arith.index_cast %697 : i32 to index
    %c0_365 = arith.constant 0 : index
    %c0_366 = arith.constant 0 : index
    %699 = vector.load %arg10[%698, %c0_365, %c0_366] : memref<18x32x96xf32, #tpu.memory_space<vmem>>, vector<1x16x96xf32>
    %700 = vector.shape_cast %699 : vector<1x16x96xf32> to vector<16x96xf32>
    %701 = vector.broadcast %28 : vector<1x96xf32> to vector<16x96xf32>
    %702 = arith.mulf %700, %701 : vector<16x96xf32>
    %703 = arith.addf %47, %702 : vector<16x96xf32>
    %c1_i32_367 = arith.constant 1 : i32
    %704 = arith.muli %c8_i32, %c1_i32_367 : i32
    %c0_i32_368 = arith.constant 0 : i32
    %705 = arith.addi %704, %c0_i32_368 : i32
    %706 = arith.index_cast %705 : i32 to index
    %c1_369 = arith.constant 1 : index
    %c0_370 = arith.constant 0 : index
    %707 = vector.load %arg10[%706, %c1_369, %c0_370] : memref<18x32x96xf32, #tpu.memory_space<vmem>>, vector<1x16x96xf32>
    %708 = vector.shape_cast %707 : vector<1x16x96xf32> to vector<16x96xf32>
    %709 = vector.broadcast %30 : vector<1x96xf32> to vector<16x96xf32>
    %710 = arith.mulf %708, %709 : vector<16x96xf32>
    %711 = arith.addf %703, %710 : vector<16x96xf32>
    %c1_i32_371 = arith.constant 1 : i32
    %712 = arith.muli %c8_i32, %c1_i32_371 : i32
    %c0_i32_372 = arith.constant 0 : i32
    %713 = arith.addi %712, %c0_i32_372 : i32
    %714 = arith.index_cast %713 : i32 to index
    %c2_373 = arith.constant 2 : index
    %c0_374 = arith.constant 0 : index
    %715 = vector.load %arg10[%714, %c2_373, %c0_374] : memref<18x32x96xf32, #tpu.memory_space<vmem>>, vector<1x16x96xf32>
    %716 = vector.shape_cast %715 : vector<1x16x96xf32> to vector<16x96xf32>
    %717 = vector.broadcast %32 : vector<1x96xf32> to vector<16x96xf32>
    %718 = arith.mulf %716, %717 : vector<16x96xf32>
    %719 = arith.addf %711, %718 : vector<16x96xf32>
    %c1_i32_375 = arith.constant 1 : i32
    %720 = arith.muli %c8_i32, %c1_i32_375 : i32
    %c1_i32_376 = arith.constant 1 : i32
    %721 = arith.addi %720, %c1_i32_376 : i32
    %722 = arith.index_cast %721 : i32 to index
    %c0_377 = arith.constant 0 : index
    %c0_378 = arith.constant 0 : index
    %723 = vector.load %arg10[%722, %c0_377, %c0_378] : memref<18x32x96xf32, #tpu.memory_space<vmem>>, vector<1x16x96xf32>
    %724 = vector.shape_cast %723 : vector<1x16x96xf32> to vector<16x96xf32>
    %725 = vector.broadcast %34 : vector<1x96xf32> to vector<16x96xf32>
    %726 = arith.mulf %724, %725 : vector<16x96xf32>
    %727 = arith.addf %719, %726 : vector<16x96xf32>
    %c1_i32_379 = arith.constant 1 : i32
    %728 = arith.muli %c8_i32, %c1_i32_379 : i32
    %c1_i32_380 = arith.constant 1 : i32
    %729 = arith.addi %728, %c1_i32_380 : i32
    %730 = arith.index_cast %729 : i32 to index
    %c1_381 = arith.constant 1 : index
    %c0_382 = arith.constant 0 : index
    %731 = vector.load %arg10[%730, %c1_381, %c0_382] : memref<18x32x96xf32, #tpu.memory_space<vmem>>, vector<1x16x96xf32>
    %732 = vector.shape_cast %731 : vector<1x16x96xf32> to vector<16x96xf32>
    %733 = vector.broadcast %36 : vector<1x96xf32> to vector<16x96xf32>
    %734 = arith.mulf %732, %733 : vector<16x96xf32>
    %735 = arith.addf %727, %734 : vector<16x96xf32>
    %c1_i32_383 = arith.constant 1 : i32
    %736 = arith.muli %c8_i32, %c1_i32_383 : i32
    %c1_i32_384 = arith.constant 1 : i32
    %737 = arith.addi %736, %c1_i32_384 : i32
    %738 = arith.index_cast %737 : i32 to index
    %c2_385 = arith.constant 2 : index
    %c0_386 = arith.constant 0 : index
    %739 = vector.load %arg10[%738, %c2_385, %c0_386] : memref<18x32x96xf32, #tpu.memory_space<vmem>>, vector<1x16x96xf32>
    %740 = vector.shape_cast %739 : vector<1x16x96xf32> to vector<16x96xf32>
    %741 = vector.broadcast %38 : vector<1x96xf32> to vector<16x96xf32>
    %742 = arith.mulf %740, %741 : vector<16x96xf32>
    %743 = arith.addf %735, %742 : vector<16x96xf32>
    %c1_i32_387 = arith.constant 1 : i32
    %744 = arith.muli %c8_i32, %c1_i32_387 : i32
    %c2_i32_388 = arith.constant 2 : i32
    %745 = arith.addi %744, %c2_i32_388 : i32
    %746 = arith.index_cast %745 : i32 to index
    %c0_389 = arith.constant 0 : index
    %c0_390 = arith.constant 0 : index
    %747 = vector.load %arg10[%746, %c0_389, %c0_390] : memref<18x32x96xf32, #tpu.memory_space<vmem>>, vector<1x16x96xf32>
    %748 = vector.shape_cast %747 : vector<1x16x96xf32> to vector<16x96xf32>
    %749 = vector.broadcast %40 : vector<1x96xf32> to vector<16x96xf32>
    %750 = arith.mulf %748, %749 : vector<16x96xf32>
    %751 = arith.addf %743, %750 : vector<16x96xf32>
    %c1_i32_391 = arith.constant 1 : i32
    %752 = arith.muli %c8_i32, %c1_i32_391 : i32
    %c2_i32_392 = arith.constant 2 : i32
    %753 = arith.addi %752, %c2_i32_392 : i32
    %754 = arith.index_cast %753 : i32 to index
    %c1_393 = arith.constant 1 : index
    %c0_394 = arith.constant 0 : index
    %755 = vector.load %arg10[%754, %c1_393, %c0_394] : memref<18x32x96xf32, #tpu.memory_space<vmem>>, vector<1x16x96xf32>
    %756 = vector.shape_cast %755 : vector<1x16x96xf32> to vector<16x96xf32>
    %757 = vector.broadcast %42 : vector<1x96xf32> to vector<16x96xf32>
    %758 = arith.mulf %756, %757 : vector<16x96xf32>
    %759 = arith.addf %751, %758 : vector<16x96xf32>
    %c1_i32_395 = arith.constant 1 : i32
    %760 = arith.muli %c8_i32, %c1_i32_395 : i32
    %c2_i32_396 = arith.constant 2 : i32
    %761 = arith.addi %760, %c2_i32_396 : i32
    %762 = arith.index_cast %761 : i32 to index
    %c2_397 = arith.constant 2 : index
    %c0_398 = arith.constant 0 : index
    %763 = vector.load %arg10[%762, %c2_397, %c0_398] : memref<18x32x96xf32, #tpu.memory_space<vmem>>, vector<1x16x96xf32>
    %764 = vector.shape_cast %763 : vector<1x16x96xf32> to vector<16x96xf32>
    %765 = vector.broadcast %44 : vector<1x96xf32> to vector<16x96xf32>
    %766 = arith.mulf %764, %765 : vector<16x96xf32>
    %767 = arith.addf %759, %766 : vector<16x96xf32>
    %cst_399 = arith.constant 0.000000e+00 : f32
    %cst_400 = arith.constant 6.000000e+00 : f32
    %768 = vector.broadcast %cst_399 : f32 to vector<16x96xf32>
    %769 = arith.maximumf %768, %767 : vector<16x96xf32>
    %770 = vector.broadcast %cst_400 : f32 to vector<16x96xf32>
    %771 = arith.minimumf %770, %769 : vector<16x96xf32>
    %772 = arith.truncf %771 : vector<16x96xf32> to vector<16x96xbf16>
    %773 = arith.index_cast %c8_i32 : i32 to index
    %c0_401 = arith.constant 0 : index
    %c0_402 = arith.constant 0 : index
    %774 = vector.load %arg11[%773, %c0_401, %c0_402] : memref<16x16x96xbf16, #tpu.memory_space<vmem>>, vector<1x16x96xbf16>
    %775 = vector.shape_cast %774 : vector<1x16x96xbf16> to vector<16x96xbf16>
    %776 = vector.shape_cast %772 : vector<16x96xbf16> to vector<1x16x96xbf16>
    tpu.vector_store %arg11[%773, %c0_401, %c0_402], %776 {strides = array<i32>} : memref<16x16x96xbf16, #tpu.memory_space<vmem>>, vector<1x16x96xbf16>,
    %c9_i32 = arith.constant 9 : i32
    %c1_i32_403 = arith.constant 1 : i32
    %777 = arith.muli %c9_i32, %c1_i32_403 : i32
    %c0_i32_404 = arith.constant 0 : i32
    %778 = arith.addi %777, %c0_i32_404 : i32
    %779 = arith.index_cast %778 : i32 to index
    %c0_405 = arith.constant 0 : index
    %c0_406 = arith.constant 0 : index
    %780 = vector.load %arg10[%779, %c0_405, %c0_406] : memref<18x32x96xf32, #tpu.memory_space<vmem>>, vector<1x16x96xf32>
    %781 = vector.shape_cast %780 : vector<1x16x96xf32> to vector<16x96xf32>
    %782 = vector.broadcast %28 : vector<1x96xf32> to vector<16x96xf32>
    %783 = arith.mulf %781, %782 : vector<16x96xf32>
    %784 = arith.addf %47, %783 : vector<16x96xf32>
    %c1_i32_407 = arith.constant 1 : i32
    %785 = arith.muli %c9_i32, %c1_i32_407 : i32
    %c0_i32_408 = arith.constant 0 : i32
    %786 = arith.addi %785, %c0_i32_408 : i32
    %787 = arith.index_cast %786 : i32 to index
    %c1_409 = arith.constant 1 : index
    %c0_410 = arith.constant 0 : index
    %788 = vector.load %arg10[%787, %c1_409, %c0_410] : memref<18x32x96xf32, #tpu.memory_space<vmem>>, vector<1x16x96xf32>
    %789 = vector.shape_cast %788 : vector<1x16x96xf32> to vector<16x96xf32>
    %790 = vector.broadcast %30 : vector<1x96xf32> to vector<16x96xf32>
    %791 = arith.mulf %789, %790 : vector<16x96xf32>
    %792 = arith.addf %784, %791 : vector<16x96xf32>
    %c1_i32_411 = arith.constant 1 : i32
    %793 = arith.muli %c9_i32, %c1_i32_411 : i32
    %c0_i32_412 = arith.constant 0 : i32
    %794 = arith.addi %793, %c0_i32_412 : i32
    %795 = arith.index_cast %794 : i32 to index
    %c2_413 = arith.constant 2 : index
    %c0_414 = arith.constant 0 : index
    %796 = vector.load %arg10[%795, %c2_413, %c0_414] : memref<18x32x96xf32, #tpu.memory_space<vmem>>, vector<1x16x96xf32>
    %797 = vector.shape_cast %796 : vector<1x16x96xf32> to vector<16x96xf32>
    %798 = vector.broadcast %32 : vector<1x96xf32> to vector<16x96xf32>
    %799 = arith.mulf %797, %798 : vector<16x96xf32>
    %800 = arith.addf %792, %799 : vector<16x96xf32>
    %c1_i32_415 = arith.constant 1 : i32
    %801 = arith.muli %c9_i32, %c1_i32_415 : i32
    %c1_i32_416 = arith.constant 1 : i32
    %802 = arith.addi %801, %c1_i32_416 : i32
    %803 = arith.index_cast %802 : i32 to index
    %c0_417 = arith.constant 0 : index
    %c0_418 = arith.constant 0 : index
    %804 = vector.load %arg10[%803, %c0_417, %c0_418] : memref<18x32x96xf32, #tpu.memory_space<vmem>>, vector<1x16x96xf32>
    %805 = vector.shape_cast %804 : vector<1x16x96xf32> to vector<16x96xf32>
    %806 = vector.broadcast %34 : vector<1x96xf32> to vector<16x96xf32>
    %807 = arith.mulf %805, %806 : vector<16x96xf32>
    %808 = arith.addf %800, %807 : vector<16x96xf32>
    %c1_i32_419 = arith.constant 1 : i32
    %809 = arith.muli %c9_i32, %c1_i32_419 : i32
    %c1_i32_420 = arith.constant 1 : i32
    %810 = arith.addi %809, %c1_i32_420 : i32
    %811 = arith.index_cast %810 : i32 to index
    %c1_421 = arith.constant 1 : index
    %c0_422 = arith.constant 0 : index
    %812 = vector.load %arg10[%811, %c1_421, %c0_422] : memref<18x32x96xf32, #tpu.memory_space<vmem>>, vector<1x16x96xf32>
    %813 = vector.shape_cast %812 : vector<1x16x96xf32> to vector<16x96xf32>
    %814 = vector.broadcast %36 : vector<1x96xf32> to vector<16x96xf32>
    %815 = arith.mulf %813, %814 : vector<16x96xf32>
    %816 = arith.addf %808, %815 : vector<16x96xf32>
    %c1_i32_423 = arith.constant 1 : i32
    %817 = arith.muli %c9_i32, %c1_i32_423 : i32
    %c1_i32_424 = arith.constant 1 : i32
    %818 = arith.addi %817, %c1_i32_424 : i32
    %819 = arith.index_cast %818 : i32 to index
    %c2_425 = arith.constant 2 : index
    %c0_426 = arith.constant 0 : index
    %820 = vector.load %arg10[%819, %c2_425, %c0_426] : memref<18x32x96xf32, #tpu.memory_space<vmem>>, vector<1x16x96xf32>
    %821 = vector.shape_cast %820 : vector<1x16x96xf32> to vector<16x96xf32>
    %822 = vector.broadcast %38 : vector<1x96xf32> to vector<16x96xf32>
    %823 = arith.mulf %821, %822 : vector<16x96xf32>
    %824 = arith.addf %816, %823 : vector<16x96xf32>
    %c1_i32_427 = arith.constant 1 : i32
    %825 = arith.muli %c9_i32, %c1_i32_427 : i32
    %c2_i32_428 = arith.constant 2 : i32
    %826 = arith.addi %825, %c2_i32_428 : i32
    %827 = arith.index_cast %826 : i32 to index
    %c0_429 = arith.constant 0 : index
    %c0_430 = arith.constant 0 : index
    %828 = vector.load %arg10[%827, %c0_429, %c0_430] : memref<18x32x96xf32, #tpu.memory_space<vmem>>, vector<1x16x96xf32>
    %829 = vector.shape_cast %828 : vector<1x16x96xf32> to vector<16x96xf32>
    %830 = vector.broadcast %40 : vector<1x96xf32> to vector<16x96xf32>
    %831 = arith.mulf %829, %830 : vector<16x96xf32>
    %832 = arith.addf %824, %831 : vector<16x96xf32>
    %c1_i32_431 = arith.constant 1 : i32
    %833 = arith.muli %c9_i32, %c1_i32_431 : i32
    %c2_i32_432 = arith.constant 2 : i32
    %834 = arith.addi %833, %c2_i32_432 : i32
    %835 = arith.index_cast %834 : i32 to index
    %c1_433 = arith.constant 1 : index
    %c0_434 = arith.constant 0 : index
    %836 = vector.load %arg10[%835, %c1_433, %c0_434] : memref<18x32x96xf32, #tpu.memory_space<vmem>>, vector<1x16x96xf32>
    %837 = vector.shape_cast %836 : vector<1x16x96xf32> to vector<16x96xf32>
    %838 = vector.broadcast %42 : vector<1x96xf32> to vector<16x96xf32>
    %839 = arith.mulf %837, %838 : vector<16x96xf32>
    %840 = arith.addf %832, %839 : vector<16x96xf32>
    %c1_i32_435 = arith.constant 1 : i32
    %841 = arith.muli %c9_i32, %c1_i32_435 : i32
    %c2_i32_436 = arith.constant 2 : i32
    %842 = arith.addi %841, %c2_i32_436 : i32
    %843 = arith.index_cast %842 : i32 to index
    %c2_437 = arith.constant 2 : index
    %c0_438 = arith.constant 0 : index
    %844 = vector.load %arg10[%843, %c2_437, %c0_438] : memref<18x32x96xf32, #tpu.memory_space<vmem>>, vector<1x16x96xf32>
    %845 = vector.shape_cast %844 : vector<1x16x96xf32> to vector<16x96xf32>
    %846 = vector.broadcast %44 : vector<1x96xf32> to vector<16x96xf32>
    %847 = arith.mulf %845, %846 : vector<16x96xf32>
    %848 = arith.addf %840, %847 : vector<16x96xf32>
    %cst_439 = arith.constant 0.000000e+00 : f32
    %cst_440 = arith.constant 6.000000e+00 : f32
    %849 = vector.broadcast %cst_439 : f32 to vector<16x96xf32>
    %850 = arith.maximumf %849, %848 : vector<16x96xf32>
    %851 = vector.broadcast %cst_440 : f32 to vector<16x96xf32>
    %852 = arith.minimumf %851, %850 : vector<16x96xf32>
    %853 = arith.truncf %852 : vector<16x96xf32> to vector<16x96xbf16>
    %854 = arith.index_cast %c9_i32 : i32 to index
    %c0_441 = arith.constant 0 : index
    %c0_442 = arith.constant 0 : index
    %855 = vector.load %arg11[%854, %c0_441, %c0_442] : memref<16x16x96xbf16, #tpu.memory_space<vmem>>, vector<1x16x96xbf16>
    %856 = vector.shape_cast %855 : vector<1x16x96xbf16> to vector<16x96xbf16>
    %857 = vector.shape_cast %853 : vector<16x96xbf16> to vector<1x16x96xbf16>
    tpu.vector_store %arg11[%854, %c0_441, %c0_442], %857 {strides = array<i32>} : memref<16x16x96xbf16, #tpu.memory_space<vmem>>, vector<1x16x96xbf16>,
    %c10_i32 = arith.constant 10 : i32
    %c1_i32_443 = arith.constant 1 : i32
    %858 = arith.muli %c10_i32, %c1_i32_443 : i32
    %c0_i32_444 = arith.constant 0 : i32
    %859 = arith.addi %858, %c0_i32_444 : i32
    %860 = arith.index_cast %859 : i32 to index
    %c0_445 = arith.constant 0 : index
    %c0_446 = arith.constant 0 : index
    %861 = vector.load %arg10[%860, %c0_445, %c0_446] : memref<18x32x96xf32, #tpu.memory_space<vmem>>, vector<1x16x96xf32>
    %862 = vector.shape_cast %861 : vector<1x16x96xf32> to vector<16x96xf32>
    %863 = vector.broadcast %28 : vector<1x96xf32> to vector<16x96xf32>
    %864 = arith.mulf %862, %863 : vector<16x96xf32>
    %865 = arith.addf %47, %864 : vector<16x96xf32>
    %c1_i32_447 = arith.constant 1 : i32
    %866 = arith.muli %c10_i32, %c1_i32_447 : i32
    %c0_i32_448 = arith.constant 0 : i32
    %867 = arith.addi %866, %c0_i32_448 : i32
    %868 = arith.index_cast %867 : i32 to index
    %c1_449 = arith.constant 1 : index
    %c0_450 = arith.constant 0 : index
    %869 = vector.load %arg10[%868, %c1_449, %c0_450] : memref<18x32x96xf32, #tpu.memory_space<vmem>>, vector<1x16x96xf32>
    %870 = vector.shape_cast %869 : vector<1x16x96xf32> to vector<16x96xf32>
    %871 = vector.broadcast %30 : vector<1x96xf32> to vector<16x96xf32>
    %872 = arith.mulf %870, %871 : vector<16x96xf32>
    %873 = arith.addf %865, %872 : vector<16x96xf32>
    %c1_i32_451 = arith.constant 1 : i32
    %874 = arith.muli %c10_i32, %c1_i32_451 : i32
    %c0_i32_452 = arith.constant 0 : i32
    %875 = arith.addi %874, %c0_i32_452 : i32
    %876 = arith.index_cast %875 : i32 to index
    %c2_453 = arith.constant 2 : index
    %c0_454 = arith.constant 0 : index
    %877 = vector.load %arg10[%876, %c2_453, %c0_454] : memref<18x32x96xf32, #tpu.memory_space<vmem>>, vector<1x16x96xf32>
    %878 = vector.shape_cast %877 : vector<1x16x96xf32> to vector<16x96xf32>
    %879 = vector.broadcast %32 : vector<1x96xf32> to vector<16x96xf32>
    %880 = arith.mulf %878, %879 : vector<16x96xf32>
    %881 = arith.addf %873, %880 : vector<16x96xf32>
    %c1_i32_455 = arith.constant 1 : i32
    %882 = arith.muli %c10_i32, %c1_i32_455 : i32
    %c1_i32_456 = arith.constant 1 : i32
    %883 = arith.addi %882, %c1_i32_456 : i32
    %884 = arith.index_cast %883 : i32 to index
    %c0_457 = arith.constant 0 : index
    %c0_458 = arith.constant 0 : index
    %885 = vector.load %arg10[%884, %c0_457, %c0_458] : memref<18x32x96xf32, #tpu.memory_space<vmem>>, vector<1x16x96xf32>
    %886 = vector.shape_cast %885 : vector<1x16x96xf32> to vector<16x96xf32>
    %887 = vector.broadcast %34 : vector<1x96xf32> to vector<16x96xf32>
    %888 = arith.mulf %886, %887 : vector<16x96xf32>
    %889 = arith.addf %881, %888 : vector<16x96xf32>
    %c1_i32_459 = arith.constant 1 : i32
    %890 = arith.muli %c10_i32, %c1_i32_459 : i32
    %c1_i32_460 = arith.constant 1 : i32
    %891 = arith.addi %890, %c1_i32_460 : i32
    %892 = arith.index_cast %891 : i32 to index
    %c1_461 = arith.constant 1 : index
    %c0_462 = arith.constant 0 : index
    %893 = vector.load %arg10[%892, %c1_461, %c0_462] : memref<18x32x96xf32, #tpu.memory_space<vmem>>, vector<1x16x96xf32>
    %894 = vector.shape_cast %893 : vector<1x16x96xf32> to vector<16x96xf32>
    %895 = vector.broadcast %36 : vector<1x96xf32> to vector<16x96xf32>
    %896 = arith.mulf %894, %895 : vector<16x96xf32>
    %897 = arith.addf %889, %896 : vector<16x96xf32>
    %c1_i32_463 = arith.constant 1 : i32
    %898 = arith.muli %c10_i32, %c1_i32_463 : i32
    %c1_i32_464 = arith.constant 1 : i32
    %899 = arith.addi %898, %c1_i32_464 : i32
    %900 = arith.index_cast %899 : i32 to index
    %c2_465 = arith.constant 2 : index
    %c0_466 = arith.constant 0 : index
    %901 = vector.load %arg10[%900, %c2_465, %c0_466] : memref<18x32x96xf32, #tpu.memory_space<vmem>>, vector<1x16x96xf32>
    %902 = vector.shape_cast %901 : vector<1x16x96xf32> to vector<16x96xf32>
    %903 = vector.broadcast %38 : vector<1x96xf32> to vector<16x96xf32>
    %904 = arith.mulf %902, %903 : vector<16x96xf32>
    %905 = arith.addf %897, %904 : vector<16x96xf32>
    %c1_i32_467 = arith.constant 1 : i32
    %906 = arith.muli %c10_i32, %c1_i32_467 : i32
    %c2_i32_468 = arith.constant 2 : i32
    %907 = arith.addi %906, %c2_i32_468 : i32
    %908 = arith.index_cast %907 : i32 to index
    %c0_469 = arith.constant 0 : index
    %c0_470 = arith.constant 0 : index
    %909 = vector.load %arg10[%908, %c0_469, %c0_470] : memref<18x32x96xf32, #tpu.memory_space<vmem>>, vector<1x16x96xf32>
    %910 = vector.shape_cast %909 : vector<1x16x96xf32> to vector<16x96xf32>
    %911 = vector.broadcast %40 : vector<1x96xf32> to vector<16x96xf32>
    %912 = arith.mulf %910, %911 : vector<16x96xf32>
    %913 = arith.addf %905, %912 : vector<16x96xf32>
    %c1_i32_471 = arith.constant 1 : i32
    %914 = arith.muli %c10_i32, %c1_i32_471 : i32
    %c2_i32_472 = arith.constant 2 : i32
    %915 = arith.addi %914, %c2_i32_472 : i32
    %916 = arith.index_cast %915 : i32 to index
    %c1_473 = arith.constant 1 : index
    %c0_474 = arith.constant 0 : index
    %917 = vector.load %arg10[%916, %c1_473, %c0_474] : memref<18x32x96xf32, #tpu.memory_space<vmem>>, vector<1x16x96xf32>
    %918 = vector.shape_cast %917 : vector<1x16x96xf32> to vector<16x96xf32>
    %919 = vector.broadcast %42 : vector<1x96xf32> to vector<16x96xf32>
    %920 = arith.mulf %918, %919 : vector<16x96xf32>
    %921 = arith.addf %913, %920 : vector<16x96xf32>
    %c1_i32_475 = arith.constant 1 : i32
    %922 = arith.muli %c10_i32, %c1_i32_475 : i32
    %c2_i32_476 = arith.constant 2 : i32
    %923 = arith.addi %922, %c2_i32_476 : i32
    %924 = arith.index_cast %923 : i32 to index
    %c2_477 = arith.constant 2 : index
    %c0_478 = arith.constant 0 : index
    %925 = vector.load %arg10[%924, %c2_477, %c0_478] : memref<18x32x96xf32, #tpu.memory_space<vmem>>, vector<1x16x96xf32>
    %926 = vector.shape_cast %925 : vector<1x16x96xf32> to vector<16x96xf32>
    %927 = vector.broadcast %44 : vector<1x96xf32> to vector<16x96xf32>
    %928 = arith.mulf %926, %927 : vector<16x96xf32>
    %929 = arith.addf %921, %928 : vector<16x96xf32>
    %cst_479 = arith.constant 0.000000e+00 : f32
    %cst_480 = arith.constant 6.000000e+00 : f32
    %930 = vector.broadcast %cst_479 : f32 to vector<16x96xf32>
    %931 = arith.maximumf %930, %929 : vector<16x96xf32>
    %932 = vector.broadcast %cst_480 : f32 to vector<16x96xf32>
    %933 = arith.minimumf %932, %931 : vector<16x96xf32>
    %934 = arith.truncf %933 : vector<16x96xf32> to vector<16x96xbf16>
    %935 = arith.index_cast %c10_i32 : i32 to index
    %c0_481 = arith.constant 0 : index
    %c0_482 = arith.constant 0 : index
    %936 = vector.load %arg11[%935, %c0_481, %c0_482] : memref<16x16x96xbf16, #tpu.memory_space<vmem>>, vector<1x16x96xbf16>
    %937 = vector.shape_cast %936 : vector<1x16x96xbf16> to vector<16x96xbf16>
    %938 = vector.shape_cast %934 : vector<16x96xbf16> to vector<1x16x96xbf16>
    tpu.vector_store %arg11[%935, %c0_481, %c0_482], %938 {strides = array<i32>} : memref<16x16x96xbf16, #tpu.memory_space<vmem>>, vector<1x16x96xbf16>,
    %c11_i32 = arith.constant 11 : i32
    %c1_i32_483 = arith.constant 1 : i32
    %939 = arith.muli %c11_i32, %c1_i32_483 : i32
    %c0_i32_484 = arith.constant 0 : i32
    %940 = arith.addi %939, %c0_i32_484 : i32
    %941 = arith.index_cast %940 : i32 to index
    %c0_485 = arith.constant 0 : index
    %c0_486 = arith.constant 0 : index
    %942 = vector.load %arg10[%941, %c0_485, %c0_486] : memref<18x32x96xf32, #tpu.memory_space<vmem>>, vector<1x16x96xf32>
    %943 = vector.shape_cast %942 : vector<1x16x96xf32> to vector<16x96xf32>
    %944 = vector.broadcast %28 : vector<1x96xf32> to vector<16x96xf32>
    %945 = arith.mulf %943, %944 : vector<16x96xf32>
    %946 = arith.addf %47, %945 : vector<16x96xf32>
    %c1_i32_487 = arith.constant 1 : i32
    %947 = arith.muli %c11_i32, %c1_i32_487 : i32
    %c0_i32_488 = arith.constant 0 : i32
    %948 = arith.addi %947, %c0_i32_488 : i32
    %949 = arith.index_cast %948 : i32 to index
    %c1_489 = arith.constant 1 : index
    %c0_490 = arith.constant 0 : index
    %950 = vector.load %arg10[%949, %c1_489, %c0_490] : memref<18x32x96xf32, #tpu.memory_space<vmem>>, vector<1x16x96xf32>
    %951 = vector.shape_cast %950 : vector<1x16x96xf32> to vector<16x96xf32>
    %952 = vector.broadcast %30 : vector<1x96xf32> to vector<16x96xf32>
    %953 = arith.mulf %951, %952 : vector<16x96xf32>
    %954 = arith.addf %946, %953 : vector<16x96xf32>
    %c1_i32_491 = arith.constant 1 : i32
    %955 = arith.muli %c11_i32, %c1_i32_491 : i32
    %c0_i32_492 = arith.constant 0 : i32
    %956 = arith.addi %955, %c0_i32_492 : i32
    %957 = arith.index_cast %956 : i32 to index
    %c2_493 = arith.constant 2 : index
    %c0_494 = arith.constant 0 : index
    %958 = vector.load %arg10[%957, %c2_493, %c0_494] : memref<18x32x96xf32, #tpu.memory_space<vmem>>, vector<1x16x96xf32>
    %959 = vector.shape_cast %958 : vector<1x16x96xf32> to vector<16x96xf32>
    %960 = vector.broadcast %32 : vector<1x96xf32> to vector<16x96xf32>
    %961 = arith.mulf %959, %960 : vector<16x96xf32>
    %962 = arith.addf %954, %961 : vector<16x96xf32>
    %c1_i32_495 = arith.constant 1 : i32
    %963 = arith.muli %c11_i32, %c1_i32_495 : i32
    %c1_i32_496 = arith.constant 1 : i32
    %964 = arith.addi %963, %c1_i32_496 : i32
    %965 = arith.index_cast %964 : i32 to index
    %c0_497 = arith.constant 0 : index
    %c0_498 = arith.constant 0 : index
    %966 = vector.load %arg10[%965, %c0_497, %c0_498] : memref<18x32x96xf32, #tpu.memory_space<vmem>>, vector<1x16x96xf32>
    %967 = vector.shape_cast %966 : vector<1x16x96xf32> to vector<16x96xf32>
    %968 = vector.broadcast %34 : vector<1x96xf32> to vector<16x96xf32>
    %969 = arith.mulf %967, %968 : vector<16x96xf32>
    %970 = arith.addf %962, %969 : vector<16x96xf32>
    %c1_i32_499 = arith.constant 1 : i32
    %971 = arith.muli %c11_i32, %c1_i32_499 : i32
    %c1_i32_500 = arith.constant 1 : i32
    %972 = arith.addi %971, %c1_i32_500 : i32
    %973 = arith.index_cast %972 : i32 to index
    %c1_501 = arith.constant 1 : index
    %c0_502 = arith.constant 0 : index
    %974 = vector.load %arg10[%973, %c1_501, %c0_502] : memref<18x32x96xf32, #tpu.memory_space<vmem>>, vector<1x16x96xf32>
    %975 = vector.shape_cast %974 : vector<1x16x96xf32> to vector<16x96xf32>
    %976 = vector.broadcast %36 : vector<1x96xf32> to vector<16x96xf32>
    %977 = arith.mulf %975, %976 : vector<16x96xf32>
    %978 = arith.addf %970, %977 : vector<16x96xf32>
    %c1_i32_503 = arith.constant 1 : i32
    %979 = arith.muli %c11_i32, %c1_i32_503 : i32
    %c1_i32_504 = arith.constant 1 : i32
    %980 = arith.addi %979, %c1_i32_504 : i32
    %981 = arith.index_cast %980 : i32 to index
    %c2_505 = arith.constant 2 : index
    %c0_506 = arith.constant 0 : index
    %982 = vector.load %arg10[%981, %c2_505, %c0_506] : memref<18x32x96xf32, #tpu.memory_space<vmem>>, vector<1x16x96xf32>
    %983 = vector.shape_cast %982 : vector<1x16x96xf32> to vector<16x96xf32>
    %984 = vector.broadcast %38 : vector<1x96xf32> to vector<16x96xf32>
    %985 = arith.mulf %983, %984 : vector<16x96xf32>
    %986 = arith.addf %978, %985 : vector<16x96xf32>
    %c1_i32_507 = arith.constant 1 : i32
    %987 = arith.muli %c11_i32, %c1_i32_507 : i32
    %c2_i32_508 = arith.constant 2 : i32
    %988 = arith.addi %987, %c2_i32_508 : i32
    %989 = arith.index_cast %988 : i32 to index
    %c0_509 = arith.constant 0 : index
    %c0_510 = arith.constant 0 : index
    %990 = vector.load %arg10[%989, %c0_509, %c0_510] : memref<18x32x96xf32, #tpu.memory_space<vmem>>, vector<1x16x96xf32>
    %991 = vector.shape_cast %990 : vector<1x16x96xf32> to vector<16x96xf32>
    %992 = vector.broadcast %40 : vector<1x96xf32> to vector<16x96xf32>
    %993 = arith.mulf %991, %992 : vector<16x96xf32>
    %994 = arith.addf %986, %993 : vector<16x96xf32>
    %c1_i32_511 = arith.constant 1 : i32
    %995 = arith.muli %c11_i32, %c1_i32_511 : i32
    %c2_i32_512 = arith.constant 2 : i32
    %996 = arith.addi %995, %c2_i32_512 : i32
    %997 = arith.index_cast %996 : i32 to index
    %c1_513 = arith.constant 1 : index
    %c0_514 = arith.constant 0 : index
    %998 = vector.load %arg10[%997, %c1_513, %c0_514] : memref<18x32x96xf32, #tpu.memory_space<vmem>>, vector<1x16x96xf32>
    %999 = vector.shape_cast %998 : vector<1x16x96xf32> to vector<16x96xf32>
    %1000 = vector.broadcast %42 : vector<1x96xf32> to vector<16x96xf32>
    %1001 = arith.mulf %999, %1000 : vector<16x96xf32>
    %1002 = arith.addf %994, %1001 : vector<16x96xf32>
    %c1_i32_515 = arith.constant 1 : i32
    %1003 = arith.muli %c11_i32, %c1_i32_515 : i32
    %c2_i32_516 = arith.constant 2 : i32
    %1004 = arith.addi %1003, %c2_i32_516 : i32
    %1005 = arith.index_cast %1004 : i32 to index
    %c2_517 = arith.constant 2 : index
    %c0_518 = arith.constant 0 : index
    %1006 = vector.load %arg10[%1005, %c2_517, %c0_518] : memref<18x32x96xf32, #tpu.memory_space<vmem>>, vector<1x16x96xf32>
    %1007 = vector.shape_cast %1006 : vector<1x16x96xf32> to vector<16x96xf32>
    %1008 = vector.broadcast %44 : vector<1x96xf32> to vector<16x96xf32>
    %1009 = arith.mulf %1007, %1008 : vector<16x96xf32>
    %1010 = arith.addf %1002, %1009 : vector<16x96xf32>
    %cst_519 = arith.constant 0.000000e+00 : f32
    %cst_520 = arith.constant 6.000000e+00 : f32
    %1011 = vector.broadcast %cst_519 : f32 to vector<16x96xf32>
    %1012 = arith.maximumf %1011, %1010 : vector<16x96xf32>
    %1013 = vector.broadcast %cst_520 : f32 to vector<16x96xf32>
    %1014 = arith.minimumf %1013, %1012 : vector<16x96xf32>
    %1015 = arith.truncf %1014 : vector<16x96xf32> to vector<16x96xbf16>
    %1016 = arith.index_cast %c11_i32 : i32 to index
    %c0_521 = arith.constant 0 : index
    %c0_522 = arith.constant 0 : index
    %1017 = vector.load %arg11[%1016, %c0_521, %c0_522] : memref<16x16x96xbf16, #tpu.memory_space<vmem>>, vector<1x16x96xbf16>
    %1018 = vector.shape_cast %1017 : vector<1x16x96xbf16> to vector<16x96xbf16>
    %1019 = vector.shape_cast %1015 : vector<16x96xbf16> to vector<1x16x96xbf16>
    tpu.vector_store %arg11[%1016, %c0_521, %c0_522], %1019 {strides = array<i32>} : memref<16x16x96xbf16, #tpu.memory_space<vmem>>, vector<1x16x96xbf16>,
    %c12_i32 = arith.constant 12 : i32
    %c1_i32_523 = arith.constant 1 : i32
    %1020 = arith.muli %c12_i32, %c1_i32_523 : i32
    %c0_i32_524 = arith.constant 0 : i32
    %1021 = arith.addi %1020, %c0_i32_524 : i32
    %1022 = arith.index_cast %1021 : i32 to index
    %c0_525 = arith.constant 0 : index
    %c0_526 = arith.constant 0 : index
    %1023 = vector.load %arg10[%1022, %c0_525, %c0_526] : memref<18x32x96xf32, #tpu.memory_space<vmem>>, vector<1x16x96xf32>
    %1024 = vector.shape_cast %1023 : vector<1x16x96xf32> to vector<16x96xf32>
    %1025 = vector.broadcast %28 : vector<1x96xf32> to vector<16x96xf32>
    %1026 = arith.mulf %1024, %1025 : vector<16x96xf32>
    %1027 = arith.addf %47, %1026 : vector<16x96xf32>
    %c1_i32_527 = arith.constant 1 : i32
    %1028 = arith.muli %c12_i32, %c1_i32_527 : i32
    %c0_i32_528 = arith.constant 0 : i32
    %1029 = arith.addi %1028, %c0_i32_528 : i32
    %1030 = arith.index_cast %1029 : i32 to index
    %c1_529 = arith.constant 1 : index
    %c0_530 = arith.constant 0 : index
    %1031 = vector.load %arg10[%1030, %c1_529, %c0_530] : memref<18x32x96xf32, #tpu.memory_space<vmem>>, vector<1x16x96xf32>
    %1032 = vector.shape_cast %1031 : vector<1x16x96xf32> to vector<16x96xf32>
    %1033 = vector.broadcast %30 : vector<1x96xf32> to vector<16x96xf32>
    %1034 = arith.mulf %1032, %1033 : vector<16x96xf32>
    %1035 = arith.addf %1027, %1034 : vector<16x96xf32>
    %c1_i32_531 = arith.constant 1 : i32
    %1036 = arith.muli %c12_i32, %c1_i32_531 : i32
    %c0_i32_532 = arith.constant 0 : i32
    %1037 = arith.addi %1036, %c0_i32_532 : i32
    %1038 = arith.index_cast %1037 : i32 to index
    %c2_533 = arith.constant 2 : index
    %c0_534 = arith.constant 0 : index
    %1039 = vector.load %arg10[%1038, %c2_533, %c0_534] : memref<18x32x96xf32, #tpu.memory_space<vmem>>, vector<1x16x96xf32>
    %1040 = vector.shape_cast %1039 : vector<1x16x96xf32> to vector<16x96xf32>
    %1041 = vector.broadcast %32 : vector<1x96xf32> to vector<16x96xf32>
    %1042 = arith.mulf %1040, %1041 : vector<16x96xf32>
    %1043 = arith.addf %1035, %1042 : vector<16x96xf32>
    %c1_i32_535 = arith.constant 1 : i32
    %1044 = arith.muli %c12_i32, %c1_i32_535 : i32
    %c1_i32_536 = arith.constant 1 : i32
    %1045 = arith.addi %1044, %c1_i32_536 : i32
    %1046 = arith.index_cast %1045 : i32 to index
    %c0_537 = arith.constant 0 : index
    %c0_538 = arith.constant 0 : index
    %1047 = vector.load %arg10[%1046, %c0_537, %c0_538] : memref<18x32x96xf32, #tpu.memory_space<vmem>>, vector<1x16x96xf32>
    %1048 = vector.shape_cast %1047 : vector<1x16x96xf32> to vector<16x96xf32>
    %1049 = vector.broadcast %34 : vector<1x96xf32> to vector<16x96xf32>
    %1050 = arith.mulf %1048, %1049 : vector<16x96xf32>
    %1051 = arith.addf %1043, %1050 : vector<16x96xf32>
    %c1_i32_539 = arith.constant 1 : i32
    %1052 = arith.muli %c12_i32, %c1_i32_539 : i32
    %c1_i32_540 = arith.constant 1 : i32
    %1053 = arith.addi %1052, %c1_i32_540 : i32
    %1054 = arith.index_cast %1053 : i32 to index
    %c1_541 = arith.constant 1 : index
    %c0_542 = arith.constant 0 : index
    %1055 = vector.load %arg10[%1054, %c1_541, %c0_542] : memref<18x32x96xf32, #tpu.memory_space<vmem>>, vector<1x16x96xf32>
    %1056 = vector.shape_cast %1055 : vector<1x16x96xf32> to vector<16x96xf32>
    %1057 = vector.broadcast %36 : vector<1x96xf32> to vector<16x96xf32>
    %1058 = arith.mulf %1056, %1057 : vector<16x96xf32>
    %1059 = arith.addf %1051, %1058 : vector<16x96xf32>
    %c1_i32_543 = arith.constant 1 : i32
    %1060 = arith.muli %c12_i32, %c1_i32_543 : i32
    %c1_i32_544 = arith.constant 1 : i32
    %1061 = arith.addi %1060, %c1_i32_544 : i32
    %1062 = arith.index_cast %1061 : i32 to index
    %c2_545 = arith.constant 2 : index
    %c0_546 = arith.constant 0 : index
    %1063 = vector.load %arg10[%1062, %c2_545, %c0_546] : memref<18x32x96xf32, #tpu.memory_space<vmem>>, vector<1x16x96xf32>
    %1064 = vector.shape_cast %1063 : vector<1x16x96xf32> to vector<16x96xf32>
    %1065 = vector.broadcast %38 : vector<1x96xf32> to vector<16x96xf32>
    %1066 = arith.mulf %1064, %1065 : vector<16x96xf32>
    %1067 = arith.addf %1059, %1066 : vector<16x96xf32>
    %c1_i32_547 = arith.constant 1 : i32
    %1068 = arith.muli %c12_i32, %c1_i32_547 : i32
    %c2_i32_548 = arith.constant 2 : i32
    %1069 = arith.addi %1068, %c2_i32_548 : i32
    %1070 = arith.index_cast %1069 : i32 to index
    %c0_549 = arith.constant 0 : index
    %c0_550 = arith.constant 0 : index
    %1071 = vector.load %arg10[%1070, %c0_549, %c0_550] : memref<18x32x96xf32, #tpu.memory_space<vmem>>, vector<1x16x96xf32>
    %1072 = vector.shape_cast %1071 : vector<1x16x96xf32> to vector<16x96xf32>
    %1073 = vector.broadcast %40 : vector<1x96xf32> to vector<16x96xf32>
    %1074 = arith.mulf %1072, %1073 : vector<16x96xf32>
    %1075 = arith.addf %1067, %1074 : vector<16x96xf32>
    %c1_i32_551 = arith.constant 1 : i32
    %1076 = arith.muli %c12_i32, %c1_i32_551 : i32
    %c2_i32_552 = arith.constant 2 : i32
    %1077 = arith.addi %1076, %c2_i32_552 : i32
    %1078 = arith.index_cast %1077 : i32 to index
    %c1_553 = arith.constant 1 : index
    %c0_554 = arith.constant 0 : index
    %1079 = vector.load %arg10[%1078, %c1_553, %c0_554] : memref<18x32x96xf32, #tpu.memory_space<vmem>>, vector<1x16x96xf32>
    %1080 = vector.shape_cast %1079 : vector<1x16x96xf32> to vector<16x96xf32>
    %1081 = vector.broadcast %42 : vector<1x96xf32> to vector<16x96xf32>
    %1082 = arith.mulf %1080, %1081 : vector<16x96xf32>
    %1083 = arith.addf %1075, %1082 : vector<16x96xf32>
    %c1_i32_555 = arith.constant 1 : i32
    %1084 = arith.muli %c12_i32, %c1_i32_555 : i32
    %c2_i32_556 = arith.constant 2 : i32
    %1085 = arith.addi %1084, %c2_i32_556 : i32
    %1086 = arith.index_cast %1085 : i32 to index
    %c2_557 = arith.constant 2 : index
    %c0_558 = arith.constant 0 : index
    %1087 = vector.load %arg10[%1086, %c2_557, %c0_558] : memref<18x32x96xf32, #tpu.memory_space<vmem>>, vector<1x16x96xf32>
    %1088 = vector.shape_cast %1087 : vector<1x16x96xf32> to vector<16x96xf32>
    %1089 = vector.broadcast %44 : vector<1x96xf32> to vector<16x96xf32>
    %1090 = arith.mulf %1088, %1089 : vector<16x96xf32>
    %1091 = arith.addf %1083, %1090 : vector<16x96xf32>
    %cst_559 = arith.constant 0.000000e+00 : f32
    %cst_560 = arith.constant 6.000000e+00 : f32
    %1092 = vector.broadcast %cst_559 : f32 to vector<16x96xf32>
    %1093 = arith.maximumf %1092, %1091 : vector<16x96xf32>
    %1094 = vector.broadcast %cst_560 : f32 to vector<16x96xf32>
    %1095 = arith.minimumf %1094, %1093 : vector<16x96xf32>
    %1096 = arith.truncf %1095 : vector<16x96xf32> to vector<16x96xbf16>
    %1097 = arith.index_cast %c12_i32 : i32 to index
    %c0_561 = arith.constant 0 : index
    %c0_562 = arith.constant 0 : index
    %1098 = vector.load %arg11[%1097, %c0_561, %c0_562] : memref<16x16x96xbf16, #tpu.memory_space<vmem>>, vector<1x16x96xbf16>
    %1099 = vector.shape_cast %1098 : vector<1x16x96xbf16> to vector<16x96xbf16>
    %1100 = vector.shape_cast %1096 : vector<16x96xbf16> to vector<1x16x96xbf16>
    tpu.vector_store %arg11[%1097, %c0_561, %c0_562], %1100 {strides = array<i32>} : memref<16x16x96xbf16, #tpu.memory_space<vmem>>, vector<1x16x96xbf16>,
    %c13_i32 = arith.constant 13 : i32
    %c1_i32_563 = arith.constant 1 : i32
    %1101 = arith.muli %c13_i32, %c1_i32_563 : i32
    %c0_i32_564 = arith.constant 0 : i32
    %1102 = arith.addi %1101, %c0_i32_564 : i32
    %1103 = arith.index_cast %1102 : i32 to index
    %c0_565 = arith.constant 0 : index
    %c0_566 = arith.constant 0 : index
    %1104 = vector.load %arg10[%1103, %c0_565, %c0_566] : memref<18x32x96xf32, #tpu.memory_space<vmem>>, vector<1x16x96xf32>
    %1105 = vector.shape_cast %1104 : vector<1x16x96xf32> to vector<16x96xf32>
    %1106 = vector.broadcast %28 : vector<1x96xf32> to vector<16x96xf32>
    %1107 = arith.mulf %1105, %1106 : vector<16x96xf32>
    %1108 = arith.addf %47, %1107 : vector<16x96xf32>
    %c1_i32_567 = arith.constant 1 : i32
    %1109 = arith.muli %c13_i32, %c1_i32_567 : i32
    %c0_i32_568 = arith.constant 0 : i32
    %1110 = arith.addi %1109, %c0_i32_568 : i32
    %1111 = arith.index_cast %1110 : i32 to index
    %c1_569 = arith.constant 1 : index
    %c0_570 = arith.constant 0 : index
    %1112 = vector.load %arg10[%1111, %c1_569, %c0_570] : memref<18x32x96xf32, #tpu.memory_space<vmem>>, vector<1x16x96xf32>
    %1113 = vector.shape_cast %1112 : vector<1x16x96xf32> to vector<16x96xf32>
    %1114 = vector.broadcast %30 : vector<1x96xf32> to vector<16x96xf32>
    %1115 = arith.mulf %1113, %1114 : vector<16x96xf32>
    %1116 = arith.addf %1108, %1115 : vector<16x96xf32>
    %c1_i32_571 = arith.constant 1 : i32
    %1117 = arith.muli %c13_i32, %c1_i32_571 : i32
    %c0_i32_572 = arith.constant 0 : i32
    %1118 = arith.addi %1117, %c0_i32_572 : i32
    %1119 = arith.index_cast %1118 : i32 to index
    %c2_573 = arith.constant 2 : index
    %c0_574 = arith.constant 0 : index
    %1120 = vector.load %arg10[%1119, %c2_573, %c0_574] : memref<18x32x96xf32, #tpu.memory_space<vmem>>, vector<1x16x96xf32>
    %1121 = vector.shape_cast %1120 : vector<1x16x96xf32> to vector<16x96xf32>
    %1122 = vector.broadcast %32 : vector<1x96xf32> to vector<16x96xf32>
    %1123 = arith.mulf %1121, %1122 : vector<16x96xf32>
    %1124 = arith.addf %1116, %1123 : vector<16x96xf32>
    %c1_i32_575 = arith.constant 1 : i32
    %1125 = arith.muli %c13_i32, %c1_i32_575 : i32
    %c1_i32_576 = arith.constant 1 : i32
    %1126 = arith.addi %1125, %c1_i32_576 : i32
    %1127 = arith.index_cast %1126 : i32 to index
    %c0_577 = arith.constant 0 : index
    %c0_578 = arith.constant 0 : index
    %1128 = vector.load %arg10[%1127, %c0_577, %c0_578] : memref<18x32x96xf32, #tpu.memory_space<vmem>>, vector<1x16x96xf32>
    %1129 = vector.shape_cast %1128 : vector<1x16x96xf32> to vector<16x96xf32>
    %1130 = vector.broadcast %34 : vector<1x96xf32> to vector<16x96xf32>
    %1131 = arith.mulf %1129, %1130 : vector<16x96xf32>
    %1132 = arith.addf %1124, %1131 : vector<16x96xf32>
    %c1_i32_579 = arith.constant 1 : i32
    %1133 = arith.muli %c13_i32, %c1_i32_579 : i32
    %c1_i32_580 = arith.constant 1 : i32
    %1134 = arith.addi %1133, %c1_i32_580 : i32
    %1135 = arith.index_cast %1134 : i32 to index
    %c1_581 = arith.constant 1 : index
    %c0_582 = arith.constant 0 : index
    %1136 = vector.load %arg10[%1135, %c1_581, %c0_582] : memref<18x32x96xf32, #tpu.memory_space<vmem>>, vector<1x16x96xf32>
    %1137 = vector.shape_cast %1136 : vector<1x16x96xf32> to vector<16x96xf32>
    %1138 = vector.broadcast %36 : vector<1x96xf32> to vector<16x96xf32>
    %1139 = arith.mulf %1137, %1138 : vector<16x96xf32>
    %1140 = arith.addf %1132, %1139 : vector<16x96xf32>
    %c1_i32_583 = arith.constant 1 : i32
    %1141 = arith.muli %c13_i32, %c1_i32_583 : i32
    %c1_i32_584 = arith.constant 1 : i32
    %1142 = arith.addi %1141, %c1_i32_584 : i32
    %1143 = arith.index_cast %1142 : i32 to index
    %c2_585 = arith.constant 2 : index
    %c0_586 = arith.constant 0 : index
    %1144 = vector.load %arg10[%1143, %c2_585, %c0_586] : memref<18x32x96xf32, #tpu.memory_space<vmem>>, vector<1x16x96xf32>
    %1145 = vector.shape_cast %1144 : vector<1x16x96xf32> to vector<16x96xf32>
    %1146 = vector.broadcast %38 : vector<1x96xf32> to vector<16x96xf32>
    %1147 = arith.mulf %1145, %1146 : vector<16x96xf32>
    %1148 = arith.addf %1140, %1147 : vector<16x96xf32>
    %c1_i32_587 = arith.constant 1 : i32
    %1149 = arith.muli %c13_i32, %c1_i32_587 : i32
    %c2_i32_588 = arith.constant 2 : i32
    %1150 = arith.addi %1149, %c2_i32_588 : i32
    %1151 = arith.index_cast %1150 : i32 to index
    %c0_589 = arith.constant 0 : index
    %c0_590 = arith.constant 0 : index
    %1152 = vector.load %arg10[%1151, %c0_589, %c0_590] : memref<18x32x96xf32, #tpu.memory_space<vmem>>, vector<1x16x96xf32>
    %1153 = vector.shape_cast %1152 : vector<1x16x96xf32> to vector<16x96xf32>
    %1154 = vector.broadcast %40 : vector<1x96xf32> to vector<16x96xf32>
    %1155 = arith.mulf %1153, %1154 : vector<16x96xf32>
    %1156 = arith.addf %1148, %1155 : vector<16x96xf32>
    %c1_i32_591 = arith.constant 1 : i32
    %1157 = arith.muli %c13_i32, %c1_i32_591 : i32
    %c2_i32_592 = arith.constant 2 : i32
    %1158 = arith.addi %1157, %c2_i32_592 : i32
    %1159 = arith.index_cast %1158 : i32 to index
    %c1_593 = arith.constant 1 : index
    %c0_594 = arith.constant 0 : index
    %1160 = vector.load %arg10[%1159, %c1_593, %c0_594] : memref<18x32x96xf32, #tpu.memory_space<vmem>>, vector<1x16x96xf32>
    %1161 = vector.shape_cast %1160 : vector<1x16x96xf32> to vector<16x96xf32>
    %1162 = vector.broadcast %42 : vector<1x96xf32> to vector<16x96xf32>
    %1163 = arith.mulf %1161, %1162 : vector<16x96xf32>
    %1164 = arith.addf %1156, %1163 : vector<16x96xf32>
    %c1_i32_595 = arith.constant 1 : i32
    %1165 = arith.muli %c13_i32, %c1_i32_595 : i32
    %c2_i32_596 = arith.constant 2 : i32
    %1166 = arith.addi %1165, %c2_i32_596 : i32
    %1167 = arith.index_cast %1166 : i32 to index
    %c2_597 = arith.constant 2 : index
    %c0_598 = arith.constant 0 : index
    %1168 = vector.load %arg10[%1167, %c2_597, %c0_598] : memref<18x32x96xf32, #tpu.memory_space<vmem>>, vector<1x16x96xf32>
    %1169 = vector.shape_cast %1168 : vector<1x16x96xf32> to vector<16x96xf32>
    %1170 = vector.broadcast %44 : vector<1x96xf32> to vector<16x96xf32>
    %1171 = arith.mulf %1169, %1170 : vector<16x96xf32>
    %1172 = arith.addf %1164, %1171 : vector<16x96xf32>
    %cst_599 = arith.constant 0.000000e+00 : f32
    %cst_600 = arith.constant 6.000000e+00 : f32
    %1173 = vector.broadcast %cst_599 : f32 to vector<16x96xf32>
    %1174 = arith.maximumf %1173, %1172 : vector<16x96xf32>
    %1175 = vector.broadcast %cst_600 : f32 to vector<16x96xf32>
    %1176 = arith.minimumf %1175, %1174 : vector<16x96xf32>
    %1177 = arith.truncf %1176 : vector<16x96xf32> to vector<16x96xbf16>
    %1178 = arith.index_cast %c13_i32 : i32 to index
    %c0_601 = arith.constant 0 : index
    %c0_602 = arith.constant 0 : index
    %1179 = vector.load %arg11[%1178, %c0_601, %c0_602] : memref<16x16x96xbf16, #tpu.memory_space<vmem>>, vector<1x16x96xbf16>
    %1180 = vector.shape_cast %1179 : vector<1x16x96xbf16> to vector<16x96xbf16>
    %1181 = vector.shape_cast %1177 : vector<16x96xbf16> to vector<1x16x96xbf16>
    tpu.vector_store %arg11[%1178, %c0_601, %c0_602], %1181 {strides = array<i32>} : memref<16x16x96xbf16, #tpu.memory_space<vmem>>, vector<1x16x96xbf16>,
    %c14_i32 = arith.constant 14 : i32
    %c1_i32_603 = arith.constant 1 : i32
    %1182 = arith.muli %c14_i32, %c1_i32_603 : i32
    %c0_i32_604 = arith.constant 0 : i32
    %1183 = arith.addi %1182, %c0_i32_604 : i32
    %1184 = arith.index_cast %1183 : i32 to index
    %c0_605 = arith.constant 0 : index
    %c0_606 = arith.constant 0 : index
    %1185 = vector.load %arg10[%1184, %c0_605, %c0_606] : memref<18x32x96xf32, #tpu.memory_space<vmem>>, vector<1x16x96xf32>
    %1186 = vector.shape_cast %1185 : vector<1x16x96xf32> to vector<16x96xf32>
    %1187 = vector.broadcast %28 : vector<1x96xf32> to vector<16x96xf32>
    %1188 = arith.mulf %1186, %1187 : vector<16x96xf32>
    %1189 = arith.addf %47, %1188 : vector<16x96xf32>
    %c1_i32_607 = arith.constant 1 : i32
    %1190 = arith.muli %c14_i32, %c1_i32_607 : i32
    %c0_i32_608 = arith.constant 0 : i32
    %1191 = arith.addi %1190, %c0_i32_608 : i32
    %1192 = arith.index_cast %1191 : i32 to index
    %c1_609 = arith.constant 1 : index
    %c0_610 = arith.constant 0 : index
    %1193 = vector.load %arg10[%1192, %c1_609, %c0_610] : memref<18x32x96xf32, #tpu.memory_space<vmem>>, vector<1x16x96xf32>
    %1194 = vector.shape_cast %1193 : vector<1x16x96xf32> to vector<16x96xf32>
    %1195 = vector.broadcast %30 : vector<1x96xf32> to vector<16x96xf32>
    %1196 = arith.mulf %1194, %1195 : vector<16x96xf32>
    %1197 = arith.addf %1189, %1196 : vector<16x96xf32>
    %c1_i32_611 = arith.constant 1 : i32
    %1198 = arith.muli %c14_i32, %c1_i32_611 : i32
    %c0_i32_612 = arith.constant 0 : i32
    %1199 = arith.addi %1198, %c0_i32_612 : i32
    %1200 = arith.index_cast %1199 : i32 to index
    %c2_613 = arith.constant 2 : index
    %c0_614 = arith.constant 0 : index
    %1201 = vector.load %arg10[%1200, %c2_613, %c0_614] : memref<18x32x96xf32, #tpu.memory_space<vmem>>, vector<1x16x96xf32>
    %1202 = vector.shape_cast %1201 : vector<1x16x96xf32> to vector<16x96xf32>
    %1203 = vector.broadcast %32 : vector<1x96xf32> to vector<16x96xf32>
    %1204 = arith.mulf %1202, %1203 : vector<16x96xf32>
    %1205 = arith.addf %1197, %1204 : vector<16x96xf32>
    %c1_i32_615 = arith.constant 1 : i32
    %1206 = arith.muli %c14_i32, %c1_i32_615 : i32
    %c1_i32_616 = arith.constant 1 : i32
    %1207 = arith.addi %1206, %c1_i32_616 : i32
    %1208 = arith.index_cast %1207 : i32 to index
    %c0_617 = arith.constant 0 : index
    %c0_618 = arith.constant 0 : index
    %1209 = vector.load %arg10[%1208, %c0_617, %c0_618] : memref<18x32x96xf32, #tpu.memory_space<vmem>>, vector<1x16x96xf32>
    %1210 = vector.shape_cast %1209 : vector<1x16x96xf32> to vector<16x96xf32>
    %1211 = vector.broadcast %34 : vector<1x96xf32> to vector<16x96xf32>
    %1212 = arith.mulf %1210, %1211 : vector<16x96xf32>
    %1213 = arith.addf %1205, %1212 : vector<16x96xf32>
    %c1_i32_619 = arith.constant 1 : i32
    %1214 = arith.muli %c14_i32, %c1_i32_619 : i32
    %c1_i32_620 = arith.constant 1 : i32
    %1215 = arith.addi %1214, %c1_i32_620 : i32
    %1216 = arith.index_cast %1215 : i32 to index
    %c1_621 = arith.constant 1 : index
    %c0_622 = arith.constant 0 : index
    %1217 = vector.load %arg10[%1216, %c1_621, %c0_622] : memref<18x32x96xf32, #tpu.memory_space<vmem>>, vector<1x16x96xf32>
    %1218 = vector.shape_cast %1217 : vector<1x16x96xf32> to vector<16x96xf32>
    %1219 = vector.broadcast %36 : vector<1x96xf32> to vector<16x96xf32>
    %1220 = arith.mulf %1218, %1219 : vector<16x96xf32>
    %1221 = arith.addf %1213, %1220 : vector<16x96xf32>
    %c1_i32_623 = arith.constant 1 : i32
    %1222 = arith.muli %c14_i32, %c1_i32_623 : i32
    %c1_i32_624 = arith.constant 1 : i32
    %1223 = arith.addi %1222, %c1_i32_624 : i32
    %1224 = arith.index_cast %1223 : i32 to index
    %c2_625 = arith.constant 2 : index
    %c0_626 = arith.constant 0 : index
    %1225 = vector.load %arg10[%1224, %c2_625, %c0_626] : memref<18x32x96xf32, #tpu.memory_space<vmem>>, vector<1x16x96xf32>
    %1226 = vector.shape_cast %1225 : vector<1x16x96xf32> to vector<16x96xf32>
    %1227 = vector.broadcast %38 : vector<1x96xf32> to vector<16x96xf32>
    %1228 = arith.mulf %1226, %1227 : vector<16x96xf32>
    %1229 = arith.addf %1221, %1228 : vector<16x96xf32>
    %c1_i32_627 = arith.constant 1 : i32
    %1230 = arith.muli %c14_i32, %c1_i32_627 : i32
    %c2_i32_628 = arith.constant 2 : i32
    %1231 = arith.addi %1230, %c2_i32_628 : i32
    %1232 = arith.index_cast %1231 : i32 to index
    %c0_629 = arith.constant 0 : index
    %c0_630 = arith.constant 0 : index
    %1233 = vector.load %arg10[%1232, %c0_629, %c0_630] : memref<18x32x96xf32, #tpu.memory_space<vmem>>, vector<1x16x96xf32>
    %1234 = vector.shape_cast %1233 : vector<1x16x96xf32> to vector<16x96xf32>
    %1235 = vector.broadcast %40 : vector<1x96xf32> to vector<16x96xf32>
    %1236 = arith.mulf %1234, %1235 : vector<16x96xf32>
    %1237 = arith.addf %1229, %1236 : vector<16x96xf32>
    %c1_i32_631 = arith.constant 1 : i32
    %1238 = arith.muli %c14_i32, %c1_i32_631 : i32
    %c2_i32_632 = arith.constant 2 : i32
    %1239 = arith.addi %1238, %c2_i32_632 : i32
    %1240 = arith.index_cast %1239 : i32 to index
    %c1_633 = arith.constant 1 : index
    %c0_634 = arith.constant 0 : index
    %1241 = vector.load %arg10[%1240, %c1_633, %c0_634] : memref<18x32x96xf32, #tpu.memory_space<vmem>>, vector<1x16x96xf32>
    %1242 = vector.shape_cast %1241 : vector<1x16x96xf32> to vector<16x96xf32>
    %1243 = vector.broadcast %42 : vector<1x96xf32> to vector<16x96xf32>
    %1244 = arith.mulf %1242, %1243 : vector<16x96xf32>
    %1245 = arith.addf %1237, %1244 : vector<16x96xf32>
    %c1_i32_635 = arith.constant 1 : i32
    %1246 = arith.muli %c14_i32, %c1_i32_635 : i32
    %c2_i32_636 = arith.constant 2 : i32
    %1247 = arith.addi %1246, %c2_i32_636 : i32
    %1248 = arith.index_cast %1247 : i32 to index
    %c2_637 = arith.constant 2 : index
    %c0_638 = arith.constant 0 : index
    %1249 = vector.load %arg10[%1248, %c2_637, %c0_638] : memref<18x32x96xf32, #tpu.memory_space<vmem>>, vector<1x16x96xf32>
    %1250 = vector.shape_cast %1249 : vector<1x16x96xf32> to vector<16x96xf32>
    %1251 = vector.broadcast %44 : vector<1x96xf32> to vector<16x96xf32>
    %1252 = arith.mulf %1250, %1251 : vector<16x96xf32>
    %1253 = arith.addf %1245, %1252 : vector<16x96xf32>
    %cst_639 = arith.constant 0.000000e+00 : f32
    %cst_640 = arith.constant 6.000000e+00 : f32
    %1254 = vector.broadcast %cst_639 : f32 to vector<16x96xf32>
    %1255 = arith.maximumf %1254, %1253 : vector<16x96xf32>
    %1256 = vector.broadcast %cst_640 : f32 to vector<16x96xf32>
    %1257 = arith.minimumf %1256, %1255 : vector<16x96xf32>
    %1258 = arith.truncf %1257 : vector<16x96xf32> to vector<16x96xbf16>
    %1259 = arith.index_cast %c14_i32 : i32 to index
    %c0_641 = arith.constant 0 : index
    %c0_642 = arith.constant 0 : index
    %1260 = vector.load %arg11[%1259, %c0_641, %c0_642] : memref<16x16x96xbf16, #tpu.memory_space<vmem>>, vector<1x16x96xbf16>
    %1261 = vector.shape_cast %1260 : vector<1x16x96xbf16> to vector<16x96xbf16>
    %1262 = vector.shape_cast %1258 : vector<16x96xbf16> to vector<1x16x96xbf16>
    tpu.vector_store %arg11[%1259, %c0_641, %c0_642], %1262 {strides = array<i32>} : memref<16x16x96xbf16, #tpu.memory_space<vmem>>, vector<1x16x96xbf16>,
    %c15_i32 = arith.constant 15 : i32
    %c1_i32_643 = arith.constant 1 : i32
    %1263 = arith.muli %c15_i32, %c1_i32_643 : i32
    %c0_i32_644 = arith.constant 0 : i32
    %1264 = arith.addi %1263, %c0_i32_644 : i32
    %1265 = arith.index_cast %1264 : i32 to index
    %c0_645 = arith.constant 0 : index
    %c0_646 = arith.constant 0 : index
    %1266 = vector.load %arg10[%1265, %c0_645, %c0_646] : memref<18x32x96xf32, #tpu.memory_space<vmem>>, vector<1x16x96xf32>
    %1267 = vector.shape_cast %1266 : vector<1x16x96xf32> to vector<16x96xf32>
    %1268 = vector.broadcast %28 : vector<1x96xf32> to vector<16x96xf32>
    %1269 = arith.mulf %1267, %1268 : vector<16x96xf32>
    %1270 = arith.addf %47, %1269 : vector<16x96xf32>
    %c1_i32_647 = arith.constant 1 : i32
    %1271 = arith.muli %c15_i32, %c1_i32_647 : i32
    %c0_i32_648 = arith.constant 0 : i32
    %1272 = arith.addi %1271, %c0_i32_648 : i32
    %1273 = arith.index_cast %1272 : i32 to index
    %c1_649 = arith.constant 1 : index
    %c0_650 = arith.constant 0 : index
    %1274 = vector.load %arg10[%1273, %c1_649, %c0_650] : memref<18x32x96xf32, #tpu.memory_space<vmem>>, vector<1x16x96xf32>
    %1275 = vector.shape_cast %1274 : vector<1x16x96xf32> to vector<16x96xf32>
    %1276 = vector.broadcast %30 : vector<1x96xf32> to vector<16x96xf32>
    %1277 = arith.mulf %1275, %1276 : vector<16x96xf32>
    %1278 = arith.addf %1270, %1277 : vector<16x96xf32>
    %c1_i32_651 = arith.constant 1 : i32
    %1279 = arith.muli %c15_i32, %c1_i32_651 : i32
    %c0_i32_652 = arith.constant 0 : i32
    %1280 = arith.addi %1279, %c0_i32_652 : i32
    %1281 = arith.index_cast %1280 : i32 to index
    %c2_653 = arith.constant 2 : index
    %c0_654 = arith.constant 0 : index
    %1282 = vector.load %arg10[%1281, %c2_653, %c0_654] : memref<18x32x96xf32, #tpu.memory_space<vmem>>, vector<1x16x96xf32>
    %1283 = vector.shape_cast %1282 : vector<1x16x96xf32> to vector<16x96xf32>
    %1284 = vector.broadcast %32 : vector<1x96xf32> to vector<16x96xf32>
    %1285 = arith.mulf %1283, %1284 : vector<16x96xf32>
    %1286 = arith.addf %1278, %1285 : vector<16x96xf32>
    %c1_i32_655 = arith.constant 1 : i32
    %1287 = arith.muli %c15_i32, %c1_i32_655 : i32
    %c1_i32_656 = arith.constant 1 : i32
    %1288 = arith.addi %1287, %c1_i32_656 : i32
    %1289 = arith.index_cast %1288 : i32 to index
    %c0_657 = arith.constant 0 : index
    %c0_658 = arith.constant 0 : index
    %1290 = vector.load %arg10[%1289, %c0_657, %c0_658] : memref<18x32x96xf32, #tpu.memory_space<vmem>>, vector<1x16x96xf32>
    %1291 = vector.shape_cast %1290 : vector<1x16x96xf32> to vector<16x96xf32>
    %1292 = vector.broadcast %34 : vector<1x96xf32> to vector<16x96xf32>
    %1293 = arith.mulf %1291, %1292 : vector<16x96xf32>
    %1294 = arith.addf %1286, %1293 : vector<16x96xf32>
    %c1_i32_659 = arith.constant 1 : i32
    %1295 = arith.muli %c15_i32, %c1_i32_659 : i32
    %c1_i32_660 = arith.constant 1 : i32
    %1296 = arith.addi %1295, %c1_i32_660 : i32
    %1297 = arith.index_cast %1296 : i32 to index
    %c1_661 = arith.constant 1 : index
    %c0_662 = arith.constant 0 : index
    %1298 = vector.load %arg10[%1297, %c1_661, %c0_662] : memref<18x32x96xf32, #tpu.memory_space<vmem>>, vector<1x16x96xf32>
    %1299 = vector.shape_cast %1298 : vector<1x16x96xf32> to vector<16x96xf32>
    %1300 = vector.broadcast %36 : vector<1x96xf32> to vector<16x96xf32>
    %1301 = arith.mulf %1299, %1300 : vector<16x96xf32>
    %1302 = arith.addf %1294, %1301 : vector<16x96xf32>
    %c1_i32_663 = arith.constant 1 : i32
    %1303 = arith.muli %c15_i32, %c1_i32_663 : i32
    %c1_i32_664 = arith.constant 1 : i32
    %1304 = arith.addi %1303, %c1_i32_664 : i32
    %1305 = arith.index_cast %1304 : i32 to index
    %c2_665 = arith.constant 2 : index
    %c0_666 = arith.constant 0 : index
    %1306 = vector.load %arg10[%1305, %c2_665, %c0_666] : memref<18x32x96xf32, #tpu.memory_space<vmem>>, vector<1x16x96xf32>
    %1307 = vector.shape_cast %1306 : vector<1x16x96xf32> to vector<16x96xf32>
    %1308 = vector.broadcast %38 : vector<1x96xf32> to vector<16x96xf32>
    %1309 = arith.mulf %1307, %1308 : vector<16x96xf32>
    %1310 = arith.addf %1302, %1309 : vector<16x96xf32>
    %c1_i32_667 = arith.constant 1 : i32
    %1311 = arith.muli %c15_i32, %c1_i32_667 : i32
    %c2_i32_668 = arith.constant 2 : i32
    %1312 = arith.addi %1311, %c2_i32_668 : i32
    %1313 = arith.index_cast %1312 : i32 to index
    %c0_669 = arith.constant 0 : index
    %c0_670 = arith.constant 0 : index
    %1314 = vector.load %arg10[%1313, %c0_669, %c0_670] : memref<18x32x96xf32, #tpu.memory_space<vmem>>, vector<1x16x96xf32>
    %1315 = vector.shape_cast %1314 : vector<1x16x96xf32> to vector<16x96xf32>
    %1316 = vector.broadcast %40 : vector<1x96xf32> to vector<16x96xf32>
    %1317 = arith.mulf %1315, %1316 : vector<16x96xf32>
    %1318 = arith.addf %1310, %1317 : vector<16x96xf32>
    %c1_i32_671 = arith.constant 1 : i32
    %1319 = arith.muli %c15_i32, %c1_i32_671 : i32
    %c2_i32_672 = arith.constant 2 : i32
    %1320 = arith.addi %1319, %c2_i32_672 : i32
    %1321 = arith.index_cast %1320 : i32 to index
    %c1_673 = arith.constant 1 : index
    %c0_674 = arith.constant 0 : index
    %1322 = vector.load %arg10[%1321, %c1_673, %c0_674] : memref<18x32x96xf32, #tpu.memory_space<vmem>>, vector<1x16x96xf32>
    %1323 = vector.shape_cast %1322 : vector<1x16x96xf32> to vector<16x96xf32>
    %1324 = vector.broadcast %42 : vector<1x96xf32> to vector<16x96xf32>
    %1325 = arith.mulf %1323, %1324 : vector<16x96xf32>
    %1326 = arith.addf %1318, %1325 : vector<16x96xf32>
    %c1_i32_675 = arith.constant 1 : i32
    %1327 = arith.muli %c15_i32, %c1_i32_675 : i32
    %c2_i32_676 = arith.constant 2 : i32
    %1328 = arith.addi %1327, %c2_i32_676 : i32
    %1329 = arith.index_cast %1328 : i32 to index
    %c2_677 = arith.constant 2 : index
    %c0_678 = arith.constant 0 : index
    %1330 = vector.load %arg10[%1329, %c2_677, %c0_678] : memref<18x32x96xf32, #tpu.memory_space<vmem>>, vector<1x16x96xf32>
    %1331 = vector.shape_cast %1330 : vector<1x16x96xf32> to vector<16x96xf32>
    %1332 = vector.broadcast %44 : vector<1x96xf32> to vector<16x96xf32>
    %1333 = arith.mulf %1331, %1332 : vector<16x96xf32>
    %1334 = arith.addf %1326, %1333 : vector<16x96xf32>
    %cst_679 = arith.constant 0.000000e+00 : f32
    %cst_680 = arith.constant 6.000000e+00 : f32
    %1335 = vector.broadcast %cst_679 : f32 to vector<16x96xf32>
    %1336 = arith.maximumf %1335, %1334 : vector<16x96xf32>
    %1337 = vector.broadcast %cst_680 : f32 to vector<16x96xf32>
    %1338 = arith.minimumf %1337, %1336 : vector<16x96xf32>
    %1339 = arith.truncf %1338 : vector<16x96xf32> to vector<16x96xbf16>
    %1340 = arith.index_cast %c15_i32 : i32 to index
    %c0_681 = arith.constant 0 : index
    %c0_682 = arith.constant 0 : index
    %1341 = vector.load %arg11[%1340, %c0_681, %c0_682] : memref<16x16x96xbf16, #tpu.memory_space<vmem>>, vector<1x16x96xbf16>
    %1342 = vector.shape_cast %1341 : vector<1x16x96xbf16> to vector<16x96xbf16>
    %1343 = vector.shape_cast %1339 : vector<16x96xbf16> to vector<1x16x96xbf16>
    tpu.vector_store %arg11[%1340, %c0_681, %c0_682], %1343 {strides = array<i32>} : memref<16x16x96xbf16, #tpu.memory_space<vmem>>, vector<1x16x96xbf16>,
    %c16_i32_683 = arith.constant 16 : i32
    %c0_684 = arith.constant 0 : index
    %c0_685 = arith.constant 0 : index
    %c0_686 = arith.constant 0 : index
    %1344 = vector.load %arg11[%c0_684, %c0_685, %c0_686] : memref<16x16x96xbf16, #tpu.memory_space<vmem>>, vector<16x16x96xbf16>
    %1345 = vector.shape_cast %1344 : vector<16x16x96xbf16> to vector<256x96xbf16>
    %c0_687 = arith.constant 0 : index
    %c0_688 = arith.constant 0 : index
    %1346 = vector.load %arg7[%c0_687, %c0_688] : memref<96x16xbf16, #tpu.memory_space<vmem>>, vector<96x16xbf16>
    %cst_689 = arith.constant dense<0.000000e+00> : vector<256x16xf32>
    %1347 = tpu.matmul %1345, %1346, %cst_689 {dimension_numbers = #tpu.dot_dimension_numbers<[1], [0], [0], [1], [0, 0, 1, 1], [], []>} : vector<256x96xbf16>, vector<96x16xbf16>, vector<256x16xf32> -> vector<256x16xf32>
    %c0_690 = arith.constant 0 : index
    %c0_691 = arith.constant 0 : index
    %1348 = vector.load %arg8[%c0_690, %c0_691] : memref<1x16xf32, #tpu.memory_space<vmem>>, vector<1x16xf32>
    %1349 = vector.broadcast %1348 : vector<1x16xf32> to vector<256x16xf32>
    %1350 = arith.addf %1347, %1349 : vector<256x16xf32>
    %1351 = vector.shape_cast %1350 : vector<256x16xf32> to vector<16x16x16xf32>
    %c1_i32_692 = arith.constant 1 : i32
    %1352 = arith.addi %1, %c1_i32_692 : i32
    %c0_693 = arith.constant 0 : index
    %1353 = arith.index_cast %1352 : i32 to index
    %c1_694 = arith.constant 1 : index
    %c0_695 = arith.constant 0 : index
    %1354 = vector.load %arg2[%c0_693, %1353, %c1_694, %c0_695] : memref<1x18x32x16xbf16, #tpu.memory_space<vmem>>, vector<1x16x16x16xbf16>
    %1355 = vector.shape_cast %1354 : vector<1x16x16x16xbf16> to vector<16x16x16xbf16>
    %1356 = arith.extf %1355 : vector<16x16x16xbf16> to vector<16x16x16xf32>
    %1357 = arith.addf %1351, %1356 : vector<16x16x16xf32>
    %c0_696 = arith.constant 0 : index
    %c0_697 = arith.constant 0 : index
    %c0_698 = arith.constant 0 : index
    %c0_699 = arith.constant 0 : index
    %1358 = vector.load %arg9[%c0_696, %c0_697, %c0_698, %c0_699] : memref<1x16x16x16xf32, #tpu.memory_space<vmem>>, vector<1x16x16x16xf32>
    %1359 = vector.shape_cast %1358 : vector<1x16x16x16xf32> to vector<16x16x16xf32>
    %1360 = vector.shape_cast %1357 : vector<16x16x16xf32> to vector<1x16x16x16xf32>
    tpu.vector_store %arg9[%c0_696, %c0_697, %c0_698, %c0_699], %1360 {strides = array<i32>} : memref<1x16x16x16xf32, #tpu.memory_space<vmem>>, vector<1x16x16x16xf32>,
    return
  }
  func.func @transform_0(%arg0: i32, %arg1: i32) -> (i32, i32, i32, i32) {
    %c0_i32 = arith.constant 0 : i32
    %c0_i32_0 = arith.constant 0 : i32
    %c0_i32_1 = arith.constant 0 : i32
    %c0_i32_2 = arith.constant 0 : i32
    return %arg0, %c0_i32, %c0_i32_0, %c0_i32_1 : i32, i32, i32, i32
  }
  func.func @transform_1(%arg0: i32, %arg1: i32) -> (i32, i32) {
    %c0_i32 = arith.constant 0 : i32
    %c0_i32_0 = arith.constant 0 : i32
    %c0_i32_1 = arith.constant 0 : i32
    return %c0_i32, %c0_i32_0 : i32, i32
  }
  func.func @transform_2(%arg0: i32, %arg1: i32) -> (i32, i32) {
    %c0_i32 = arith.constant 0 : i32
    %c0_i32_0 = arith.constant 0 : i32
    %c0_i32_1 = arith.constant 0 : i32
    return %c0_i32, %c0_i32_0 : i32, i32
  }
  func.func @transform_3(%arg0: i32, %arg1: i32) -> (i32, i32, i32) {
    %c0_i32 = arith.constant 0 : i32
    %c0_i32_0 = arith.constant 0 : i32
    %c0_i32_1 = arith.constant 0 : i32
    %c0_i32_2 = arith.constant 0 : i32
    return %c0_i32, %c0_i32_0, %c0_i32_1 : i32, i32, i32
  }
  func.func @transform_4(%arg0: i32, %arg1: i32) -> (i32, i32) {
    %c0_i32 = arith.constant 0 : i32
    %c0_i32_0 = arith.constant 0 : i32
    %c0_i32_1 = arith.constant 0 : i32
    return %c0_i32, %c0_i32_0 : i32, i32
  }
  func.func @transform_5(%arg0: i32, %arg1: i32) -> (i32, i32) {
    %c0_i32 = arith.constant 0 : i32
    %c0_i32_0 = arith.constant 0 : i32
    %c0_i32_1 = arith.constant 0 : i32
    return %c0_i32, %c0_i32_0 : i32, i32
  }
  func.func @transform_6(%arg0: i32, %arg1: i32) -> (i32, i32) {
    %c0_i32 = arith.constant 0 : i32
    %c0_i32_0 = arith.constant 0 : i32
    %c0_i32_1 = arith.constant 0 : i32
    return %c0_i32, %c0_i32_0 : i32, i32
  }
  func.func @transform_7(%arg0: i32, %arg1: i32) -> (i32, i32, i32, i32) {
    %c0_i32 = arith.constant 0 : i32
    %c0_i32_0 = arith.constant 0 : i32
    %c0_i32_1 = arith.constant 0 : i32
    return %arg0, %arg1, %c0_i32, %c0_i32_0 : i32, i32, i32, i32
  }
}

</mosaic_0001>

<bundles_post_ra>
// kernel: inverted_residual.1
= control target key start
LH: loop header
LB: loop body
LE: loop exit
PB: predicated region body
PF: predicated region fallthrough
CT: control target
= control target key end

     0   :  { %s3951_s24 = smov 0   ;;  %s3953_s25 = smov 0   ;;  %s5247_s0 = inlined_call_operand.vmem [shape: bf16[2,18,32,16], index: 0, kind: input, shape index: {}]   ;;  %s5248_s1 = inlined_call_operand.vmem [shape: bf16[16,96], index: 1, kind: input, shape index: {}]   ;;  %s5249_s2 = inlined_call_operand.vmem [shape: f32[1,96], index: 2, kind: input, shape index: {}]   ;;  %s5250_s3 = inlined_call_operand.vmem [shape: f32[9,1,96], index: 3, kind: input, shape index: {}]   ;;  %s5251_s4 = inlined_call_operand.vmem [shape: f32[1,96], index: 4, kind: input, shape index: {}]   ;;  %s5252_s5 = inlined_call_operand.vmem [shape: bf16[96,16], index: 5, kind: input, shape index: {}]   ;;  %s5253_s6 = inlined_call_operand.vmem [shape: f32[1,16], index: 6, kind: input, shape index: {}]   ;;  %s5254_s7 = inlined_call_operand.vmem [shape: f32[2,16,16,16], index: 7, kind: output, shape index: {}]  }
   0x1   :  { %s3955_s26 = smov 0  }
   0x2 LB: > { %s29_s27 = sadd.s32 1, %s3904_s25  ;;  %p3270_p0 = scmp.ge.s32.totalorder %s3908_s26, 1  ;;  %s3908_s26 = sphi %s3955_s26, %s17_s26   ;;  %s3904_s25 = sphi %s3953_s25, %s5279_s25   ;;  %s3900_s24 = sphi %s3951_s24, %s5278_s24  }
   0x3   : > { %p31_p1 = scmp.ge.s32.totalorder %s29_s27, 2  ;;  %p251_p2 = scmp.lt.s32.totalorder %s3908_s26, 3 }
   0x5   : > { %s5281_s27 = smov (%p31_p1, %s29_s27), 0  ;;  %p252_p3 = pnand %p3270_p0, %p251_p2 }
   0x7   : > { %255 = sbr.rel (%p252_p3) target bundleno = 677 (0x2a5), region = 48 }
   0xc   : > { %v3805_v0 = vld [vmem:[%s5248_s1] sm:$0xff]   ;;  %p288_p4 = scmp.lt.s32.totalorder %s3900_s24, 1  ;;  %vm576_vm0 = vcmask 130048   ;;  %v3842_v37 = vld [vmem:[%s5252_s5 + $0x28] sm:$0xff]   ;;  %v3844_v39 = vld [vmem:[%s5252_s5 + $0x18] sm:$0xff]   ;;  %vm1150_vm1 = vcmask 785408  }
   0xd   : > { %3659 = vmatprep.subr.bf16.mxu0 %v3805_v0  ;;  %3777 = vmatprep.subr.bf16.mxu1 %v3805_v0  ;;  %v3843_v38 = vld [vmem:[%s5252_s5 + $0x20] sm:$0xff]   ;;  %v3845_v40 = vld [vmem:[%s5252_s5 + $0x10] sm:$0xff]   ;;  %v3846_v41 = vld [vmem:[%s5252_s5 + $0x8] sm:$0xff]   ;;  %vm1223_vm2 = vcmask 778240   ;;  %v5255_v55 = vmov 0.0   ;;  %vm1419_vm3 = vcmask 781312  }
   0xe   : > { %s5283_s24 = smov (!%p288_p4, %s3900_s24), 1  ;;  %3660 = vmatpush3.bf16.msra.mxu0 %v3805_v0  ;;  %3778 = vmatpush3.bf16.msra.mxu1 %v3805_v0  ;;  %v3848_v42 = vld [vmem:[%s5252_s5] sm:$0xff]   ;;  %vm2996_vm4 = vcmask 1046528  }
   0xf   : > { %s3779_s30 = smul.u32 288, %s5283_s24  ;;  %3733 = vmatprep.subr.bf16.mxu1 %v3842_v37  ;;  %v4073_v43 = vld [vmem:[%s5249_s2] ss:$0 sm:$0xff]  ;;  %s3487_s19 = sshll.u32 %s5283_s24, 8 }
  0x10   : > { %s5081_s22 = scalar_lea.vmem %s5254_s7, %s3487_s19 }
  0x11   : > { %s3978_s10 = scalar_lea.vmem %s5247_s0, %s3779_s30 }
  0x12   : > { %v3806_v1 = vld [vmem:[%s3978_s10] sm:$0xff]   ;;  %v3807_v2 = vld [vmem:[%s3978_s10 + $0x8] sm:$0xff]   ;;  %v3808_v3 = vld [vmem:[%s3978_s10 + $0x10] sm:$0xff]  }
  0x13   : > { %3661 = vmatprep.mubr.msk.bf16.mxu0 %vm576_vm0, %v3806_v1  ;;  %v3809_v4 = vld [vmem:[%s3978_s10 + $0x18] sm:$0xff]   ;;  %v3810_v5 = vld [vmem:[%s3978_s10 + $0x20] sm:$0xff]   ;;  %v3811_v6 = vld [vmem:[%s3978_s10 + $0x28] sm:$0xff]  }
  0x14   : > { %3662 = vmatmul.mubr.msk.bf16.vlgmr.msra.gmra.mxu0 %vm576_vm0, %v3807_v2  ;;  %v3812_v7 = vld [vmem:[%s3978_s10 + $0x30] sm:$0xff]   ;;  %v3825_v9 = vld [vmem:[%s3978_s10 + $0xd8] sm:$0xff]   ;;  %v3828_v10 = vld [vmem:[%s3978_s10 + $0xe0] sm:$0xff]  }
  0x15   : > { %3665 = vmatprep.mubr.msk.bf16.mxu0 %vm576_vm0, %v3808_v3  ;;  %v3824_v8 = vld [vmem:[%s3978_s10 + $0xd0] sm:$0xff]   ;;  %v3813_v11 = vld [vmem:[%s3978_s10 + $0x38] sm:$0xff]   ;;  %v3814_v12 = vld [vmem:[%s3978_s10 + $0x40] sm:$0xff]  }
  0x16   : > { %3713 = vmatprep.mubr.msk.bf16.mxu1 %vm576_vm0, %v3824_v8  ;;  %v3829_v13 = vld [vmem:[%s3978_s10 + $0xe8] sm:$0xff]   ;;  %v3832_v14 = vld [vmem:[%s3978_s10 + $0xf0] sm:$0xff]   ;;  %v3833_v17 = vld [vmem:[%s3978_s10 + $0xf8] sm:$0xff]  }
  0x17   : > { %3714 = vmatmul.mubr.msk.bf16.vlgmr.msra.gmra.mxu1 %vm576_vm0, %v3825_v9  ;;  %v3815_v15 = vld [vmem:[%s3978_s10 + $0x48] sm:$0xff]   ;;  %v3816_v16 = vld [vmem:[%s3978_s10 + $0x50] sm:$0xff]   ;;  %v3836_v18 = vld [vmem:[%s3978_s10 + $0x100] sm:$0xff]  }
  0x18   : > { %3717 = vmatprep.mubr.msk.bf16.mxu1 %vm576_vm0, %v3828_v10  ;;  %v3817_v19 = vld [vmem:[%s3978_s10 + $0x58] sm:$0xff]   ;;  %v3818_v20 = vld [vmem:[%s3978_s10 + $0x60] sm:$0xff]   ;;  %v3837_v21 = vld [vmem:[%s3978_s10 + $0x108] sm:$0xff]   ;;  %3734 = vmatpush3.bf16.msra.mxu1 %v3842_v37 }
  0x19   : > { %v3840_v22 = vld [vmem:[%s3978_s10 + $0x110] sm:$0xff]   ;;  %v3819_v23 = vld [vmem:[%s3978_s10 + $0x68] sm:$0xff]   ;;  %v3841_v25 = vld [vmem:[%s3978_s10 + $0x118] sm:$0xff]   ;;  %3735 = vmatprep.subr.bf16.mxu1 %v3843_v38 }
  0x1a   : > { %v3820_v24 = vld [vmem:[%s3978_s10 + $0x70] sm:$0xff]   ;;  %v3821_v26 = vld [vmem:[%s3978_s10 + $0x78] sm:$0xff]   ;;  %v3822_v27 = vld [vmem:[%s3978_s10 + $0x80] sm:$0xff]  }
  0x1b   : > { %v3823_v28 = vld [vmem:[%s3978_s10 + $0x88] sm:$0xff]   ;;  %v3826_v29 = vld [vmem:[%s3978_s10 + $0x90] sm:$0xff]   ;;  %v3827_v30 = vld [vmem:[%s3978_s10 + $0x98] sm:$0xff]  }
  0x1c   : > { %3666 = vmatmul.mubr.msk.bf16.gmra.mxu0 %vm576_vm0, %v3809_v4  ;;  %v3830_v31 = vld [vmem:[%s3978_s10 + $0xa0] sm:$0xff]   ;;  %v3831_v32 = vld [vmem:[%s3978_s10 + $0xa8] sm:$0xff]   ;;  %v3834_v33 = vld [vmem:[%s3978_s10 + $0xb0] sm:$0xff]   ;;  %3736 = vmatpush3.bf16.msra.mxu1 %v3843_v38 }
  0x1d   : > { %3669 = vmatprep.mubr.msk.bf16.mxu0 %vm576_vm0, %v3810_v5  ;;  %v3835_v34 = vld [vmem:[%s3978_s10 + $0xb8] sm:$0xff]   ;;  %v3838_v35 = vld [vmem:[%s3978_s10 + $0xc0] sm:$0xff]   ;;  %v3839_v36 = vld [vmem:[%s3978_s10 + $0xc8] sm:$0xff]   ;;  %3737 = vmatprep.subr.bf16.mxu1 %v3844_v39 }
  0x1e   : > { %v4098_v5 = vld [vmem:[%s5250_s3] ss:$0 sm:$0xff]  ;;  %v4134_v37 = vld [vmem:[%s5250_s3 + $0x3] ss:$0 sm:$0xff] }
  0x1f   : > { %3718 = vmatmul.mubr.msk.bf16.gmra.mxu1 %vm576_vm0, %v3829_v13  ;;  %v4107_v9 = vld [vmem:[%s5251_s4] ss:$0 sm:$0xff] }
  0x20   : > { %3721 = vmatprep.mubr.msk.bf16.mxu1 %vm576_vm0, %v3832_v14  ;;  %3738 = vmatpush3.bf16.msra.mxu1 %v3844_v39  ;;  %v4115_v14 = vld [vmem:[%s5250_s3 + $0x1] ss:$0 sm:$0xff] }
  0x21   : > { %3739 = vmatprep.subr.bf16.mxu1 %v3845_v40 }
  0x24   : > { %3670 = vmatmul.mubr.msk.bf16.gmra.mxu0 %vm576_vm0, %v3811_v6  ;;  %3740 = vmatpush3.bf16.msra.mxu1 %v3845_v40 }
  0x25   : > { %3673 = vmatprep.mubr.msk.bf16.mxu0 %vm576_vm0, %v3812_v7  ;;  %3741 = vmatprep.subr.bf16.mxu1 %v3846_v41 }
  0x27   : > { %3722 = vmatmul.mubr.msk.bf16.gmra.mxu1 %vm576_vm0, %v3833_v17 }
  0x28   : > { %3725 = vmatprep.mubr.msk.bf16.mxu1 %vm576_vm0, %v3836_v18  ;;  %3742 = vmatpush3.bf16.msra.mxu1 %v3846_v41  ;;  %v4121_v18 = vld [vmem:[%s5250_s3 + $0x2] ss:$0 sm:$0xff] }
  0x29   : > { %3743 = vmatprep.subr.bf16.mxu1 %v3848_v42 }
  0x2c   : > { %3674 = vmatmul.mubr.msk.bf16.gmra.mxu0 %vm576_vm0, %v3813_v11  ;;  %3744 = vmatpush3.bf16.msra.mxu1 %v3848_v42 }
  0x2d   : > { %3677 = vmatprep.mubr.msk.bf16.mxu0 %vm576_vm0, %v3814_v12 }
  0x2f   : > { %3726 = vmatmul.mubr.msk.bf16.gmra.mxu1 %vm576_vm0, %v3837_v21 }
  0x30   : > { %3729 = vmatprep.mubr.msk.bf16.mxu1 %vm576_vm0, %v3840_v22 }
  0x34   : > { %3678 = vmatmul.mubr.msk.bf16.gmra.mxu0 %vm576_vm0, %v3815_v15 }
  0x35   : > { %3681 = vmatprep.mubr.msk.bf16.mxu0 %vm576_vm0, %v3816_v16 }
  0x37   : > { %3730 = vmatmul.mubr.msk.bf16.gmra.mxu1 %vm576_vm0, %v3841_v25 }
  0x3c   : > { %3682 = vmatmul.mubr.msk.bf16.gmra.mxu0 %vm576_vm0, %v3817_v19 }
  0x3d   : > { %3685 = vmatprep.mubr.msk.bf16.mxu0 %vm576_vm0, %v3818_v20 }
  0x44   : > { %3686 = vmatmul.mubr.msk.bf16.gmra.mxu0 %vm576_vm0, %v3819_v23 }
  0x45   : > { %3689 = vmatprep.mubr.msk.bf16.mxu0 %vm576_vm0, %v3820_v24 }
  0x4c   : > { %3690 = vmatmul.mubr.msk.bf16.gmra.mxu0 %vm576_vm0, %v3821_v26 }
  0x4d   : > { %3693 = vmatprep.mubr.msk.bf16.mxu0 %vm576_vm0, %v3822_v27 }
  0x54   : > { %3694 = vmatmul.mubr.msk.bf16.gmra.mxu0 %vm576_vm0, %v3823_v28 }
  0x55   : > { %3697 = vmatprep.mubr.msk.bf16.mxu0 %vm576_vm0, %v3826_v29 }
  0x5c   : > { %3698 = vmatmul.mubr.msk.bf16.gmra.mxu0 %vm576_vm0, %v3827_v30 }
  0x5d   : > { %3701 = vmatprep.mubr.msk.bf16.mxu0 %vm576_vm0, %v3830_v31 }
  0x64   : > { %3702 = vmatmul.mubr.msk.bf16.gmra.mxu0 %vm576_vm0, %v3831_v32 }
  0x65   : > { %3705 = vmatprep.mubr.msk.bf16.mxu0 %vm576_vm0, %v3834_v33 }
  0x6c   : > { %3706 = vmatmul.mubr.msk.bf16.gmra.mxu0 %vm576_vm0, %v3835_v34 }
  0x6d   : > { %3709 = vmatprep.mubr.msk.bf16.mxu0 %vm576_vm0, %v3838_v35 }
  0x74   : > { %3710 = vmatmul.mubr.msk.bf16.gmra.mxu0 %vm576_vm0, %v3839_v36 }
  0xd4   : > { %v3663_v44 = vpop.f32.mrf.mxu0 }
  0xd5   : > { %v728_v45 = vadd.f32 %v3663_v44, %v4073_v43 }
  0xd6   : > { %v719_v46 = vpop.f32.mrf.mxu0 }
  0xd7   : > { %v1008_v47 = vmax.f32 %v728_v45, 0.0  ;;  %v720_v48 = vadd.f32 %v4073_v43, %v719_v46  ;;  %v3715_v12 = vpop.f32.mrf.mxu1 }
  0xd8   : > { %v3664_v49 = vpop.f32.mrf.mxu0  ;;  %v936_v20 = vadd.f32 %v3715_v12, %v4073_v43 }
  0xd9   : > { %v1080_v50 = vmin.f32 %v1008_v47, 6.0  ;;  %v1006_v51 = vmax.f32 %v720_v48, 0.0  ;;  %v927_v34 = vpop.f32.mrf.mxu1 }
  0xda   : > { %v722_v52 = vpop.f32.mrf.mxu0  ;;  %v1060_v33 = vmax.f32 %v936_v20, 0.0  ;;  %v4144_v47 = vadd.f32 %v4073_v43, %v927_v34 }
  0xdb   : > { %1153 = vst.msk [vmem:[#allocation2 + $0x10] sm:$0xff] %vm1150_vm1, %v1080_v50  ;;  %v1078_v53 = vmin.f32 %v1006_v51, 6.0  ;;  %v723_v54 = vadd.f32 %v4073_v43, %v722_v52  ;;  %v4151_v52 = vld [vmem:[%s5250_s3 + $0x4] ss:$0 sm:$0xff] }
  0xdc   : > { %1242 = vst.msk [vmem:[#allocation2 + $0x11] sm:$0x1] %vm1223_vm2, %v5255_v55  ;;  %v3667_v56 = vpop.f32.mrf.mxu0  ;;  %v1132_v44 = vmin.f32 %v1060_v33, 6.0 }
  0xdd   : > { %1266 = vst.msk [vmem:[#allocation2 + $0x10] sm:$0xff] %vm1150_vm1, %v5255_v55  ;;  %1151 = vst.msk [vmem:[#allocation2] sm:$0xff] %vm1150_vm1, %v1078_v53  ;;  %v1007_v57 = vmax.f32 %v723_v54, 0.0  ;;  %v744_v58 = vadd.f32 %v3667_v56, %v4073_v43  ;;  %v3716_v54 = vpop.f32.mrf.mxu1 }
  0xde   : > { %1224 = vst.msk [vmem:[#allocation2] sm:$0x1] %vm1223_vm2, %v5255_v55  ;;  %v735_v59 = vpop.f32.mrf.mxu0 }
  0xdf   : > { %1264 = vst.msk [vmem:[#allocation2] sm:$0xff] %vm1150_vm1, %v5255_v55  ;;  %v1079_v60 = vmin.f32 %v1007_v57, 6.0  ;;  %v1012_v61 = vmax.f32 %v744_v58, 0.0  ;;  %v736_v62 = vadd.f32 %v4073_v43, %v735_v59  ;;  %1205 = vst.msk [vmem:[#allocation2 + $0x1b0] sm:$0xff] %vm1150_vm1, %v1132_v44 }
  0xe0   : > { %v3668_v63 = vpop.f32.mrf.mxu0  ;;  %1255 = vst.msk [vmem:[#allocation2 + $0x1b1] sm:$0x1] %vm1223_vm2, %v5255_v55 }
  0xe1   : > { %1152 = vst.msk [vmem:[#allocation2 + $0x8] sm:$0xff] %vm1150_vm1, %v1079_v60  ;;  %v1084_v0 = vmin.f32 %v1012_v61, 6.0  ;;  %v1010_v1 = vmax.f32 %v736_v62, 0.0 }
  0xe2   : > { %1265 = vst.msk [vmem:[#allocation2 + $0x8] sm:$0xff] %vm1150_vm1, %v5255_v55  ;;  %v738_v2 = vpop.f32.mrf.mxu0 }
  0xe3   : > { %1157 = vst.msk [vmem:[#allocation2 + $0x30] sm:$0xff] %vm1150_vm1, %v1084_v0  ;;  %v1082_v3 = vmin.f32 %v1010_v1, 6.0  ;;  %v739_v4 = vadd.f32 %v4073_v43, %v738_v2  ;;  %v4162_v1 = vld [vmem:[%s5250_s3 + $0x5] ss:$0 sm:$0xff] }
  0xe4   : > { %1243 = vst.msk [vmem:[#allocation2 + $0x31] sm:$0x1] %vm1223_vm2, %v5255_v55  ;;  %v3671_v6 = vpop.f32.mrf.mxu0 }
  0xe5   : > { %1155 = vst.msk [vmem:[#allocation2 + $0x20] sm:$0xff] %vm1150_vm1, %v1082_v3  ;;  %v1011_v7 = vmax.f32 %v739_v4, 0.0  ;;  %v760_v8 = vadd.f32 %v3671_v6, %v4073_v43 }
  0xe6   : > { %v1297_v10 = vld [vmem:[#allocation2] sm:$0xff]  ;;  %1225 = vst.msk [vmem:[#allocation2 + $0x20] sm:$0x1] %vm1223_vm2, %v5255_v55  ;;  %v751_v11 = vpop.f32.mrf.mxu0 }
  0xe7   : > { %v1305_v13 = vmul.f32 %v4098_v5, %v1297_v10  ;;  %v1083_v15 = vmin.f32 %v1011_v7, 6.0  ;;  %v1016_v16 = vmax.f32 %v760_v8, 0.0  ;;  %v752_v17 = vadd.f32 %v4073_v43, %v751_v11 }
  0xe8   : > { %v3672_v19 = vpop.f32.mrf.mxu0  ;;  %v1058_v11 = vmax.f32 %v4144_v47, 0.0 }
  0xe9   : > { %v1307_v21 = vadd.f32 %v4107_v9, %v1305_v13  ;;  %v1298_v22 = vld [vmem:[#allocation2 + $0x8] sm:$0xff]  ;;  %1156 = vst.msk [vmem:[#allocation2 + $0x28] sm:$0xff] %vm1150_vm1, %v1083_v15  ;;  %v1088_v25 = vmin.f32 %v1016_v16, 6.0  ;;  %v1014_v26 = vmax.f32 %v752_v17, 0.0 }
  0xea   : > { %v1309_v23 = vld [vmem:[#allocation2 + $0x1] sm:$0xff]  ;;  %v1310_v24 = vld [vmem:[#allocation2 + $0x9] sm:$0xff]  ;;  %v1306_v27 = vmul.f32 %v4098_v5, %v1298_v22  ;;  %v754_v32 = vpop.f32.mrf.mxu0 }
  0xeb   : > { %v1317_v28 = vmul.f32 %v4115_v14, %v1309_v23  ;;  %v1318_v29 = vmul.f32 %v4115_v14, %v1310_v24  ;;  %v1321_v30 = vld [vmem:[#allocation2 + $0x2] sm:$0xff]  ;;  %v1322_v31 = vld [vmem:[#allocation2 + $0xa] sm:$0xff]  ;;  %1161 = vst.msk [vmem:[#allocation2 + $0x50] sm:$0xff] %vm1150_vm1, %v1088_v25  ;;  %v1086_v38 = vmin.f32 %v1014_v26, 6.0  ;;  %v755_v41 = vadd.f32 %v4073_v43, %v754_v32 }
  0xec   : > { %v1329_v35 = vmul.f32 %v4121_v18, %v1321_v30  ;;  %v1330_v36 = vmul.f32 %v4121_v18, %v1322_v31  ;;  %v1308_v39 = vadd.f32 %v4107_v9, %v1306_v27  ;;  %1244 = vst.msk [vmem:[#allocation2 + $0x51] sm:$0x1] %vm1223_vm2, %v5255_v55  ;;  %v3675_v42 = vpop.f32.mrf.mxu0  ;;  %v4178_v26 = vld [vmem:[%s5250_s3 + $0x6] ss:$0 sm:$0xff] }
  0xed   : > { %v1319_v40 = vadd.f32 %v1317_v28, %v1307_v21  ;;  %v1334_v45 = vld [vmem:[#allocation2 + $0x20] sm:$0xff]  ;;  %1159 = vst.msk [vmem:[#allocation2 + $0x40] sm:$0xff] %vm1150_vm1, %v1086_v38  ;;  %v776_v46 = vadd.f32 %v3675_v42, %v4073_v43  ;;  %v1015_v56 = vmax.f32 %v755_v41, 0.0 }
  0xee   : > { %v1320_v48 = vadd.f32 %v1318_v29, %v1308_v39  ;;  %v1342_v50 = vmul.f32 %v4134_v37, %v1334_v45  ;;  %v1424_v51 = vmul.f32 %v4098_v5, %v1334_v45  ;;  %1226 = vst.msk [vmem:[#allocation2 + $0x40] sm:$0x1] %vm1223_vm2, %v5255_v55  ;;  %v767_v53 = vpop.f32.mrf.mxu0 }
  0xef   : > { %v1331_v49 = vadd.f32 %v1329_v35, %v1319_v40  ;;  %v1020_v63 = vmax.f32 %v776_v46, 0.0  ;;  %v768_v7 = vadd.f32 %v4073_v43, %v767_v53  ;;  %v1087_v21 = vmin.f32 %v1015_v56, 6.0 }
  0xf0   : > { %v1426_v58 = vadd.f32 %v4107_v9, %v1424_v51  ;;  %v1332_v59 = vadd.f32 %v1330_v36, %v1320_v48  ;;  %v1335_v60 = vld [vmem:[#allocation2 + $0x28] sm:$0xff]  ;;  %v3676_v0 = vpop.f32.mrf.mxu0 }
  0xf1   : > { %v1344_v57 = vadd.f32 %v1342_v50, %v1331_v49  ;;  %v1346_v61 = vld [vmem:[#allocation2 + $0x21] sm:$0xff]  ;;  %v1347_v62 = vld [vmem:[#allocation2 + $0x29] sm:$0xff]  ;;  %v1343_v2 = vmul.f32 %v4134_v37, %v1335_v60  ;;  %v1425_v6 = vmul.f32 %v4098_v5, %v1335_v60  ;;  %v1092_v22 = vmin.f32 %v1020_v63, 6.0  ;;  %1160 = vst.msk [vmem:[#allocation2 + $0x48] sm:$0xff] %vm1150_vm1, %v1087_v21 }
  0xf2   : > { %v1354_v3 = vmul.f32 %v4151_v52, %v1346_v61  ;;  %v1358_v4 = vld [vmem:[#allocation2 + $0x22] sm:$0xff]  ;;  %v1430_v8 = vmul.f32 %v4115_v14, %v1346_v61  ;;  %v770_v10 = vpop.f32.mrf.mxu0  ;;  %v1355_v13 = vmul.f32 %v4151_v52, %v1347_v62  ;;  %v1359_v16 = vld [vmem:[#allocation2 + $0x2a] sm:$0xff]  ;;  %v1431_v24 = vmul.f32 %v4115_v14, %v1347_v62 }
  0xf3   : > { %v1345_v12 = vadd.f32 %v1343_v2, %v1332_v59  ;;  %v1427_v17 = vadd.f32 %v4107_v9, %v1425_v6  ;;  %v1366_v19 = vmul.f32 %v4162_v1, %v1358_v4  ;;  %v1436_v25 = vmul.f32 %v4121_v18, %v1358_v4  ;;  %1165 = vst.msk [vmem:[#allocation2 + $0x70] sm:$0xff] %vm1150_vm1, %v1092_v22  ;;  %v4200_v50 = vld [vmem:[%s5250_s3 + $0x7] ss:$0 sm:$0xff] }
  0xf4   : > { %v1356_v15 = vadd.f32 %v1354_v3, %v1344_v57  ;;  %v1432_v20 = vadd.f32 %v1430_v8, %v1426_v58  ;;  %v3679_v23 = vpop.f32.mrf.mxu0  ;;  %v1018_v28 = vmax.f32 %v768_v7, 0.0  ;;  %v1367_v30 = vmul.f32 %v4162_v1, %v1359_v16  ;;  %1245 = vst.msk [vmem:[#allocation2 + $0x71] sm:$0x1] %vm1223_vm2, %v5255_v55  ;;  %v4205_v58 = vld [vmem:[%s5250_s3 + $0x8] ss:$0 sm:$0xff] }
  0xf5   : > { %v1371_v27 = vld [vmem:[#allocation2 + $0x40] sm:$0xff]  ;;  %v1357_v29 = vadd.f32 %v1355_v13, %v1345_v12  ;;  %v1437_v32 = vmul.f32 %v4121_v18, %v1359_v16  ;;  %v1433_v34 = vadd.f32 %v1431_v24, %v1427_v17  ;;  %v771_v41 = vadd.f32 %v4073_v43, %v770_v10 }
  0xf6   : > { %v1368_v31 = vadd.f32 %v1366_v19, %v1356_v15  ;;  %v783_v33 = vpop.f32.mrf.mxu0  ;;  %v1438_v35 = vadd.f32 %v1436_v25, %v1432_v20  ;;  %v1090_v36 = vmin.f32 %v1018_v28, 6.0  ;;  %v1379_v38 = vmul.f32 %v4178_v26, %v1371_v27 }
  0xf7   : > { %v1442_v39 = vmul.f32 %v4134_v37, %v1371_v27  ;;  %v1494_v40 = vmul.f32 %v4098_v5, %v1371_v27  ;;  %v792_v44 = vadd.f32 %v3679_v23, %v4073_v43  ;;  %v784_v45 = vadd.f32 %v4073_v43, %v783_v33 }
  0xf8   : > { %v3680_v42 = vpop.f32.mrf.mxu0  ;;  %1163 = vst.msk [vmem:[#allocation2 + $0x60] sm:$0xff] %vm1150_vm1, %v1090_v36  ;;  %v1369_v46 = vadd.f32 %v1367_v30, %v1357_v29  ;;  %v1019_v47 = vmax.f32 %v771_v41, 0.0  ;;  %v1130_v49 = vmin.f32 %v1058_v11, 6.0  ;;  %v1439_v54 = vadd.f32 %v1437_v32, %v1433_v34  ;;  %v1372_v62 = vld [vmem:[#allocation2 + $0x48] sm:$0xff] }
  0xf9   : > { %1227 = vst.msk [vmem:[#allocation2 + $0x60] sm:$0x1] %vm1223_vm2, %v5255_v55  ;;  %v1024_v51 = vmax.f32 %v792_v44, 0.0  ;;  %v1022_v53 = vmax.f32 %v784_v45, 0.0  ;;  %v1381_v56 = vadd.f32 %v1379_v38, %v1368_v31  ;;  %v1444_v57 = vadd.f32 %v1442_v39, %v1438_v35  ;;  %v1383_v63 = vld [vmem:[#allocation2 + $0x41] sm:$0xff]  ;;  %v1384_v0 = vld [vmem:[#allocation2 + $0x49] sm:$0xff] }
  0xfa   : > { %v4195_v48 = vpop.f32.mrf.mxu0  ;;  %v1091_v59 = vmin.f32 %v1019_v47, 6.0  ;;  %1203 = vst.msk [vmem:[#allocation2 + $0x1a0] sm:$0xff] %vm1150_vm1, %v1130_v49  ;;  %v1496_v61 = vadd.f32 %v4107_v9, %v1494_v40  ;;  %v1380_v4 = vmul.f32 %v4178_v26, %v1372_v62  ;;  %v1391_v6 = vmul.f32 %v4200_v50, %v1383_v63  ;;  %v1395_v8 = vld [vmem:[#allocation2 + $0x42] sm:$0xff]  ;;  %v1396_v10 = vld [vmem:[#allocation2 + $0x4a] sm:$0xff] }
  0xfb   : > { %v1096_v2 = vmin.f32 %v1024_v51, 6.0  ;;  %v1094_v3 = vmin.f32 %v1022_v53, 6.0  ;;  %1237 = vst.msk [vmem:[#allocation2 + $0x1a0] sm:$0x1] %vm1223_vm2, %v5255_v55  ;;  %v1392_v7 = vmul.f32 %v4200_v50, %v1384_v0  ;;  %v1443_v11 = vmul.f32 %v4134_v37, %v1372_v62 }
  0xfc   : > { %v4207_v60 = vpop.f32.mrf.mxu0  ;;  %1164 = vst.msk [vmem:[#allocation2 + $0x68] sm:$0xff] %vm1150_vm1, %v1091_v59  ;;  %v1403_v13 = vmul.f32 %v4205_v58, %v1395_v8  ;;  %v1404_v15 = vmul.f32 %v4205_v58, %v1396_v10  ;;  %v1448_v16 = vmul.f32 %v4151_v52, %v1383_v63  ;;  %v1449_v17 = vmul.f32 %v4151_v52, %v1384_v0 }
  0xfd   : > { %1169 = vst.msk [vmem:[#allocation2 + $0x90] sm:$0xff] %vm1150_vm1, %v1096_v2  ;;  %1167 = vst.msk [vmem:[#allocation2 + $0x80] sm:$0xff] %vm1150_vm1, %v1094_v3  ;;  %v1382_v19 = vadd.f32 %v1380_v4, %v1369_v46  ;;  %v1393_v20 = vadd.f32 %v1391_v6, %v1381_v56  ;;  %v1445_v21 = vadd.f32 %v1443_v11, %v1439_v54 }
  0xfe   : > { %v4218_v12 = vpop.f32.mrf.mxu0  ;;  %v1454_v22 = vmul.f32 %v4162_v1, %v1395_v8  ;;  %1246 = vst.msk [vmem:[#allocation2 + $0x91] sm:$0x1] %vm1223_vm2, %v5255_v55  ;;  %1228 = vst.msk [vmem:[#allocation2 + $0x80] sm:$0x1] %vm1223_vm2, %v5255_v55  ;;  %v1450_v24 = vadd.f32 %v1448_v16, %v1444_v57  ;;  %v1455_v25 = vmul.f32 %v4162_v1, %v1396_v10 }
  0xff   : > { %v1495_v27 = vmul.f32 %v4098_v5, %v1372_v62  ;;  %v1500_v28 = vmul.f32 %v4115_v14, %v1383_v63  ;;  %v1394_v29 = vadd.f32 %v1392_v7, %v1382_v19  ;;  %v1405_v30 = vadd.f32 %v1403_v13, %v1393_v20 }
 0x100   : > { %v3684_v23 = vpop.f32.mrf.mxu0  ;;  %v1451_v31 = vadd.f32 %v1449_v17, %v1445_v21  ;;  %v1501_v32 = vmul.f32 %v4115_v14, %v1384_v0  ;;  %v1459_v33 = vld [vmem:[#allocation2 + $0x60] sm:$0xff]  ;;  %v1456_v35 = vadd.f32 %v1454_v22, %v1450_v24  ;;  %v1506_v39 = vmul.f32 %v4121_v18, %v1395_v8 }
 0x101   : > { %v1497_v36 = vadd.f32 %v4107_v9, %v1495_v27  ;;  %v1502_v38 = vadd.f32 %v1500_v28, %v1496_v61  ;;  %v1406_v40 = vadd.f32 %v1404_v15, %v1394_v29  ;;  %v1407_v41 = vmax.f32 %v1405_v30, 0.0 }
 0x102   : > { %v4235_v34 = vpop.f32.mrf.mxu0  ;;  %v1457_v42 = vadd.f32 %v1455_v25, %v1451_v31  ;;  %v1461_v47 = vmul.f32 %v4178_v26, %v1459_v33  ;;  %v1512_v49 = vmul.f32 %v4134_v37, %v1459_v33  ;;  %v1564_v57 = vmul.f32 %v4098_v5, %v1459_v33 }
 0x103   : > { %v1503_v45 = vadd.f32 %v1501_v32, %v1497_v36  ;;  %v1508_v46 = vadd.f32 %v1506_v39, %v1502_v38  ;;  %v1460_v51 = vld [vmem:[#allocation2 + $0x68] sm:$0xff]  ;;  %v1408_v54 = vmax.f32 %v1406_v40, 0.0  ;;  %v1409_v56 = vmin.f32 %v1407_v41, 6.0 }
 0x104   : > { %v4239_v44 = vpop.f32.mrf.mxu0  ;;  %v1465_v53 = vld [vmem:[#allocation2 + $0x61] sm:$0xff]  ;;  %v1462_v59 = vmul.f32 %v4178_v26, %v1460_v51  ;;  %v1466_v61 = vld [vmem:[#allocation2 + $0x69] sm:$0xff]  ;;  %v1507_v0 = vmul.f32 %v4121_v18, %v1396_v10  ;;  %v1463_v2 = vadd.f32 %v1461_v47, %v1456_v35  ;;  %v1566_v10 = vadd.f32 %v4107_v9, %v1564_v57 }
 0x105   : > { %v1471_v62 = vld [vmem:[#allocation2 + $0x62] sm:$0xff]  ;;  %v1467_v3 = vmul.f32 %v4200_v50, %v1465_v53  ;;  %v1410_v4 = vmin.f32 %v1408_v54, 6.0  ;;  %v3488_v6 = vpack.c.bf16 %v1409_v56, %v1409_v56  ;;  %v1514_v7 = vadd.f32 %v1512_v49, %v1508_v46  ;;  %v4249_v11 = vld [vmem:[#allocation2 + $0x6a] sm:$0xff] }
 0x106   : > { %v4245_v63 = vpop.f32.mrf.mxu0  ;;  %v1464_v8 = vadd.f32 %v1462_v59, %v1457_v42  ;;  %v1509_v15 = vadd.f32 %v1507_v0, %v1503_v45  ;;  %v1468_v16 = vmul.f32 %v4200_v50, %v1466_v61  ;;  %v1473_v19 = vmul.f32 %v4205_v58, %v1471_v62  ;;  %v1529_v42 = vld [vmem:[#allocation2 + $0x80] sm:$0xff] }
 0x107   : > { %v1469_v17 = vadd.f32 %v1467_v3, %v1463_v2  ;;  %v3489_v20 = vpack.c.bf16 %v1410_v4, %v1410_v4  ;;  %v1513_v21 = vmul.f32 %v4134_v37, %v1460_v51  ;;  %v1518_v22 = vmul.f32 %v4151_v52, %v1465_v53  ;;  %1420 = vst.msk [vmem:[#allocation3] sm:$0xf] %vm1419_vm3, %v3488_v6 }
 0x108   : > { %v3688_v13 = vpop.f32.mrf.mxu0  ;;  %v1470_v24 = vadd.f32 %v1468_v16, %v1464_v8  ;;  %v1474_v25 = vmul.f32 %v4205_v58, %v4249_v11  ;;  %v1565_v30 = vmul.f32 %v4098_v5, %v1460_v51  ;;  %v1570_v31 = vmul.f32 %v4115_v14, %v1465_v53 }
 0x109   : > { %v1475_v27 = vadd.f32 %v1473_v19, %v1469_v17  ;;  %v1515_v28 = vadd.f32 %v1513_v21, %v1509_v15  ;;  %v1520_v29 = vadd.f32 %v1518_v22, %v1514_v7  ;;  %1421 = vst.msk [vmem:[#allocation3 + $0x4] sm:$0xf] %vm1419_vm3, %v3489_v20  ;;  %v787_v35 = vadd.f32 %v4073_v43, %v4195_v48 }
 0x10a   : > { %v818_v23 = vpop.f32.mrf.mxu0  ;;  %v1476_v32 = vadd.f32 %v1474_v25, %v1470_v24  ;;  %v808_v36 = vadd.f32 %v4207_v60, %v4073_v43  ;;  %v1519_v38 = vmul.f32 %v4151_v52, %v1466_v61  ;;  %v1524_v39 = vmul.f32 %v4162_v1, %v1471_v62 }
 0x10b   : > { %v1477_v33 = vmax.f32 %v1475_v27, 0.0  ;;  %v1567_v40 = vadd.f32 %v4107_v9, %v1565_v30  ;;  %v1572_v41 = vadd.f32 %v1570_v31, %v1566_v10  ;;  %v1571_v49 = vmul.f32 %v4115_v14, %v1466_v61 }
 0x10c   : > { %v3691_v45 = vpop.f32.mrf.mxu0  ;;  %v1478_v46 = vmax.f32 %v1476_v32, 0.0  ;;  %v1521_v51 = vadd.f32 %v1519_v38, %v1515_v28  ;;  %v1526_v53 = vadd.f32 %v1524_v39, %v1520_v29  ;;  %v1576_v48 = vmul.f32 %v4121_v18, %v1471_v62 }
 0x10d   : > { %v1479_v47 = vmin.f32 %v1477_v33, 6.0  ;;  %v1573_v60 = vadd.f32 %v1571_v49, %v1567_v40  ;;  %v1531_v57 = vmul.f32 %v4178_v26, %v1529_v42  ;;  %v1582_v0 = vmul.f32 %v4134_v37, %v1529_v42 }
 0x10e   : > { %v1480_v54 = vmin.f32 %v1478_v46, 6.0  ;;  %v1578_v59 = vadd.f32 %v1576_v48, %v1572_v41  ;;  %v1023_v2 = vmax.f32 %v787_v35, 0.0  ;;  %v1028_v3 = vmax.f32 %v808_v36, 0.0  ;;  %v831_v4 = vpop.f32.mrf.mxu0 }
 0x10f   : > { %v3490_v56 = vpack.c.bf16 %v1479_v47, %v1479_v47  ;;  %v1634_v61 = vmul.f32 %v4098_v5, %v1529_v42  ;;  %v800_v7 = vadd.f32 %v4073_v43, %v4218_v12  ;;  %v803_v15 = vadd.f32 %v4073_v43, %v4235_v34 }
 0x110   : > { %v3491_v6 = vpack.c.bf16 %v1480_v54, %v1480_v54  ;;  %v3847_v62 = vld [vmem:[#allocation3] sm:$0xff]   ;;  %v1095_v8 = vmin.f32 %v1023_v2, 6.0  ;;  %v1100_v13 = vmin.f32 %v1028_v3, 6.0  ;;  %v824_v16 = vadd.f32 %v4239_v44, %v4073_v43  ;;  %v3692_v21 = vpop.f32.mrf.mxu0 }
 0x111   : > { %1490 = vst.msk [vmem:[#allocation3 + $0x8] sm:$0xf] %vm1419_vm3, %v3490_v56  ;;  %v1026_v17 = vmax.f32 %v800_v7, 0.0  ;;  %v816_v19 = vadd.f32 %v4073_v43, %v4245_v63  ;;  %3745 = vmatprep.mubr.msk.bf16.mxu1 %vm1150_vm1, %v3847_v62  ;;  %v1027_v12 = vmax.f32 %v803_v15, 0.0  ;;  %v819_v10 = vadd.f32 %v4073_v43, %v818_v23 }
 0x112   : > { %1491 = vst.msk [vmem:[#allocation3 + $0xc] sm:$0xf] %vm1419_vm3, %v3491_v6  ;;  %v1032_v20 = vmax.f32 %v824_v16, 0.0  ;;  %v840_v34 = vadd.f32 %v3691_v45, %v4073_v43  ;;  %v832_v29 = vadd.f32 %v4073_v43, %v831_v4  ;;  %v1525_v23 = vmul.f32 %v4162_v1, %v4249_v11  ;;  %v4315_v56 = vpop.f32.mrf.mxu0 }
 0x113   : > { %1168 = vst.msk [vmem:[#allocation2 + $0x88] sm:$0xff] %vm1150_vm1, %v1095_v8  ;;  %1173 = vst.msk [vmem:[#allocation2 + $0xb0] sm:$0xff] %vm1150_vm1, %v1100_v13  ;;  %v1098_v44 = vmin.f32 %v1026_v17, 6.0  ;;  %v1030_v22 = vmax.f32 %v816_v19, 0.0  ;;  %v1099_v24 = vmin.f32 %v1027_v12, 6.0  ;;  %v1031_v25 = vmax.f32 %v819_v10, 0.0 }
 0x114   : > { %1247 = vst.msk [vmem:[#allocation2 + $0xb1] sm:$0x1] %vm1223_vm2, %v5255_v55  ;;  %v1104_v63 = vmin.f32 %v1032_v20, 6.0  ;;  %v1036_v27 = vmax.f32 %v840_v34, 0.0  ;;  %v1577_v30 = vmul.f32 %v4121_v18, %v4249_v11  ;;  %v1034_v33 = vmax.f32 %v832_v29, 0.0  ;;  %v4330_v12 = vpop.f32.mrf.mxu0 }
 0x115   : > { %1171 = vst.msk [vmem:[#allocation2 + $0xa0] sm:$0xff] %vm1150_vm1, %v1098_v44  ;;  %v1102_v28 = vmin.f32 %v1030_v22, 6.0  ;;  %1172 = vst.msk [vmem:[#allocation2 + $0xa8] sm:$0xff] %vm1150_vm1, %v1099_v24  ;;  %v1103_v31 = vmin.f32 %v1031_v25, 6.0  ;;  %v1527_v35 = vadd.f32 %v1525_v23, %v1521_v51  ;;  %v1533_v38 = vadd.f32 %v1531_v57, %v1526_v53 }
 0x116   : > { %1229 = vst.msk [vmem:[#allocation2 + $0xa0] sm:$0x1] %vm1223_vm2, %v5255_v55  ;;  %v1108_v32 = vmin.f32 %v1036_v27, 6.0  ;;  %v1579_v36 = vadd.f32 %v1577_v30, %v1573_v60  ;;  %v1584_v39 = vadd.f32 %v1582_v0, %v1578_v59  ;;  %v1636_v40 = vadd.f32 %v4107_v9, %v1634_v61 }
 0x117   : > { %1177 = vst.msk [vmem:[#allocation2 + $0xd0] sm:$0xff] %vm1150_vm1, %v1104_v63  ;;  %1175 = vst.msk [vmem:[#allocation2 + $0xc0] sm:$0xff] %vm1150_vm1, %v1102_v28  ;;  %v1106_v46 = vmin.f32 %v1034_v33, 6.0 }
 0x118   : > { %1248 = vst.msk [vmem:[#allocation2 + $0xd1] sm:$0x1] %vm1223_vm2, %v5255_v55  ;;  %1230 = vst.msk [vmem:[#allocation2 + $0xc0] sm:$0x1] %vm1223_vm2, %v5255_v55 }
 0x119   : > { %1176 = vst.msk [vmem:[#allocation2 + $0xc8] sm:$0xff] %vm1150_vm1, %v1103_v31  ;;  %1181 = vst.msk [vmem:[#allocation2 + $0xf0] sm:$0xff] %vm1150_vm1, %v1108_v32  ;;  %v3849_v11 = vld [vmem:[#allocation3 + $0x8] sm:$0xff]  }
 0x11a   : > { %v1530_v41 = vld [vmem:[#allocation2 + $0x88] sm:$0xff]  ;;  %1249 = vst.msk [vmem:[#allocation2 + $0xf1] sm:$0x1] %vm1223_vm2, %v5255_v55  ;;  %3746 = vmatmul.mubr.msk.bf16.vlgmr.msra.gmra.mxu1 %vm1150_vm1, %v3849_v11  ;;  %v4339_v11 = vpop.f32.mrf.mxu0 }
 0x11b   : > { %v1535_v42 = vld [vmem:[#allocation2 + $0x81] sm:$0xff]  ;;  %v1536_v45 = vld [vmem:[#allocation2 + $0x89] sm:$0xff]  ;;  %v1532_v47 = vmul.f32 %v4178_v26, %v1530_v41  ;;  %v1583_v54 = vmul.f32 %v4134_v37, %v1530_v41  ;;  %1179 = vst.msk [vmem:[#allocation2 + $0xe0] sm:$0xff] %vm1150_vm1, %v1106_v46  ;;  %v1635_v62 = vmul.f32 %v4098_v5, %v1530_v41 }
 0x11c   : > { %v1537_v49 = vmul.f32 %v4200_v50, %v1535_v42  ;;  %v1538_v51 = vmul.f32 %v4200_v50, %v1536_v45  ;;  %v1541_v53 = vld [vmem:[#allocation2 + $0x82] sm:$0xff]  ;;  %v1542_v48 = vld [vmem:[#allocation2 + $0x8a] sm:$0xff]  ;;  %v1588_v59 = vmul.f32 %v4151_v52, %v1535_v42  ;;  %v1589_v0 = vmul.f32 %v4151_v52, %v1536_v45  ;;  %1231 = vst.msk [vmem:[#allocation2 + $0xe0] sm:$0x1] %vm1223_vm2, %v5255_v55 }
 0x11d   : > { %v1543_v60 = vmul.f32 %v4205_v58, %v1541_v53  ;;  %v1544_v57 = vmul.f32 %v4205_v58, %v1542_v48  ;;  %v1534_v2 = vadd.f32 %v1532_v47, %v1527_v35  ;;  %v1585_v4 = vadd.f32 %v1583_v54, %v1579_v36  ;;  %v1599_v19 = vld [vmem:[#allocation2 + $0xa0] sm:$0xff]  ;;  %v1600_v44 = vld [vmem:[#allocation2 + $0xa8] sm:$0xff] }
 0x11e   : > { %v1539_v3 = vadd.f32 %v1537_v49, %v1533_v38  ;;  %v1594_v6 = vmul.f32 %v4162_v1, %v1541_v53  ;;  %v1590_v61 = vadd.f32 %v1588_v59, %v1584_v39  ;;  %v1595_v7 = vmul.f32 %v4162_v1, %v1542_v48  ;;  %v1605_v27 = vld [vmem:[#allocation2 + $0xa1] sm:$0xff]  ;;  %v1606_v36 = vld [vmem:[#allocation2 + $0xa9] sm:$0xff]  ;;  %v930_v39 = vpop.f32.mrf.mxu1 }
 0x11f   : > { %v1640_v8 = vmul.f32 %v4115_v14, %v1535_v42  ;;  %v1540_v13 = vadd.f32 %v1538_v51, %v1534_v2  ;;  %v1591_v16 = vadd.f32 %v1589_v0, %v1585_v4  ;;  %v1641_v17 = vmul.f32 %v4115_v14, %v1536_v45  ;;  %v1611_v38 = vld [vmem:[#allocation2 + $0xa2] sm:$0xff]  ;;  %v1612_v45 = vld [vmem:[#allocation2 + $0xaa] sm:$0xff]  ;;  %v3696_v4 = vpop.f32.mrf.mxu0 }
 0x120   : > { %v1545_v15 = vadd.f32 %v1543_v60, %v1539_v3  ;;  %v1596_v20 = vadd.f32 %v1594_v6, %v1590_v61  ;;  %v1637_v10 = vadd.f32 %v4107_v9, %v1635_v62  ;;  %v1646_v21 = vmul.f32 %v4121_v18, %v1541_v53 }
 0x121   : > { %v1642_v34 = vadd.f32 %v1640_v8, %v1636_v40  ;;  %v1546_v22 = vadd.f32 %v1544_v57, %v1540_v13  ;;  %v1597_v63 = vadd.f32 %v1595_v7, %v1591_v16  ;;  %v1647_v25 = vmul.f32 %v4121_v18, %v1542_v48 }
 0x122   : > { %v1547_v24 = vmax.f32 %v1545_v15, 0.0  ;;  %v1643_v28 = vadd.f32 %v1641_v17, %v1637_v10  ;;  %v1601_v23 = vmul.f32 %v4178_v26, %v1599_v19  ;;  %v1652_v30 = vmul.f32 %v4134_v37, %v1599_v19  ;;  %v1669_v17 = vld [vmem:[#allocation2 + $0xc0] sm:$0xff] }
 0x123   : > { %v1648_v29 = vadd.f32 %v1646_v21, %v1642_v34  ;;  %v1548_v31 = vmax.f32 %v1546_v22, 0.0  ;;  %v1704_v33 = vmul.f32 %v4098_v5, %v1599_v19  ;;  %v1602_v35 = vmul.f32 %v4178_v26, %v1600_v44 }
 0x124   : > { %v1549_v32 = vmin.f32 %v1547_v24, 6.0  ;;  %v1649_v40 = vadd.f32 %v1647_v25, %v1643_v28  ;;  %v1603_v41 = vadd.f32 %v1601_v23, %v1596_v20  ;;  %v1607_v42 = vmul.f32 %v4200_v50, %v1605_v27  ;;  %v850_v25 = vpop.f32.mrf.mxu0 }
 0x125   : > { %v4343_v46 = vadd.f32 %v4073_v43, %v930_v39  ;;  %v1550_v47 = vmin.f32 %v1548_v31, 6.0  ;;  %v1654_v51 = vadd.f32 %v1652_v30, %v1648_v29  ;;  %v1604_v53 = vadd.f32 %v1602_v35, %v1597_v63  ;;  %v1675_v30 = vld [vmem:[#allocation2 + $0xc1] sm:$0xff]  ;;  %v1676_v35 = vld [vmem:[#allocation2 + $0xc9] sm:$0xff] }
 0x126   : > { %v3492_v49 = vpack.c.bf16 %v1549_v32, %v1549_v32  ;;  %v1706_v48 = vadd.f32 %v4107_v9, %v1704_v33  ;;  %v1608_v54 = vmul.f32 %v4200_v50, %v1606_v36  ;;  %v1609_v60 = vadd.f32 %v1607_v42, %v1603_v41 }
 0x127   : > { %v1613_v57 = vmul.f32 %v4205_v58, %v1611_v38  ;;  %v3493_v59 = vpack.c.bf16 %v1550_v47, %v1550_v47  ;;  %v1614_v0 = vmul.f32 %v4205_v58, %v1612_v45  ;;  %v1653_v2 = vmul.f32 %v4134_v37, %v1600_v44  ;;  %v1681_v47 = vld [vmem:[#allocation2 + $0xc2] sm:$0xff] }
 0x128   : > { %1560 = vst.msk [vmem:[#allocation3 + $0x10] sm:$0xf] %vm1419_vm3, %v3492_v49  ;;  %v1658_v3 = vmul.f32 %v4151_v52, %v1605_v27  ;;  %v1610_v6 = vadd.f32 %v1608_v54, %v1604_v53  ;;  %v1659_v7 = vmul.f32 %v4151_v52, %v1606_v36  ;;  %v1664_v62 = vmul.f32 %v4162_v1, %v1611_v38 }
 0x129   : > { %v1615_v61 = vadd.f32 %v1613_v57, %v1609_v60  ;;  %1561 = vst.msk [vmem:[#allocation3 + $0x14] sm:$0xf] %vm1419_vm3, %v3493_v59  ;;  %v1655_v8 = vadd.f32 %v1653_v2, %v1649_v40  ;;  %v1705_v15 = vmul.f32 %v4098_v5, %v1600_v44  ;;  %v1710_v16 = vmul.f32 %v4115_v14, %v1605_v27  ;;  %v1670_v44 = vld [vmem:[#allocation2 + $0xc8] sm:$0xff] }
 0x12a   : > { %v1660_v13 = vadd.f32 %v1658_v3, %v1654_v51  ;;  %v1616_v19 = vadd.f32 %v1614_v0, %v1610_v6  ;;  %v1716_v10 = vmul.f32 %v4121_v18, %v1611_v38  ;;  %v1059_v34 = vmax.f32 %v4343_v46, 0.0  ;;  %v4378_v57 = vld [vmem:[#allocation2 + $0xca] sm:$0xff]  ;;  %v3719_v6 = vpop.f32.mrf.mxu1  ;;  %v4434_v46 = vld [vmem:[%s5250_s3] ss:$0 sm:$0xff] }
 0x12b   : > { %v1617_v20 = vmax.f32 %v1615_v61, 0.0  ;;  %v1661_v21 = vadd.f32 %v1659_v7, %v1655_v8  ;;  %v1707_v24 = vadd.f32 %v4107_v9, %v1705_v15  ;;  %v1712_v63 = vadd.f32 %v1710_v16, %v1706_v48  ;;  %v3699_v48 = vpop.f32.mrf.mxu0 }
 0x12c   : > { %v1666_v22 = vadd.f32 %v1664_v62, %v1660_v13  ;;  %v1618_v28 = vmax.f32 %v1616_v19, 0.0  ;;  %v1671_v23 = vmul.f32 %v4178_v26, %v1669_v17  ;;  %v4363_v27 = vadd.f32 %v4073_v43, %v4315_v56 }
 0x12d   : > { %v1619_v29 = vmin.f32 %v1617_v20, 6.0  ;;  %v1665_v31 = vmul.f32 %v4162_v1, %v1612_v45  ;;  %v1711_v32 = vmul.f32 %v4115_v14, %v1606_v36  ;;  %v1718_v33 = vadd.f32 %v1716_v10, %v1712_v63 }
 0x12e   : > { %v4369_v38 = vadd.f32 %v4330_v12, %v4073_v43  ;;  %v1620_v39 = vmin.f32 %v1618_v28, 6.0  ;;  %v1673_v41 = vadd.f32 %v1671_v23, %v1666_v22  ;;  %v1722_v42 = vmul.f32 %v4134_v37, %v1669_v17 }
 0x12f   : > { %v3494_v40 = vpack.c.bf16 %v1619_v29, %v1619_v29  ;;  %v1667_v49 = vadd.f32 %v1665_v31, %v1661_v21  ;;  %v1713_v51 = vadd.f32 %v1711_v32, %v1707_v24  ;;  %v1672_v56 = vmul.f32 %v4178_v26, %v1670_v44  ;;  %v4400_v29 = vld [vmem:[%s5249_s2] ss:$0 sm:$0xff] }
 0x130   : > { %v1677_v53 = vmul.f32 %v4200_v50, %v1675_v30  ;;  %v3495_v36 = vpack.c.bf16 %v1620_v39, %v1620_v39  ;;  %v1717_v54 = vmul.f32 %v4121_v18, %v1612_v45  ;;  %v1774_v12 = vmul.f32 %v4098_v5, %v1669_v17  ;;  %v3850_v59 = vld [vmem:[#allocation3 + $0x10] sm:$0xff]   ;;  %v863_v17 = vpop.f32.mrf.mxu0 }
 0x131   : > { %1630 = vst.msk [vmem:[#allocation3 + $0x18] sm:$0xf] %vm1419_vm3, %v3494_v40  ;;  %v1678_v60 = vmul.f32 %v4200_v50, %v1676_v35  ;;  %v1674_v0 = vadd.f32 %v1672_v56, %v1667_v49  ;;  %v1683_v3 = vmul.f32 %v4205_v58, %v1681_v47  ;;  %v1723_v4 = vmul.f32 %v4134_v37, %v1670_v44  ;;  %v1739_v49 = vld [vmem:[#allocation2 + $0xe0] sm:$0xff] }
 0x132   : > { %v1679_v2 = vadd.f32 %v1677_v53, %v1673_v41  ;;  %1631 = vst.msk [vmem:[#allocation3 + $0x1c] sm:$0xf] %vm1419_vm3, %v3495_v36  ;;  %v1724_v61 = vadd.f32 %v1722_v42, %v1718_v33  ;;  %v1728_v45 = vmul.f32 %v4151_v52, %v1675_v30  ;;  %v848_v7 = vadd.f32 %v4073_v43, %v4339_v11  ;;  %v3700_v33 = vpop.f32.mrf.mxu0 }
 0x133   : > { %3749 = vmatprep.mubr.msk.bf16.mxu1 %vm1150_vm1, %v3850_v59  ;;  %v4388_v62 = vadd.f32 %v3719_v6, %v4073_v43  ;;  %v1719_v8 = vadd.f32 %v1717_v54, %v1713_v51  ;;  %v1680_v13 = vadd.f32 %v1678_v60, %v1674_v0  ;;  %v1684_v15 = vmul.f32 %v4205_v58, %v4378_v57 }
 0x134   : > { %v1685_v16 = vadd.f32 %v1683_v3, %v1679_v2  ;;  %v1776_v19 = vadd.f32 %v4107_v9, %v1774_v12  ;;  %v1780_v20 = vmul.f32 %v4115_v14, %v1675_v30  ;;  %v1035_v10 = vmax.f32 %v4363_v27, 0.0  ;;  %v866_v12 = vpop.f32.mrf.mxu0 }
 0x135   : > { %v1686_v21 = vadd.f32 %v1684_v15, %v1680_v13  ;;  %v1725_v22 = vadd.f32 %v1723_v4, %v1719_v8  ;;  %v1040_v24 = vmax.f32 %v4369_v38, 0.0  ;;  %v1730_v43 = vadd.f32 %v1728_v45, %v1724_v61  ;;  %v4442_v13 = vld [vmem:[%s5250_s3 + $0x2] ss:$0 sm:$0xff] }
 0x136   : > { %v1687_v11 = vmax.f32 %v1685_v16, 0.0  ;;  %v1775_v63 = vmul.f32 %v4098_v5, %v1670_v44  ;;  %v1038_v28 = vmax.f32 %v848_v7, 0.0  ;;  %v851_v23 = vadd.f32 %v4400_v29, %v850_v25 }
 0x137   : > { %v1688_v31 = vmax.f32 %v1686_v21, 0.0  ;;  %v1729_v27 = vmul.f32 %v4151_v52, %v1676_v35  ;;  %v872_v32 = vadd.f32 %v4400_v29, %v3699_v48  ;;  %v1734_v38 = vmul.f32 %v4162_v1, %v1681_v47 }
 0x138   : > { %v1689_v30 = vmin.f32 %v1687_v11, 6.0  ;;  %v1781_v39 = vmul.f32 %v4115_v14, %v1676_v35  ;;  %v1782_v5 = vadd.f32 %v1780_v20, %v1776_v19  ;;  %v1786_v44 = vmul.f32 %v4121_v18, %v1681_v47 }
 0x139   : > { %v1690_v40 = vmin.f32 %v1688_v31, 6.0  ;;  %v1731_v42 = vadd.f32 %v1729_v27, %v1725_v22  ;;  %v1107_v51 = vmin.f32 %v1035_v10, 6.0  ;;  %v3851_v25 = vld [vmem:[#allocation3 + $0x18] sm:$0xff]   ;;  %v1736_v56 = vadd.f32 %v1734_v38, %v1730_v43 }
 0x13a   : > { %v3496_v41 = vpack.c.bf16 %v1689_v30, %v1689_v30  ;;  %v1777_v53 = vadd.f32 %v4107_v9, %v1775_v63  ;;  %v1112_v36 = vmin.f32 %v1040_v24, 6.0  ;;  %v1110_v54 = vmin.f32 %v1038_v28, 6.0  ;;  %3750 = vmatmul.mubr.msk.bf16.gmra.mxu1 %vm1150_vm1, %v3851_v25 }
 0x13b   : > { %v3497_v48 = vpack.c.bf16 %v1690_v40, %v1690_v40  ;;  %1180 = vst.msk [vmem:[#allocation2 + $0xe8] sm:$0xff] %vm1150_vm1, %v1107_v51  ;;  %v1039_v14 = vmax.f32 %v851_v23, 0.0  ;;  %v1044_v35 = vmax.f32 %v872_v32, 0.0  ;;  %v1788_v18 = vadd.f32 %v1786_v44, %v1782_v5 }
 0x13c   : > { %1700 = vst.msk [vmem:[#allocation3 + $0x20] sm:$0xf] %vm1419_vm3, %v3496_v41  ;;  %v1741_v47 = vmul.f32 %v4178_v26, %v1739_v49  ;;  %v864_v9 = vadd.f32 %v4400_v29, %v863_v17  ;;  %v1131_v0 = vmin.f32 %v1059_v34, 6.0  ;;  %v1792_v2 = vmul.f32 %v4134_v37, %v1739_v49 }
 0x13d   : > { %1185 = vst.msk [vmem:[#allocation2 + $0x110] sm:$0xff] %vm1150_vm1, %v1112_v36  ;;  %1183 = vst.msk [vmem:[#allocation2 + $0x100] sm:$0xff] %vm1150_vm1, %v1110_v54  ;;  %v1111_v60 = vmin.f32 %v1039_v14, 6.0  ;;  %v1116_v59 = vmin.f32 %v1044_v35, 6.0  ;;  %v867_v4 = vadd.f32 %v4400_v29, %v866_v12  ;;  %v1735_v6 = vmul.f32 %v4162_v1, %v4378_v57 }
 0x13e   : > { %1701 = vst.msk [vmem:[#allocation3 + $0x24] sm:$0xf] %vm1419_vm3, %v3497_v48  ;;  %v1042_v3 = vmax.f32 %v864_v9, 0.0  ;;  %v1783_v61 = vadd.f32 %v1781_v39, %v1777_v53  ;;  %v1064_v45 = vmax.f32 %v4388_v62, 0.0  ;;  %v1844_v34 = vmul.f32 %v4434_v46, %v1739_v49 }
 0x13f   : > { %1250 = vst.msk [vmem:[#allocation2 + $0x111] sm:$0x1] %vm1223_vm2, %v5255_v55  ;;  %1232 = vst.msk [vmem:[#allocation2 + $0x100] sm:$0x1] %vm1223_vm2, %v5255_v55  ;;  %v1043_v8 = vmax.f32 %v867_v4, 0.0  ;;  %v1787_v62 = vmul.f32 %v4442_v13, %v4378_v57  ;;  %v1743_v15 = vadd.f32 %v1741_v47, %v1736_v56  ;;  %v1737_v17 = vadd.f32 %v1735_v6, %v1731_v42 }
 0x140   : > { %1184 = vst.msk [vmem:[#allocation2 + $0x108] sm:$0xff] %vm1150_vm1, %v1111_v60  ;;  %1189 = vst.msk [vmem:[#allocation2 + $0x130] sm:$0xff] %vm1150_vm1, %v1116_v59  ;;  %v1114_v7 = vmin.f32 %v1042_v3, 6.0  ;;  %v1136_v16 = vmin.f32 %v1064_v45, 6.0  ;;  %v1794_v19 = vadd.f32 %v1792_v2, %v1788_v18  ;;  %v4456_v57 = vld [vmem:[%s5251_s4] ss:$0 sm:$0xff] }
 0x141   : > { %1204 = vst.msk [vmem:[#allocation2 + $0x1a8] sm:$0xff] %vm1150_vm1, %v1131_v0  ;;  %v1115_v11 = vmin.f32 %v1043_v8, 6.0  ;;  %v1789_v22 = vadd.f32 %v1787_v62, %v1783_v61  ;;  %v1846_v23 = vadd.f32 %v4456_v57, %v1844_v34  ;;  %v4471_v42 = vld [vmem:[%s5250_s3 + $0x1] ss:$0 sm:$0xff]  ;;  %v4484_v2 = vld [vmem:[%s5250_s3 + $0x3] ss:$0 sm:$0xff] }
 0x142   : > { %1251 = vst.msk [vmem:[#allocation2 + $0x131] sm:$0x1] %vm1223_vm2, %v5255_v55  ;;  %v1740_v20 = vld [vmem:[#allocation2 + $0xe8] sm:$0xff] }
 0x143   : > { %v1745_v10 = vld [vmem:[#allocation2 + $0xe1] sm:$0xff]  ;;  %v1746_v21 = vld [vmem:[#allocation2 + $0xe9] sm:$0xff]  ;;  %1187 = vst.msk [vmem:[#allocation2 + $0x120] sm:$0xff] %vm1150_vm1, %v1114_v7  ;;  %v1742_v24 = vmul.f32 %v4178_v26, %v1740_v20  ;;  %v1793_v28 = vmul.f32 %v4134_v37, %v1740_v20  ;;  %1209 = vst.msk [vmem:[#allocation2 + $0x1d0] sm:$0xff] %vm1150_vm1, %v1136_v16  ;;  %v1845_v41 = vmul.f32 %v4434_v46, %v1740_v20 }
 0x144   : > { %v1747_v43 = vmul.f32 %v4200_v50, %v1745_v10  ;;  %v1751_v63 = vld [vmem:[#allocation2 + $0xe2] sm:$0xff]  ;;  %1233 = vst.msk [vmem:[#allocation2 + $0x120] sm:$0x1] %vm1223_vm2, %v5255_v55  ;;  %v1748_v31 = vmul.f32 %v4200_v50, %v1746_v21  ;;  %v1752_v30 = vld [vmem:[#allocation2 + $0xea] sm:$0xff]  ;;  %v1798_v32 = vmul.f32 %v4151_v52, %v1745_v10  ;;  %1256 = vst.msk [vmem:[#allocation2 + $0x1d1] sm:$0x1] %vm1223_vm2, %v5255_v55 }
 0x145   : > { %v1753_v27 = vmul.f32 %v4205_v58, %v1751_v63  ;;  %1188 = vst.msk [vmem:[#allocation2 + $0x128] sm:$0xff] %vm1150_vm1, %v1115_v11  ;;  %v3852_v37 = vld [vmem:[#allocation3 + $0x20] sm:$0xff]   ;;  %v1744_v33 = vadd.f32 %v1742_v24, %v1737_v17  ;;  %v1795_v39 = vadd.f32 %v1793_v28, %v1789_v22  ;;  %v1799_v5 = vmul.f32 %v4151_v52, %v1746_v21  ;;  %v3703_v11 = vpop.f32.mrf.mxu0 }
 0x146   : > { %v1749_v38 = vadd.f32 %v1747_v43, %v1743_v15  ;;  %v1800_v44 = vadd.f32 %v1798_v32, %v1794_v19  ;;  %v1804_v40 = vmul.f32 %v4162_v1, %v1751_v63  ;;  %v1850_v49 = vmul.f32 %v4471_v42, %v1745_v10  ;;  %3753 = vmatprep.mubr.msk.bf16.mxu1 %vm1150_vm1, %v3852_v37  ;;  %v1809_v52 = vld [vmem:[#allocation2 + $0x100] sm:$0xff] }
 0x147   : > { %v1750_v51 = vadd.f32 %v1748_v31, %v1744_v33  ;;  %v1754_v25 = vmul.f32 %v4205_v58, %v1752_v30  ;;  %v1801_v53 = vadd.f32 %v1799_v5, %v1795_v39  ;;  %v1856_v48 = vmul.f32 %v4442_v13, %v1751_v63  ;;  %v1810_v14 = vld [vmem:[#allocation2 + $0x108] sm:$0xff]  ;;  %v4505_v63 = vld [vmem:[%s5250_s3 + $0x4] ss:$0 sm:$0xff]  ;;  %v879_v39 = vpop.f32.mrf.mxu0 }
 0x148   : > { %v1755_v56 = vadd.f32 %v1753_v27, %v1749_v38  ;;  %v1806_v36 = vadd.f32 %v1804_v40, %v1800_v44  ;;  %v1852_v54 = vadd.f32 %v1850_v49, %v1846_v23  ;;  %v1805_v18 = vmul.f32 %v4162_v1, %v1752_v30  ;;  %v1815_v9 = vld [vmem:[#allocation2 + $0x101] sm:$0xff]  ;;  %v4488_v45 = vld [vmem:[#allocation2 + $0x109] sm:$0xff] }
 0x149   : > { %v1756_v35 = vadd.f32 %v1754_v25, %v1750_v51  ;;  %v1847_v47 = vadd.f32 %v4456_v57, %v1845_v41  ;;  %v1851_v60 = vmul.f32 %v4471_v42, %v1746_v21  ;;  %v1811_v0 = vmul.f32 %v4178_v26, %v1809_v52  ;;  %v4490_v34 = vld [vmem:[#allocation2 + $0x102] sm:$0xff]  ;;  %v4493_v19 = vld [vmem:[#allocation2 + $0x10a] sm:$0xff] }
 0x14a   : > { %v1757_v12 = vmax.f32 %v1755_v56, 0.0  ;;  %v1858_v59 = vadd.f32 %v1856_v48, %v1852_v54  ;;  %v1862_v3 = vmul.f32 %v4484_v2, %v1809_v52  ;;  %v1807_v61 = vadd.f32 %v1805_v18, %v1801_v53  ;;  %v4515_v51 = vld [vmem:[%s5250_s3 + $0x5] ss:$0 sm:$0xff] }
 0x14b   : > { %v1758_v4 = vmax.f32 %v1756_v35, 0.0  ;;  %v1812_v1 = vmul.f32 %v4178_v26, %v1810_v14  ;;  %v1813_v7 = vadd.f32 %v1811_v0, %v1806_v36  ;;  %v1817_v8 = vmul.f32 %v4200_v50, %v1815_v9  ;;  %v1879_v44 = vld [vmem:[#allocation2 + $0x120] sm:$0xff] }
 0x14c   : > { %v1759_v6 = vmin.f32 %v1757_v12, 6.0  ;;  %v1853_v16 = vadd.f32 %v1851_v60, %v1847_v47  ;;  %v1864_v20 = vadd.f32 %v1862_v3, %v1858_v59  ;;  %v1818_v10 = vmul.f32 %v4200_v50, %v4488_v45  ;;  %v943_v50 = vpop.f32.mrf.mxu1  ;;  %v4524_v36 = vld [vmem:[#allocation2 + $0x1a0] sm:$0xff]  ;;  %v3704_v47 = vpop.f32.mrf.mxu0 }
 0x14d   : > { %v1760_v62 = vmin.f32 %v1758_v4, 6.0  ;;  %v1814_v17 = vadd.f32 %v1812_v1, %v1807_v61  ;;  %v1819_v21 = vadd.f32 %v1817_v8, %v1813_v7  ;;  %v1823_v26 = vmul.f32 %v4205_v58, %v4490_v34  ;;  %v4529_v12 = vld [vmem:[%s5250_s3 + $0x6] ss:$0 sm:$0xff] }
 0x14e   : > { %v3498_v15 = vpack.c.bf16 %v1759_v6, %v1759_v6  ;;  %v1857_v24 = vmul.f32 %v4442_v13, %v1752_v30  ;;  %v1863_v43 = vmul.f32 %v4484_v2, %v1810_v14  ;;  %v1868_v28 = vmul.f32 %v4505_v63, %v1815_v9  ;;  %v3720_v40 = vpop.f32.mrf.mxu1  ;;  %v4540_v1 = vld [vmem:[#allocation2 + $0x121] sm:$0xff] }
 0x14f   : > { %v3499_v22 = vpack.c.bf16 %v1760_v62, %v1760_v62  ;;  %v1820_v23 = vadd.f32 %v1818_v10, %v1814_v17  ;;  %v1824_v31 = vmul.f32 %v4205_v58, %v4493_v19  ;;  %v1825_v27 = vadd.f32 %v1823_v26, %v1819_v21  ;;  %v4547_v62 = vld [vmem:[#allocation2 + $0x129] sm:$0xff]  ;;  %v4551_v17 = vpop.f32.mrf.mxu0 }
 0x150   : > { %1770 = vst.msk [vmem:[#allocation3 + $0x28] sm:$0xf] %vm1419_vm3, %v3498_v15  ;;  %v1859_v32 = vadd.f32 %v1857_v24, %v1853_v16  ;;  %v1914_v30 = vmul.f32 %v4434_v46, %v1809_v52  ;;  %v1870_v38 = vadd.f32 %v1868_v28, %v1864_v20  ;;  %v1874_v58 = vmul.f32 %v4515_v51, %v4490_v34  ;;  %v946_v59 = vpop.f32.mrf.mxu1  ;;  %v4572_v28 = vld [vmem:[#allocation2 + $0x12a] sm:$0xff] }
 0x151   : > { %1771 = vst.msk [vmem:[#allocation3 + $0x2c] sm:$0xf] %vm1419_vm3, %v3499_v22  ;;  %v1826_v37 = vadd.f32 %v1824_v31, %v1820_v23  ;;  %v1827_v33 = vmax.f32 %v1825_v27, 0.0  ;;  %v1869_v56 = vmul.f32 %v4505_v63, %v4488_v45  ;;  %v1915_v53 = vmul.f32 %v4434_v46, %v1810_v14  ;;  %v4560_v22 = vld [vmem:[#allocation2 + $0x122] sm:$0xff] }
 0x152   : > { %v1865_v5 = vadd.f32 %v1863_v43, %v1859_v32  ;;  %v1916_v25 = vadd.f32 %v4456_v57, %v1914_v30  ;;  %v1920_v52 = vmul.f32 %v4471_v42, %v1815_v9  ;;  %v1876_v35 = vadd.f32 %v1874_v58, %v1870_v38  ;;  %v4535_v9 = vld [vmem:[#allocation2 + $0x128] sm:$0xff]  ;;  %v3723_v24 = vpop.f32.mrf.mxu1  ;;  %v4568_v43 = vld [vmem:[%s5250_s3 + $0x7] ss:$0 sm:$0xff] }
 0x153   : > { %v1828_v41 = vmax.f32 %v1826_v37, 0.0  ;;  %v1829_v49 = vmin.f32 %v1827_v33, 6.0  ;;  %v1881_v18 = vmul.f32 %v4529_v12, %v1879_v44  ;;  %v2264_v14 = vmul.f32 %v4434_v46, %v4524_v36  ;;  %v4575_v31 = vld [vmem:[#allocation2 + $0x1a8] sm:$0xff] }
 0x154   : > { %v1871_v60 = vadd.f32 %v1869_v56, %v1865_v5  ;;  %v1875_v4 = vmul.f32 %v4515_v51, %v4493_v19  ;;  %v1917_v6 = vadd.f32 %v4456_v57, %v1915_v53  ;;  %v1922_v61 = vadd.f32 %v1920_v52, %v1916_v25  ;;  %v4584_v38 = vld [vmem:[%s5250_s3 + $0x8] ss:$0 sm:$0xff]  ;;  %v3707_v5 = vpop.f32.mrf.mxu0  ;;  %v959_v25 = vpop.f32.mrf.mxu1  ;;  %v4594_v53 = vld [vmem:[#allocation2 + $0x1a9] sm:$0xff] }
 0x155   : > { %v1830_v54 = vmin.f32 %v1828_v41, 6.0  ;;  %v3500_v48 = vpack.c.bf16 %v1829_v49, %v1829_v49  ;;  %v4545_v7 = vmul.f32 %v4529_v12, %v4524_v36  ;;  %v1883_v8 = vadd.f32 %v1881_v18, %v1876_v35  ;;  %v4592_v56 = vld [vmem:[#allocation2 + $0x1a1] sm:$0xff] }
 0x156   : > { %v888_v15 = vadd.f32 %v4400_v29, %v3703_v11  ;;  %v944_v16 = vadd.f32 %v4400_v29, %v943_v50  ;;  %v1877_v20 = vadd.f32 %v1875_v4, %v1871_v60  ;;  %v1921_v10 = vmul.f32 %v4471_v42, %v4488_v45  ;;  %v4596_v52 = vld [vmem:[#allocation2 + $0x1a2] sm:$0xff]  ;;  %v895_v4 = vpop.f32.mrf.mxu0 }
 0x157   : > { %v3501_v0 = vpack.c.bf16 %v1830_v54, %v1830_v54  ;;  %1840 = vst.msk [vmem:[#allocation3 + $0x30] sm:$0xf] %vm1419_vm3, %v3500_v48  ;;  %v1926_v21 = vmul.f32 %v4442_v13, %v4490_v34  ;;  %v1882_v26 = vmul.f32 %v4529_v12, %v4535_v9  ;;  %v4563_v11 = vadd.f32 %v4456_v57, %v2264_v14 }
 0x158   : > { %v3853_v3 = vld [vmem:[#allocation3 + $0x28] sm:$0xff]   ;;  %v1887_v45 = vmul.f32 %v4568_v43, %v4540_v1  ;;  %v880_v34 = vadd.f32 %v4400_v29, %v879_v39  ;;  %v1923_v50 = vadd.f32 %v1921_v10, %v1917_v6  ;;  %v1888_v32 = vmul.f32 %v4568_v43, %v4547_v62 }
 0x159   : > { %1841 = vst.msk [vmem:[#allocation3 + $0x34] sm:$0xf] %vm1419_vm3, %v3501_v0  ;;  %3754 = vmatmul.mubr.msk.bf16.gmra.mxu1 %vm1150_vm1, %v3853_v3  ;;  %v1928_v23 = vadd.f32 %v1926_v21, %v1922_v61  ;;  %v1884_v27 = vadd.f32 %v1882_v26, %v1877_v20  ;;  %v1932_v30 = vmul.f32 %v4484_v2, %v1879_v44  ;;  %v1048_v49 = vmax.f32 %v888_v15, 0.0  ;;  %v3724_v15 = vpop.f32.mrf.mxu1 }
 0x15a   : > { %v1984_v37 = vmul.f32 %v4434_v46, %v1879_v44  ;;  %v1889_v33 = vadd.f32 %v1887_v45, %v1883_v8  ;;  %v1893_v39 = vmul.f32 %v4584_v38, %v4560_v22  ;;  %v1894_v41 = vmul.f32 %v4584_v38, %v4572_v28 }
 0x15b   : > { %v1890_v40 = vadd.f32 %v1888_v32, %v1884_v27  ;;  %v1062_v58 = vmax.f32 %v944_v16, 0.0  ;;  %v1927_v44 = vmul.f32 %v4442_v13, %v4493_v19  ;;  %v2265_v54 = vmul.f32 %v4434_v46, %v4575_v31  ;;  %v3708_v32 = vpop.f32.mrf.mxu0 }
 0x15c   : > { %v1895_v48 = vadd.f32 %v1893_v39, %v1889_v33  ;;  %v1046_v35 = vmax.f32 %v880_v34, 0.0  ;;  %v947_v47 = vadd.f32 %v4400_v29, %v946_v59  ;;  %v1934_v14 = vadd.f32 %v1932_v30, %v1928_v23 }
 0x15d   : > { %v1896_v18 = vadd.f32 %v1894_v41, %v1890_v40  ;;  %v1929_v0 = vadd.f32 %v1927_v44, %v1923_v50  ;;  %v4602_v3 = vadd.f32 %v4456_v57, %v1984_v37  ;;  %v2270_v6 = vmul.f32 %v4471_v42, %v4592_v56  ;;  %v962_v40 = vpop.f32.mrf.mxu1 }
 0x15e   : > { %v1897_v19 = vmax.f32 %v1895_v48, 0.0  ;;  %v4608_v61 = vmul.f32 %v4471_v42, %v4594_v53  ;;  %v4612_v8 = vmul.f32 %v4442_v13, %v4596_v52  ;;  %v4616_v16 = vadd.f32 %v4456_v57, %v2265_v54 }
 0x15f   : > { %v1898_v59 = vmax.f32 %v1896_v18, 0.0  ;;  %v1120_v10 = vmin.f32 %v1048_v49, 6.0  ;;  %v1134_v21 = vmin.f32 %v1062_v58, 6.0  ;;  %v1933_v45 = vmul.f32 %v4484_v2, %v4535_v9 }
 0x160   : > { %v3854_v60 = vld [vmem:[#allocation3 + $0x30] sm:$0xff]   ;;  %v1899_v20 = vmin.f32 %v1897_v19, 6.0  ;;  %v1938_v34 = vmul.f32 %v4505_v63, %v4540_v1  ;;  %v1118_v50 = vmin.f32 %v1046_v35, 6.0  ;;  %v1063_v27 = vmax.f32 %v947_v47, 0.0  ;;  %v898_v35 = vpop.f32.mrf.mxu0 }
 0x161   : > { %3757 = vmatprep.mubr.msk.bf16.mxu1 %vm1150_vm1, %v3854_v60  ;;  %v1900_v26 = vmin.f32 %v1898_v59, 6.0  ;;  %1193 = vst.msk [vmem:[#allocation2 + $0x150] sm:$0xff] %vm1150_vm1, %v1120_v10  ;;  %1207 = vst.msk [vmem:[#allocation2 + $0x1c0] sm:$0xff] %vm1150_vm1, %v1134_v21  ;;  %v1985_v37 = vmul.f32 %v4434_v46, %v4535_v9  ;;  %v883_v33 = vadd.f32 %v4400_v29, %v4551_v17 }
 0x162   : > { %v3502_v23 = vpack.c.bf16 %v1899_v20, %v1899_v20  ;;  %1252 = vst.msk [vmem:[#allocation2 + $0x151] sm:$0x1] %vm1223_vm2, %v5255_v55  ;;  %1238 = vst.msk [vmem:[#allocation2 + $0x1c0] sm:$0x1] %vm1223_vm2, %v5255_v55  ;;  %v968_v39 = vadd.f32 %v4400_v29, %v3723_v24  ;;  %v1135_v9 = vmin.f32 %v1063_v27, 6.0  ;;  %v904_v41 = vadd.f32 %v4400_v29, %v3707_v5 }
 0x163   : > { %v3503_v30 = vpack.c.bf16 %v1900_v26, %v1900_v26  ;;  %1191 = vst.msk [vmem:[#allocation2 + $0x140] sm:$0xff] %vm1150_vm1, %v1118_v50  ;;  %v960_v49 = vadd.f32 %v4400_v29, %v959_v25  ;;  %v1047_v58 = vmax.f32 %v883_v33, 0.0  ;;  %v896_v54 = vadd.f32 %v4400_v29, %v895_v4  ;;  %v4643_v25 = vld [vmem:[#allocation2 + $0x1aa] sm:$0xff] }
 0x164   : > { %1910 = vst.msk [vmem:[#allocation3 + $0x38] sm:$0xf] %vm1419_vm3, %v3502_v23  ;;  %v1068_v44 = vmax.f32 %v968_v39, 0.0  ;;  %v1052_v17 = vmax.f32 %v904_v41, 0.0  ;;  %v963_v48 = vadd.f32 %v4400_v29, %v962_v40  ;;  %v1940_v15 = vadd.f32 %v1938_v34, %v1934_v14 }
 0x165   : > { %1234 = vst.msk [vmem:[#allocation2 + $0x140] sm:$0x1] %vm1223_vm2, %v5255_v55  ;;  %v1066_v24 = vmax.f32 %v960_v49, 0.0  ;;  %v1119_v18 = vmin.f32 %v1047_v58, 6.0  ;;  %v1050_v60 = vmax.f32 %v896_v54, 0.0  ;;  %v899_v20 = vadd.f32 %v4400_v29, %v898_v35 }
 0x166   : > { %1911 = vst.msk [vmem:[#allocation3 + $0x3c] sm:$0xf] %vm1419_vm3, %v3503_v30  ;;  %v1140_v47 = vmin.f32 %v1068_v44, 6.0  ;;  %v1124_v19 = vmin.f32 %v1052_v17, 6.0  ;;  %v1067_v59 = vmax.f32 %v963_v48, 0.0  ;;  %v2272_v10 = vadd.f32 %v2270_v6, %v4563_v11 }
 0x167   : > { %1208 = vst.msk [vmem:[#allocation2 + $0x1c8] sm:$0xff] %vm1150_vm1, %v1135_v9  ;;  %v1138_v5 = vmin.f32 %v1066_v24, 6.0  ;;  %1192 = vst.msk [vmem:[#allocation2 + $0x148] sm:$0xff] %vm1150_vm1, %v1119_v18  ;;  %v1122_v4 = vmin.f32 %v1050_v60, 6.0  ;;  %v1935_v21 = vadd.f32 %v1933_v45, %v1929_v0  ;;  %v1944_v14 = vmul.f32 %v4515_v51, %v4560_v22 }
 0x168   : > { %1213 = vst.msk [vmem:[#allocation2 + $0x1f0] sm:$0xff] %vm1150_vm1, %v1140_v47  ;;  %1197 = vst.msk [vmem:[#allocation2 + $0x170] sm:$0xff] %vm1150_vm1, %v1124_v19  ;;  %v1139_v26 = vmin.f32 %v1067_v59, 6.0  ;;  %v1987_v34 = vadd.f32 %v4456_v57, %v1985_v37  ;;  %v1990_v50 = vmul.f32 %v4471_v42, %v4540_v1  ;;  %v1051_v0 = vmax.f32 %v899_v20, 0.0 }
 0x169   : > { %1257 = vst.msk [vmem:[#allocation2 + $0x1f1] sm:$0x1] %vm1223_vm2, %v5255_v55  ;;  %v4658_v23 = vld [vmem:[#allocation2 + $0x1c0] sm:$0xff]  ;;  %1253 = vst.msk [vmem:[#allocation2 + $0x171] sm:$0x1] %vm1223_vm2, %v5255_v55  ;;  %v4669_v6 = vmul.f32 %v4484_v2, %v4524_v36  ;;  %v2273_v1 = vadd.f32 %v4608_v61, %v4616_v16  ;;  %v2277_v45 = vmul.f32 %v4442_v13, %v4643_v25 }
 0x16a   : > { %1211 = vst.msk [vmem:[#allocation2 + $0x1e0] sm:$0xff] %vm1150_vm1, %v1138_v5  ;;  %5263 = vst [vmem:[#allocation4_spill] sm:$0xff] %v4658_v23  ;;  %v1939_v27 = vmul.f32 %v4505_v63, %v4547_v62  ;;  %v1946_v30 = vadd.f32 %v1944_v14, %v1940_v15  ;;  %v1991_v36 = vmul.f32 %v4471_v42, %v4547_v62  ;;  %v1123_v61 = vmin.f32 %v1051_v0, 6.0  ;;  %v3711_v5 = vpop.f32.mrf.mxu0 }
 0x16b   : > { %1239 = vst.msk [vmem:[#allocation2 + $0x1e0] sm:$0x1] %vm1223_vm2, %v5255_v55  ;;  %v4686_v16 = vmul.f32 %v4529_v12, %v4575_v31  ;;  %v2278_v33 = vadd.f32 %v4612_v8, %v2272_v10  ;;  %v2282_v40 = vmul.f32 %v4484_v2, %v4658_v23  ;;  %v4694_v9 = vmul.f32 %v4568_v43, %v4592_v56 }
 0x16c   : > { %v4660_v11 = vld [vmem:[#allocation2 + $0x140] sm:$0xff]  ;;  %1195 = vst.msk [vmem:[#allocation2 + $0x160] sm:$0xff] %vm1150_vm1, %v1122_v4  ;;  %1212 = vst.msk [vmem:[#allocation2 + $0x1e8] sm:$0xff] %vm1150_vm1, %v1139_v26  ;;  %v1941_v39 = vadd.f32 %v1939_v27, %v1935_v21  ;;  %v4698_v62 = vmul.f32 %v4568_v43, %v4594_v53  ;;  %v1992_v41 = vadd.f32 %v1990_v50, %v4602_v3 }
 0x16d   : > { %1235 = vst.msk [vmem:[#allocation2 + $0x160] sm:$0x1] %vm1223_vm2, %v5255_v55  ;;  %v3855_v32 = vld [vmem:[#allocation3 + $0x38] sm:$0xff]   ;;  %v1951_v37 = vmul.f32 %v4529_v12, %v4660_v11  ;;  %v1993_v49 = vadd.f32 %v1991_v36, %v1987_v34  ;;  %v4708_v44 = vmul.f32 %v4584_v38, %v4596_v52  ;;  %v4712_v54 = vmul.f32 %v4584_v38, %v4643_v25  ;;  %v3727_v34 = vpop.f32.mrf.mxu1 }
 0x16e   : > { %3758 = vmatmul.mubr.msk.bf16.gmra.mxu1 %vm1150_vm1, %v3855_v32  ;;  %v4701_v58 = vld [vmem:[#allocation2 + $0x1c8] sm:$0xff]  ;;  %1196 = vst.msk [vmem:[#allocation2 + $0x168] sm:$0xff] %vm1150_vm1, %v1123_v61  ;;  %v4716_v17 = vmul.f32 %v4484_v2, %v4575_v31  ;;  %v1945_v3 = vmul.f32 %v4515_v51, %v4572_v28  ;;  %v2279_v35 = vadd.f32 %v2277_v45, %v2273_v1 }
 0x16f   : > { %5264 = vst [vmem:[#allocation5_spill] sm:$0xff] %v4701_v58  ;;  %v4703_v8 = vld [vmem:[#allocation2 + $0x1c1] sm:$0xff]  ;;  %v1996_v18 = vmul.f32 %v4442_v13, %v4560_v22  ;;  %v1997_v47 = vmul.f32 %v4442_v13, %v4572_v28  ;;  %v1953_v60 = vadd.f32 %v1951_v37, %v1946_v30  ;;  %v4728_v19 = vld [vmem:[#allocation2 + $0x1c9] sm:$0xff]  ;;  %v2284_v59 = vadd.f32 %v2282_v40, %v2278_v33 }
 0x170   : > { %5265 = vst [vmem:[#allocation6_spill] sm:$0xff] %v4703_v8  ;;  %v4720_v24 = vld [vmem:[#allocation2 + $0x148] sm:$0xff]  ;;  %5266 = vst [vmem:[#allocation7_spill] sm:$0xff] %v4728_v19  ;;  %v1947_v31 = vadd.f32 %v1945_v3, %v1941_v39  ;;  %v2283_v15 = vmul.f32 %v4484_v2, %v4701_v58  ;;  %v2288_v4 = vmul.f32 %v4505_v63, %v4703_v8 }
 0x171   : > { %v4722_v48 = vld [vmem:[#allocation2 + $0x141] sm:$0xff]  ;;  %v4734_v20 = vld [vmem:[#allocation2 + $0x149] sm:$0xff]  ;;  %v1998_v22 = vadd.f32 %v1996_v18, %v1992_v41  ;;  %v1999_v21 = vadd.f32 %v1997_v47, %v1993_v49  ;;  %v1952_v28 = vmul.f32 %v4529_v12, %v4720_v24  ;;  %v2334_v50 = vmul.f32 %v4434_v46, %v4658_v23 }
 0x172   : > { %v4736_v10 = vld [vmem:[#allocation2 + $0x142] sm:$0xff]  ;;  %v1957_v14 = vmul.f32 %v4568_v43, %v4722_v48  ;;  %v2289_v0 = vmul.f32 %v4505_v63, %v4728_v19  ;;  %v4748_v1 = vld [vmem:[#allocation2 + $0x14a] sm:$0xff]  ;;  %v4751_v45 = vadd.f32 %v4400_v29, %v3727_v34  ;;  %v4754_v27 = vadd.f32 %v4400_v29, %v3711_v5 }
 0x173   : > { %v4738_v26 = vld [vmem:[#allocation2 + $0x1c2] sm:$0xff]  ;;  %v1954_v32 = vadd.f32 %v1952_v28, %v1947_v31  ;;  %v1958_v30 = vmul.f32 %v4568_v43, %v4734_v20  ;;  %v1963_v37 = vmul.f32 %v4584_v38, %v4736_v10  ;;  %v4760_v61 = vld [vmem:[#allocation2 + $0x1ca] sm:$0xff]  ;;  %v2285_v33 = vadd.f32 %v2283_v15, %v2279_v35 }
 0x174   : > { %5267 = vst [vmem:[#allocation8_spill] sm:$0xff] %v4738_v26  ;;  %v1959_v36 = vadd.f32 %v1957_v14, %v1953_v60  ;;  %5268 = vst [vmem:[#allocation9_spill] sm:$0xff] %v4760_v61  ;;  %v2290_v39 = vadd.f32 %v2288_v4, %v2284_v59  ;;  %v2294_v40 = vmul.f32 %v4515_v51, %v4738_v26  ;;  %v975_v60 = vpop.f32.mrf.mxu1  ;;  %v4782_v34 = vld [vmem:[#allocation2 + $0x1e0] sm:$0xff] }
 0x175   : > { %v2335_v41 = vmul.f32 %v4434_v46, %v4701_v58  ;;  %v2002_v49 = vmul.f32 %v4484_v2, %v4660_v11  ;;  %v1960_v3 = vadd.f32 %v1958_v30, %v1954_v32  ;;  %v1964_v18 = vmul.f32 %v4584_v38, %v4748_v1  ;;  %v4804_v55 = vld [vmem:[#allocation2 + $0x1e2] sm:$0xff] }
 0x176   : > { %v1965_v47 = vadd.f32 %v1963_v37, %v1959_v36  ;;  %v2336_v5 = vadd.f32 %v4456_v57, %v2334_v50  ;;  %v2054_v35 = vmul.f32 %v4434_v46, %v4660_v11  ;;  %v2340_v31 = vmul.f32 %v4471_v42, %v4703_v8  ;;  %v4834_v23 = vld [vmem:[#allocation2 + $0x168] sm:$0xff] }
 0x177   : > { %v4776_v59 = vadd.f32 %v4400_v29, %v975_v60  ;;  %v2295_v15 = vmul.f32 %v4515_v51, %v4760_v61  ;;  %v1966_v4 = vadd.f32 %v1964_v18, %v1960_v3  ;;  %v2003_v14 = vmul.f32 %v4484_v2, %v4720_v24 }
 0x178   : > { %v1967_v28 = vmax.f32 %v1965_v47, 0.0  ;;  %v2291_v50 = vadd.f32 %v2289_v0, %v2285_v33  ;;  %v2296_v32 = vadd.f32 %v2294_v40, %v2290_v39  ;;  %v2337_v11 = vadd.f32 %v4456_v57, %v2335_v41  ;;  %v4796_v41 = vld [vmem:[#allocation2 + $0x1e8] sm:$0xff] }
 0x179   : > { %v2341_v30 = vmul.f32 %v4471_v42, %v4728_v19  ;;  %v2004_v36 = vadd.f32 %v2002_v49, %v1998_v22  ;;  %v1968_v29 = vmax.f32 %v1966_v4, 0.0  ;;  %v2008_v60 = vmul.f32 %v4505_v63, %v4722_v48  ;;  %v4798_v49 = vld [vmem:[#allocation2 + $0x1e1] sm:$0xff] }
 0x17a   : > { %v1969_v37 = vmin.f32 %v1967_v28, 6.0  ;;  %v2056_v3 = vadd.f32 %v4456_v57, %v2054_v35  ;;  %v2342_v18 = vadd.f32 %v2340_v31, %v2336_v5  ;;  %v2346_v47 = vmul.f32 %v4442_v13, %v4738_v26  ;;  %v4802_v31 = vld [vmem:[#allocation2 + $0x1e9] sm:$0xff] }
 0x17b   : > { %v2301_v0 = vmul.f32 %v4529_v12, %v4782_v34  ;;  %v2347_v33 = vmul.f32 %v4442_v13, %v4760_v61  ;;  %v1970_v39 = vmin.f32 %v1968_v29, 6.0  ;;  %v2005_v22 = vadd.f32 %v2003_v14, %v1999_v21 }
 0x17c   : > { %v3504_v40 = vpack.c.bf16 %v1969_v37, %v1969_v37  ;;  %v2297_v4 = vadd.f32 %v2295_v15, %v2291_v50  ;;  %v2343_v28 = vadd.f32 %v2341_v30, %v2337_v11  ;;  %v2055_v5 = vmul.f32 %v4434_v46, %v4720_v24  ;;  %v4811_v15 = vld [vmem:[#allocation2 + $0x1ea] sm:$0xff]  ;;  %v2019_v50 = vld [vmem:[#allocation2 + $0x160] sm:$0xff] }
 0x17d   : > { %v2303_v35 = vadd.f32 %v2301_v0, %v2296_v32  ;;  %v3505_v26 = vpack.c.bf16 %v1970_v39, %v1970_v39  ;;  %v2009_v29 = vmul.f32 %v4505_v63, %v4734_v20  ;;  %v2010_v37 = vadd.f32 %v2008_v60, %v2004_v36 }
 0x17e   : > { %v2060_v21 = vmul.f32 %v4471_v42, %v4722_v48  ;;  %1980 = vst.msk [vmem:[#allocation3 + $0x40] sm:$0xf] %vm1419_vm3, %v3504_v40  ;;  %v2348_v14 = vadd.f32 %v2346_v47, %v2342_v18  ;;  %v2014_v24 = vmul.f32 %v4515_v51, %v4736_v10  ;;  %v2302_v32 = vmul.f32 %v4529_v12, %v4796_v41  ;;  %v3728_v40 = vpop.f32.mrf.mxu1 }
 0x17f   : > { %v2307_v11 = vmul.f32 %v4568_v43, %v4798_v49  ;;  %v2011_v30 = vadd.f32 %v2009_v29, %v2005_v22  ;;  %v2015_v36 = vmul.f32 %v4515_v51, %v4748_v1  ;;  %1981 = vst.msk [vmem:[#allocation3 + $0x44] sm:$0xf] %vm1419_vm3, %v3505_v26  ;;  %v2308_v48 = vmul.f32 %v4568_v43, %v4802_v31 }
 0x180   : > { %v2313_v60 = vmul.f32 %v4584_v38, %v4804_v55  ;;  %v2057_v18 = vadd.f32 %v4456_v57, %v2055_v5  ;;  %v2304_v47 = vadd.f32 %v2302_v32, %v2297_v4  ;;  %v2314_v39 = vmul.f32 %v4584_v38, %v4811_v15 }
 0x181   : > { %v2309_v0 = vadd.f32 %v2307_v11, %v2303_v35  ;;  %v2016_v22 = vadd.f32 %v2014_v24, %v2010_v37  ;;  %v2062_v29 = vadd.f32 %v2060_v21, %v2056_v3  ;;  %v2352_v61 = vmul.f32 %v4484_v2, %v4782_v34 }
 0x182   : > { %v2021_v26 = vmul.f32 %v4529_v12, %v2019_v50  ;;  %v2061_v19 = vmul.f32 %v4471_v42, %v4734_v20  ;;  %v2310_v8 = vadd.f32 %v2308_v48, %v2304_v47  ;;  %v2349_v5 = vadd.f32 %v2347_v33, %v2343_v28  ;;  %v4842_v20 = vld [vmem:[#allocation2 + $0x161] sm:$0xff]  ;;  %v4844_v48 = vld [vmem:[#allocation2 + $0x169] sm:$0xff] }
 0x183   : > { %v2315_v58 = vadd.f32 %v2313_v60, %v2309_v0  ;;  %v2017_v35 = vadd.f32 %v2015_v36, %v2011_v30  ;;  %v2066_v37 = vmul.f32 %v4442_v13, %v4736_v10  ;;  %v2067_v24 = vmul.f32 %v4442_v13, %v4748_v1  ;;  %v4846_v60 = vpop.f32.mrf.mxu1  ;;  %v4850_v30 = vld [vmem:[#allocation2 + $0x162] sm:$0xff]  ;;  %v4855_v36 = vld [vmem:[#allocation2 + $0x16a] sm:$0xff] }
 0x184   : > { %v2063_v21 = vadd.f32 %v2061_v19, %v2057_v18  ;;  %v2316_v32 = vadd.f32 %v2314_v39, %v2310_v8  ;;  %v2354_v33 = vadd.f32 %v2352_v61, %v2348_v14  ;;  %v2023_v28 = vadd.f32 %v2021_v26, %v2016_v22  ;;  %v911_v26 = vpop.f32.mrf.mxu0 }
 0x185   : > { %v2317_v11 = vmax.f32 %v2315_v58, 0.0  ;;  %v2068_v47 = vadd.f32 %v2066_v37, %v2062_v29  ;;  %v2022_v10 = vmul.f32 %v4529_v12, %v4834_v23  ;;  %v2404_v19 = vmul.f32 %v4434_v46, %v4782_v34  ;;  %v3731_v37 = vpop.f32.mrf.mxu1 }
 0x186   : > { %v2072_v8 = vmul.f32 %v4484_v2, %v2019_v50  ;;  %v2318_v58 = vmax.f32 %v2316_v32, 0.0  ;;  %v3856_v18 = vld [vmem:[#allocation3 + $0x40] sm:$0xff]   ;;  %v2124_v0 = vmul.f32 %v4434_v46, %v2019_v50  ;;  %v2027_v61 = vmul.f32 %v4568_v43, %v4842_v20 }
 0x187   : > { %v2319_v1 = vmin.f32 %v2317_v11, 6.0  ;;  %v2024_v39 = vadd.f32 %v2022_v10, %v2017_v35  ;;  %v2028_v14 = vmul.f32 %v4568_v43, %v4844_v48  ;;  %v2353_v34 = vmul.f32 %v4484_v2, %v4796_v41  ;;  %3761 = vmatprep.mubr.msk.bf16.mxu1 %vm1150_vm1, %v3856_v18 }
 0x188   : > { %v2320_v40 = vmin.f32 %v2318_v58, 6.0  ;;  %v2358_v29 = vmul.f32 %v4505_v63, %v4798_v49  ;;  %v2029_v50 = vadd.f32 %v2027_v61, %v2023_v28  ;;  %v2033_v32 = vmul.f32 %v4584_v38, %v4850_v30 }
 0x189   : > { %v3514_v22 = vpack.c.bf16 %v2319_v1, %v2319_v1  ;;  %v2030_v35 = vadd.f32 %v2028_v14, %v2024_v39  ;;  %v2034_v11 = vmul.f32 %v4584_v38, %v4855_v36  ;;  %v2406_v10 = vadd.f32 %v4456_v57, %v2404_v19 }
 0x18a   : > { %v3515_v58 = vpack.c.bf16 %v2320_v40, %v2320_v40  ;;  %v2405_v1 = vmul.f32 %v4434_v46, %v4796_v41  ;;  %v2410_v3 = vmul.f32 %v4471_v42, %v4798_v49  ;;  %v2069_v18 = vadd.f32 %v2067_v24, %v2063_v21  ;;  %v3712_v49 = vpop.f32.mrf.mxu0  ;;  %v991_v21 = vpop.f32.mrf.mxu1 }
 0x18b   : > { %2330 = vst.msk [vmem:[#allocation3 + $0x68] sm:$0xf] %vm1419_vm3, %v3514_v22  ;;  %v4877_v28 = vadd.f32 %v2072_v8, %v2068_v47  ;;  %v2035_v39 = vadd.f32 %v2033_v32, %v2029_v50  ;;  %v2036_v61 = vadd.f32 %v2034_v11, %v2030_v35  ;;  %v4880_v14 = vadd.f32 %v4456_v57, %v2124_v0 }
 0x18c   : > { %v2359_v19 = vmul.f32 %v4505_v63, %v4802_v31  ;;  %v2364_v40 = vmul.f32 %v4515_v51, %v4804_v55  ;;  %2331 = vst.msk [vmem:[#allocation3 + $0x6c] sm:$0xf] %vm1419_vm3, %v3515_v58  ;;  %v2073_v41 = vmul.f32 %v4484_v2, %v4834_v23  ;;  %v2355_v24 = vadd.f32 %v2353_v34, %v2349_v5 }
 0x18d   : > { %v2360_v47 = vadd.f32 %v2358_v29, %v2354_v33  ;;  %v2037_v8 = vmax.f32 %v2035_v39, 0.0  ;;  %v2038_v22 = vmax.f32 %v2036_v61, 0.0  ;;  %v2407_v0 = vadd.f32 %v4456_v57, %v2405_v1 }
 0x18e   : > { %v2411_v50 = vmul.f32 %v4471_v42, %v4802_v31  ;;  %v2412_v35 = vadd.f32 %v2410_v3, %v2406_v10  ;;  %v2416_v32 = vmul.f32 %v4442_v13, %v4804_v55  ;;  %v2078_v4 = vmul.f32 %v4505_v63, %v4842_v20  ;;  %v914_v3 = vpop.f32.mrf.mxu0  ;;  %v3732_v10 = vpop.f32.mrf.mxu1 }
 0x18f   : > { %v2039_v11 = vmin.f32 %v2037_v8, 6.0  ;;  %v2040_v58 = vmin.f32 %v2038_v22, 6.0  ;;  %v5269_v49 = vmax.f32 %v4751_v45, 0.0  ;;  %v2075_v33 = vadd.f32 %v2073_v41, %v2069_v18  ;;  %v3875_v45 = vld [vmem:[%s5249_s2] ss:$0 sm:$0xff] }
 0x190   : > { %v2125_v34 = vmul.f32 %v4434_v46, %v4834_v23  ;;  %v5270_v29 = vmax.f32 %v4754_v27, 0.0  ;;  %v1070_v31 = vmax.f32 %v4776_v59, 0.0  ;;  %v912_v61 = vadd.f32 %v3875_v45, %v911_v26  ;;  %v994_v22 = vpop.f32.mrf.mxu1 }
 0x191   : > { %v1144_v5 = vmin.f32 %v5269_v49, 6.0  ;;  %v3506_v55 = vpack.c.bf16 %v2039_v11, %v2039_v11  ;;  %v3507_v39 = vpack.c.bf16 %v2040_v58, %v2040_v58  ;;  %v2130_v18 = vmul.f32 %v4471_v42, %v4842_v20 }
 0x192   : > { %v1128_v1 = vmin.f32 %v5270_v29, 6.0  ;;  %v5271_v46 = vmov 0.0   ;;  %v1142_v23 = vmin.f32 %v1070_v31, 6.0  ;;  %v979_v27 = vadd.f32 %v3875_v45, %v4846_v60 }
 0x193   : > { %1217 = vst.msk [vmem:[#allocation2 + $0x210] sm:$0xff] %vm1150_vm1, %v1144_v5  ;;  %v1054_v59 = vmax.f32 %v912_v61, 0.0  ;;  %v915_v26 = vadd.f32 %v3875_v45, %v914_v3  ;;  %v1000_v41 = vadd.f32 %v3875_v45, %v3731_v37  ;;  %v992_v8 = vadd.f32 %v3875_v45, %v991_v21 }
 0x194   : > { %1258 = vst.msk [vmem:[#allocation2 + $0x211] sm:$0x1] %vm1223_vm2, %v5271_v46  ;;  %v1071_v20 = vmax.f32 %v979_v27, 0.0  ;;  %v2127_v29 = vadd.f32 %v4456_v57, %v2125_v34  ;;  %v995_v37 = vadd.f32 %v3875_v45, %v994_v22  ;;  %v2361_v3 = vadd.f32 %v2359_v19, %v2355_v24 }
 0x195   : > { %1201 = vst.msk [vmem:[#allocation2 + $0x190] sm:$0xff] %vm1150_vm1, %v1128_v1  ;;  %1215 = vst.msk [vmem:[#allocation2 + $0x200] sm:$0xff] %vm1150_vm1, %v1142_v23  ;;  %v1126_v11 = vmin.f32 %v1054_v59, 6.0  ;;  %v1055_v60 = vmax.f32 %v915_v26, 0.0  ;;  %v1076_v58 = vmax.f32 %v1000_v41, 0.0  ;;  %v1074_v5 = vmax.f32 %v992_v8, 0.0 }
 0x196   : > { %2050 = vst.msk [vmem:[#allocation3 + $0x48] sm:$0xf] %vm1419_vm3, %v3506_v55  ;;  %2051 = vst.msk [vmem:[#allocation3 + $0x4c] sm:$0xf] %vm1419_vm3, %v3507_v39  ;;  %v1143_v49 = vmin.f32 %v1071_v20, 6.0  ;;  %v2365_v21 = vmul.f32 %v4515_v51, %v4811_v15  ;;  %v2366_v55 = vadd.f32 %v2364_v40, %v2360_v47  ;;  %v2079_v39 = vmul.f32 %v4505_v63, %v4844_v48 }
 0x197   : > { %1254 = vst.msk [vmem:[#allocation2 + $0x191] sm:$0x1] %vm1223_vm2, %v5271_v46  ;;  %1240 = vst.msk [vmem:[#allocation2 + $0x200] sm:$0x1] %vm1223_vm2, %v5271_v46  ;;  %v1127_v1 = vmin.f32 %v1055_v60, 6.0  ;;  %v1148_v31 = vmin.f32 %v1076_v58, 6.0  ;;  %v2131_v57 = vmul.f32 %v4471_v42, %v4844_v48  ;;  %v2413_v24 = vadd.f32 %v2411_v50, %v2407_v0 }
 0x198   : > { %1199 = vst.msk [vmem:[#allocation2 + $0x180] sm:$0xff] %vm1150_vm1, %v1126_v11  ;;  %1216 = vst.msk [vmem:[#allocation2 + $0x208] sm:$0xff] %vm1150_vm1, %v1143_v49  ;;  %v1146_v10 = vmin.f32 %v1074_v5, 6.0  ;;  %v1075_v19 = vmax.f32 %v995_v37, 0.0  ;;  %v2417_v34 = vmul.f32 %v4442_v13, %v4811_v15  ;;  %v2080_v45 = vadd.f32 %v2078_v4, %v4877_v28  ;;  %v4978_v60 = vld [vmem:[%s5250_s3] ss:$0 sm:$0xff] }
 0x199   : > { %1236 = vst.msk [vmem:[#allocation2 + $0x180] sm:$0x1] %vm1223_vm2, %v5271_v46  ;;  %v2132_v61 = vadd.f32 %v2130_v18, %v4880_v14  ;;  %v2418_v42 = vadd.f32 %v2416_v32, %v2412_v35  ;;  %v2081_v48 = vadd.f32 %v2079_v39, %v2075_v33  ;;  %v2133_v47 = vadd.f32 %v2131_v57, %v2127_v29  ;;  %v4957_v14 = vld [vmem:[%s5250_s3 + $0x2] ss:$0 sm:$0xff] }
 0x19a   : > { %1200 = vst.msk [vmem:[#allocation2 + $0x188] sm:$0xff] %vm1150_vm1, %v1127_v1  ;;  %1221 = vst.msk [vmem:[#allocation2 + $0x230] sm:$0xff] %vm1150_vm1, %v1148_v31  ;;  %v1147_v13 = vmin.f32 %v1075_v19, 6.0  ;;  %v4946_v15 = vmul.f32 %v4505_v63, %v4592_v56  ;;  %v4950_v4 = vmul.f32 %v4505_v63, %v4594_v53  ;;  %v2084_v28 = vmul.f32 %v4515_v51, %v4850_v30 }
 0x19b   : > { %1259 = vst.msk [vmem:[#allocation2 + $0x231] sm:$0x1] %vm1223_vm2, %v5271_v46  ;;  %v2136_v0 = vmul.f32 %v4957_v14, %v4850_v30  ;;  %v2085_v56 = vmul.f32 %v4515_v51, %v4855_v36  ;;  %v2137_v53 = vmul.f32 %v4957_v14, %v4855_v36  ;;  %v2367_v33 = vadd.f32 %v2365_v21, %v2361_v3 }
 0x19c   : > { %1219 = vst.msk [vmem:[#allocation2 + $0x220] sm:$0xff] %vm1150_vm1, %v1146_v10  ;;  %1271 = vst.msk [vmem:[#allocation2 + $0x230] sm:$0xff] %vm1150_vm1, %v5271_v46  ;;  %v2419_v30 = vadd.f32 %v2417_v34, %v2413_v24  ;;  %v2086_v18 = vadd.f32 %v2084_v28, %v2080_v45  ;;  %v3879_v34 = vld [vmem:[%s5250_s3 + $0x3] ss:$0 sm:$0xff] }
 0x19d   : > { %v3857_v40 = vld [vmem:[#allocation3 + $0x48] sm:$0xff]   ;;  %1241 = vst.msk [vmem:[#allocation2 + $0x220] sm:$0x1] %vm1223_vm2, %v5271_v46  ;;  %v2138_v23 = vadd.f32 %v2136_v0, %v2132_v61  ;;  %v2087_v27 = vadd.f32 %v2085_v56, %v2081_v48  ;;  %v2139_v59 = vadd.f32 %v2137_v53, %v2133_v47 }
 0x19e   : > { %v2369_v50 = vld [vmem:[#allocation2 + $0x200] sm:$0xff]  ;;  %1269 = vst.msk [vmem:[#allocation2 + $0x220] sm:$0xff] %vm1150_vm1, %v5271_v46  ;;  %3762 = vmatmul.mubr.msk.bf16.gmra.mxu1 %vm1150_vm1, %v3857_v40  ;;  %1220 = vst.msk [vmem:[#allocation2 + $0x228] sm:$0xff] %vm1150_vm1, %v1147_v13 }
 0x19f   : > { %v2371_v35 = vmul.f32 %v4529_v12, %v2369_v50  ;;  %v2422_v32 = vmul.f32 %v4484_v2, %v2369_v50  ;;  %1270 = vst.msk [vmem:[#allocation2 + $0x228] sm:$0xff] %vm1150_vm1, %v5271_v46  ;;  %v2370_v8 = vld [vmem:[#allocation2 + $0x208] sm:$0xff] }
 0x1a0   : > { %v2089_v20 = vld [vmem:[#allocation2 + $0x180] sm:$0xff]  ;;  %v2372_v46 = vmul.f32 %v4529_v12, %v2370_v8  ;;  %v2376_v49 = vld [vmem:[#allocation2 + $0x209] sm:$0xff]  ;;  %v2423_v45 = vmul.f32 %v3879_v34, %v2370_v8 }
 0x1a1   : > { %v2373_v26 = vadd.f32 %v2371_v35, %v2366_v55  ;;  %v2424_v41 = vadd.f32 %v2422_v32, %v2418_v42  ;;  %v2375_v36 = vld [vmem:[#allocation2 + $0x201] sm:$0xff]  ;;  %v2091_v22 = vmul.f32 %v4529_v12, %v2089_v20  ;;  %v2142_v11 = vmul.f32 %v4484_v2, %v2089_v20  ;;  %v2382_v29 = vld [vmem:[#allocation2 + $0x20a] sm:$0xff]  ;;  %v4989_v55 = vld [vmem:[%s5251_s4] ss:$0 sm:$0xff] }
 0x1a2   : > { %v2194_v58 = vmul.f32 %v4978_v60, %v2089_v20  ;;  %v2381_v5 = vld [vmem:[#allocation2 + $0x202] sm:$0xff]  ;;  %v2377_v1 = vmul.f32 %v4568_v43, %v2375_v36  ;;  %v2378_v31 = vmul.f32 %v4568_v43, %v2376_v49  ;;  %v2384_v2 = vmul.f32 %v4584_v38, %v2382_v29  ;;  %v2102_v32 = vld [vmem:[#allocation2 + $0x18a] sm:$0xff] }
 0x1a3   : > { %v2383_v37 = vmul.f32 %v4584_v38, %v2381_v5  ;;  %v2090_v3 = vld [vmem:[#allocation2 + $0x188] sm:$0xff]  ;;  %v2093_v21 = vadd.f32 %v2091_v22, %v2086_v18  ;;  %v2144_v10 = vadd.f32 %v2142_v11, %v2138_v23  ;;  %v2374_v57 = vadd.f32 %v2372_v46, %v2367_v33 }
 0x1a4   : > { %v4992_v39 = vadd.f32 %v4989_v55, %v2194_v58  ;;  %v2095_v19 = vld [vmem:[#allocation2 + $0x181] sm:$0xff]  ;;  %v2379_v24 = vadd.f32 %v2377_v1, %v2373_v26  ;;  %v2428_v61 = vmul.f32 %v4505_v63, %v2375_v36  ;;  %v2429_v40 = vmul.f32 %v4505_v63, %v2376_v49  ;;  %v2096_v42 = vld [vmem:[#allocation2 + $0x189] sm:$0xff] }
 0x1a5   : > { %v2101_v48 = vld [vmem:[#allocation2 + $0x182] sm:$0xff]  ;;  %v2380_v47 = vadd.f32 %v2378_v31, %v2374_v57  ;;  %v2434_v13 = vmul.f32 %v4515_v51, %v2381_v5  ;;  %v2435_v28 = vmul.f32 %v4515_v51, %v2382_v29  ;;  %v2092_v0 = vmul.f32 %v4529_v12, %v2090_v3 }
 0x1a6   : > { %v2385_v50 = vadd.f32 %v2383_v37, %v2379_v24  ;;  %v2425_v56 = vadd.f32 %v2423_v45, %v2419_v30  ;;  %v2430_v53 = vadd.f32 %v2428_v61, %v2424_v41  ;;  %v2097_v35 = vmul.f32 %v4568_v43, %v2095_v19 }
 0x1a7   : > { %v2386_v33 = vadd.f32 %v2384_v2, %v2380_v47  ;;  %v2094_v18 = vadd.f32 %v2092_v0, %v2087_v27  ;;  %v2098_v23 = vmul.f32 %v4568_v43, %v2096_v42  ;;  %v2103_v63 = vmul.f32 %v4584_v38, %v2101_v48  ;;  %v3880_v27 = vld [vmem:[%s5250_s3 + $0x4] ss:$0 sm:$0xff] }
 0x1a8   : > { %v2387_v26 = vmax.f32 %v2385_v50, 0.0  ;;  %v2431_v20 = vadd.f32 %v2429_v40, %v2425_v56  ;;  %v2436_v8 = vadd.f32 %v2434_v13, %v2430_v53  ;;  %v2099_v36 = vadd.f32 %v2097_v35, %v2093_v21  ;;  %v3881_v21 = vld [vmem:[%s5250_s3 + $0x5] ss:$0 sm:$0xff]  ;;  %v2440_v35 = vld [vmem:[#allocation2 + $0x228] sm:$0xff] }
 0x1a9   : > { %v2388_v22 = vmax.f32 %v2386_v33, 0.0  ;;  %v2100_v51 = vadd.f32 %v2098_v23, %v2094_v18  ;;  %v2104_v12 = vmul.f32 %v4584_v38, %v2102_v32  ;;  %v2143_v11 = vmul.f32 %v3879_v34, %v2090_v3 }
 0x1aa   : > { %v2389_v30 = vmin.f32 %v2387_v26, 6.0  ;;  %v2437_v41 = vadd.f32 %v2435_v28, %v2431_v20  ;;  %v2105_v58 = vadd.f32 %v2103_v63, %v2099_v36  ;;  %v2148_v46 = vmul.f32 %v3880_v27, %v2095_v19  ;;  %v2439_v28 = vld [vmem:[#allocation2 + $0x220] sm:$0xff]  ;;  %v2446_v63 = vld [vmem:[#allocation2 + $0x229] sm:$0xff] }
 0x1ab   : > { %v2390_v49 = vmin.f32 %v2388_v22, 6.0  ;;  %v2106_v5 = vadd.f32 %v2104_v12, %v2100_v51  ;;  %v2145_v29 = vadd.f32 %v2143_v11, %v2139_v59  ;;  %v2149_v1 = vmul.f32 %v3880_v27, %v2096_v42  ;;  %v3882_v59 = vld [vmem:[%s5250_s3 + $0x1] ss:$0 sm:$0xff]  ;;  %v2451_v36 = vld [vmem:[#allocation2 + $0x222] sm:$0xff] }
 0x1ac   : > { %v3516_v31 = vpack.c.bf16 %v2389_v30, %v2389_v30  ;;  %v2107_v37 = vmax.f32 %v2105_v58, 0.0  ;;  %v2150_v2 = vadd.f32 %v2148_v46, %v2144_v10  ;;  %v2154_v57 = vmul.f32 %v3881_v21, %v2101_v48 }
 0x1ad   : > { %v3517_v24 = vpack.c.bf16 %v2390_v49, %v2390_v49  ;;  %v2108_v34 = vmax.f32 %v2106_v5, 0.0  ;;  %v2151_v45 = vadd.f32 %v2149_v1, %v2145_v29  ;;  %v2155_v61 = vmul.f32 %v3881_v21, %v2102_v32 }
 0x1ae   : > { %2400 = vst.msk [vmem:[#allocation3 + $0x70] sm:$0xf] %vm1419_vm3, %v3516_v31  ;;  %v2109_v40 = vmin.f32 %v2107_v37, 6.0  ;;  %v2156_v47 = vadd.f32 %v2154_v57, %v2150_v2  ;;  %v2195_v13 = vmul.f32 %v4978_v60, %v2090_v3  ;;  %v2200_v10 = vmul.f32 %v3882_v59, %v2095_v19  ;;  %v2445_v3 = vld [vmem:[#allocation2 + $0x221] sm:$0xff] }
 0x1af   : > { %2401 = vst.msk [vmem:[#allocation3 + $0x74] sm:$0xf] %vm1419_vm3, %v3517_v24  ;;  %v2110_v0 = vmin.f32 %v2108_v34, 6.0  ;;  %v2157_v50 = vadd.f32 %v2155_v61, %v2151_v45  ;;  %v2201_v56 = vmul.f32 %v3882_v59, %v2096_v42  ;;  %v2206_v53 = vmul.f32 %v4957_v14, %v2101_v48  ;;  %v3883_v42 = vld [vmem:[%s5250_s3 + $0x6] ss:$0 sm:$0xff]  ;;  %v5273_v24 = vld [vmem:[#allocation5_spill] sm:$0xff] }
 0x1b0   : > { %v3508_v33 = vpack.c.bf16 %v2109_v40, %v2109_v40  ;;  %v2163_v18 = vadd.f32 %v4545_v7, %v2156_v47  ;;  %v2197_v23 = vadd.f32 %v4989_v55, %v2195_v13  ;;  %v2202_v60 = vadd.f32 %v2200_v10, %v4992_v39  ;;  %v2452_v39 = vld [vmem:[#allocation2 + $0x22a] sm:$0xff]  ;;  %v5272_v37 = vld [vmem:[#allocation4_spill] sm:$0xff]  ;;  %v5275_v13 = vld [vmem:[#allocation7_spill] sm:$0xff] }
 0x1b1   : > { %v3509_v26 = vpack.c.bf16 %v2110_v0, %v2110_v0  ;;  %v2164_v19 = vadd.f32 %v4686_v16, %v2157_v50  ;;  %v2207_v20 = vmul.f32 %v4957_v14, %v2102_v32  ;;  %v2441_v48 = vmul.f32 %v3883_v42, %v2439_v28  ;;  %v3885_v0 = vld [vmem:[%s5250_s3 + $0x8] ss:$0 sm:$0xff]  ;;  %v5276_v50 = vld [vmem:[#allocation8_spill] sm:$0xff] }
 0x1b2   : > { %v2169_v22 = vadd.f32 %v4694_v9, %v2163_v18  ;;  %v2203_v7 = vadd.f32 %v2201_v56, %v2197_v23  ;;  %v2208_v51 = vadd.f32 %v2206_v53, %v2202_v60  ;;  %2120 = vst.msk [vmem:[#allocation3 + $0x50] sm:$0xf] %vm1419_vm3, %v3508_v33  ;;  %v2442_v55 = vmul.f32 %v3883_v42, %v2440_v35  ;;  %v5277_v23 = vld [vmem:[#allocation9_spill] sm:$0xff] }
 0x1b3   : > { %v2170_v12 = vadd.f32 %v4698_v62, %v2164_v19  ;;  %2121 = vst.msk [vmem:[#allocation3 + $0x54] sm:$0xf] %vm1419_vm3, %v3509_v26  ;;  %v2443_v16 = vadd.f32 %v2441_v48, %v2436_v8  ;;  %v2447_v14 = vmul.f32 %v4568_v43, %v2445_v3  ;;  %v2448_v32 = vmul.f32 %v4568_v43, %v2446_v63 }
 0x1b4   : > { %v2209_v11 = vadd.f32 %v2207_v20, %v2203_v7  ;;  %v2214_v30 = vadd.f32 %v4669_v6, %v2208_v51  ;;  %v2444_v58 = vadd.f32 %v2442_v55, %v2437_v41  ;;  %v2453_v9 = vmul.f32 %v4584_v38, %v2451_v36  ;;  %v3585_v55 = vld [vmem:[%s3978_s10 + $0x20] sm:$0xff]  }
 0x1b5   : > { %v2449_v27 = vadd.f32 %v2447_v14, %v2443_v16  ;;  %v2454_v46 = vmul.f32 %v4584_v38, %v2452_v39  ;;  %v2175_v49 = vadd.f32 %v4708_v44, %v2169_v22  ;;  %v2176_v62 = vadd.f32 %v4712_v54, %v2170_v12  ;;  %v3584_v39 = vld [vmem:[%s3978_s10 + $0x10] sm:$0xff]  }
 0x1b6   : > { %v2224_v5 = vmul.f32 %v3881_v21, %v4596_v52  ;;  %v2215_v8 = vadd.f32 %v4716_v17, %v2209_v11  ;;  %v2220_v29 = vadd.f32 %v4946_v15, %v2214_v30  ;;  %v2450_v43 = vadd.f32 %v2448_v32, %v2444_v58  ;;  %v3884_v17 = vld [vmem:[%s5250_s3 + $0x7] ss:$0 sm:$0xff]  ;;  %v5274_v15 = vld [vmem:[#allocation6_spill] sm:$0xff]  ;;  %v3442_v32 = vld [vmem:[%s3978_s10 + $0x28] sm:$0x1] }
 0x1b7   : > { %v2225_v1 = vmul.f32 %v3881_v21, %v4643_v25  ;;  %v2455_v6 = vadd.f32 %v2453_v9, %v2449_v27  ;;  %v2177_v41 = vmax.f32 %v2175_v49, 0.0  ;;  %v2178_v31 = vmax.f32 %v2176_v62, 0.0  ;;  %v3861_v11 = vld [vmem:[#allocation3 + $0x68] sm:$0xff]   ;;  %v3862_v9 = vld [vmem:[#allocation3 + $0x70] sm:$0xff]   ;;  %v3439_v27 = vld [vmem:[%s3978_s10 + $0x18] sm:$0x1] }
 0x1b8   : > { %v2231_v2 = vmul.f32 %v3883_v42, %v5272_v37  ;;  %v2221_v38 = vadd.f32 %v4950_v4, %v2215_v8  ;;  %v2226_v57 = vadd.f32 %v2224_v5, %v2220_v29  ;;  %v2456_v44 = vadd.f32 %v2454_v46, %v2450_v43  ;;  %v5073_v5 = vld [vmem:[%s5253_s6] ss:$0 sm:$0xff] }
 0x1b9   : > { %v2232_v54 = vmul.f32 %v3883_v42, %v5273_v24  ;;  %v2457_v34 = vmax.f32 %v2455_v6, 0.0  ;;  %v2179_v52 = vmin.f32 %v2177_v41, 6.0  ;;  %v2180_v45 = vmin.f32 %v2178_v31, 6.0 }
 0x1ba   : > { %v2237_v25 = vmul.f32 %v3884_v17, %v5274_v15  ;;  %v2227_v21 = vadd.f32 %v2225_v1, %v2221_v38  ;;  %v2233_v61 = vadd.f32 %v2231_v2, %v2226_v57  ;;  %v2458_v40 = vmax.f32 %v2456_v44, 0.0  ;;  %v3858_v47 = vld [vmem:[#allocation3 + $0x50] sm:$0xff]  }
 0x1bb   : > { %v2238_v59 = vmul.f32 %v3884_v17, %v5275_v13  ;;  %v2459_v4 = vmin.f32 %v2457_v34, 6.0  ;;  %v3510_v10 = vpack.c.bf16 %v2179_v52, %v2179_v52  ;;  %v3511_v28 = vpack.c.bf16 %v2180_v45, %v2180_v45  ;;  %3765 = vmatprep.mubr.msk.bf16.mxu1 %vm1150_vm1, %v3858_v47  ;;  %v3586_v47 = vld [vmem:[%s3978_s10 + $0x30] sm:$0xff]  }
 0x1bc   : > { %v2243_v56 = vmul.f32 %v3885_v0, %v5276_v50  ;;  %v2234_v53 = vadd.f32 %v2232_v54, %v2227_v21  ;;  %v2460_v35 = vmin.f32 %v2458_v40, 6.0  ;;  %v2239_v33 = vadd.f32 %v2237_v25, %v2233_v61  ;;  %v3587_v40 = vld [vmem:[%s3978_s10 + $0x40] sm:$0xff]  }
 0x1bd   : > { %v3518_v18 = vpack.c.bf16 %v2459_v4, %v2459_v4  ;;  %2190 = vst.msk [vmem:[#allocation3 + $0x58] sm:$0xf] %vm1419_vm3, %v3510_v10  ;;  %2191 = vst.msk [vmem:[#allocation3 + $0x5c] sm:$0xf] %vm1419_vm3, %v3511_v28  ;;  %v2244_v60 = vmul.f32 %v3885_v0, %v5277_v23  ;;  %v3526_v12 = vunpack.c.l.bf16 %v3585_v55  ;;  %v3527_v16 = vunpack.c.h.bf16 %v3585_v55  ;;  %v3448_v4 = vld [vmem:[%s3978_s10 + $0x48] sm:$0x1] }
 0x1be   : > { %v3519_v3 = vpack.c.bf16 %v2460_v35, %v2460_v35  ;;  %v2240_v63 = vadd.f32 %v2238_v59, %v2234_v53  ;;  %v2245_v26 = vadd.f32 %v2243_v56, %v2239_v33  ;;  %v3522_v30 = vunpack.c.l.bf16 %v3584_v39  ;;  %v3445_v0 = vld [vmem:[%s3978_s10 + $0x38] sm:$0x1] }
 0x1bf   : > { %2470 = vst.msk [vmem:[#allocation3 + $0x78] sm:$0xf] %vm1419_vm3, %v3518_v18  ;;  %v3523_v58 = vunpack.c.h.bf16 %v3584_v39  ;;  %v3002_v46 = vrot.slane %v3526_v12, 1  ;;  %v3003_v49 = vrot.slane %v3527_v16, 1  ;;  %v2905_v62 = vunpack.c.l.bf16 %v3442_v32  ;;  %v3589_v32 = vld [vmem:[%s3978_s10 + $0x60] sm:$0xff]  }
 0x1c0   : > { %2471 = vst.msk [vmem:[#allocation3 + $0x7c] sm:$0xf] %vm1419_vm3, %v3519_v3  ;;  %v2246_v19 = vadd.f32 %v2244_v60, %v2240_v63  ;;  %v2247_v20 = vmax.f32 %v2245_v26, 0.0  ;;  %v2997_v8 = vrot.slane %v3522_v30, 1  ;;  %v2902_v43 = vunpack.c.l.bf16 %v3439_v27 }
 0x1c1   : > { %v2998_v29 = vrot.slane %v3523_v58, 1  ;;  %v3004_v6 = vsel %vm2996_vm4, %v3002_v46, %v3003_v49  ;;  %v3005_v41 = vrot.slane %v2905_v62, 1  ;;  %v3534_v13 = vunpack.c.l.bf16 %v3587_v40 }
 0x1c2   : > { %v2248_v42 = vmax.f32 %v2246_v19, 0.0  ;;  %v2249_v48 = vmin.f32 %v2247_v20, 6.0  ;;  %v3000_v57 = vrot.slane %v2902_v43, 1  ;;  %v3535_v59 = vunpack.c.h.bf16 %v3587_v40 }
 0x1c3   : > { %v2999_v38 = vsel %vm2996_vm4, %v2997_v8, %v2998_v29  ;;  %v3006_v34 = vsel %vm2996_vm4, %v3003_v49, %v3005_v41  ;;  %v3530_v10 = vunpack.c.l.bf16 %v3586_v47  ;;  %v3531_v28 = vunpack.c.h.bf16 %v3586_v47  ;;  %v3451_v49 = vld [vmem:[%s3978_s10 + $0x58] sm:$0x1]  ;;  %v3591_v47 = vld [vmem:[%s3978_s10 + $0x80] sm:$0xff]  }
 0x1c4   : > { %v3859_v36 = vld [vmem:[#allocation3 + $0x58] sm:$0xff]   ;;  %v2250_v22 = vmin.f32 %v2248_v42, 6.0  ;;  %v3512_v7 = vpack.c.bf16 %v2249_v48, %v2249_v48  ;;  %v3001_v15 = vsel %vm2996_vm4, %v2998_v29, %v3000_v57  ;;  %v3012_v50 = vrot.slane %v3534_v13, 1  ;;  %v3590_v13 = vld [vmem:[%s3978_s10 + $0x70] sm:$0xff]  }
 0x1c5   : > { %3766 = vmatmul.mubr.msk.bf16.gmra.mxu1 %vm1150_vm1, %v3859_v36  ;;  %v3013_v56 = vrot.slane %v3535_v59, 1  ;;  %v2911_v53 = vunpack.c.l.bf16 %v3448_v4  ;;  %v3007_v35 = vrot.slane %v3530_v10, 1  ;;  %v3008_v33 = vrot.slane %v3531_v28, 1  ;;  %v3460_v10 = vld [vmem:[%s3978_s10 + $0x88] sm:$0x1] }
 0x1c6   : > { %v3513_v51 = vpack.c.bf16 %v2250_v22, %v2250_v22  ;;  %2260 = vst.msk [vmem:[#allocation3 + $0x60] sm:$0xf] %vm1419_vm3, %v3512_v7  ;;  %v2908_v18 = vunpack.c.l.bf16 %v3445_v0  ;;  %v3542_v30 = vunpack.c.l.bf16 %v3589_v32  ;;  %v3543_v58 = vunpack.c.h.bf16 %v3589_v32 }
 0x1c7   : > { %v3863_v37 = vld [vmem:[#allocation3 + $0x78] sm:$0xff]   ;;  %v3014_v60 = vsel %vm2996_vm4, %v3012_v50, %v3013_v56  ;;  %v3015_v3 = vrot.slane %v2911_v53, 1  ;;  %v3009_v19 = vsel %vm2996_vm4, %v3007_v35, %v3008_v33  ;;  %v3550_v59 = vunpack.c.l.bf16 %v3591_v47 }
 0x1c8   : > { %2261 = vst.msk [vmem:[#allocation3 + $0x64] sm:$0xf] %vm1419_vm3, %v3513_v51  ;;  %v3010_v20 = vrot.slane %v2908_v18, 1  ;;  %v3022_v62 = vrot.slane %v3542_v30, 1  ;;  %v3023_v8 = vrot.slane %v3543_v58, 1  ;;  %v3551_v4 = vunpack.c.h.bf16 %v3591_v47  ;;  %v3592_v30 = vld [vmem:[%s3978_s10 + $0x90] sm:$0xff]  }
 0x1c9   : > { %v3016_v22 = vsel %vm2996_vm4, %v3013_v56, %v3015_v3  ;;  %v3546_v28 = vunpack.c.l.bf16 %v3590_v13  ;;  %v3547_v0 = vunpack.c.h.bf16 %v3590_v13  ;;  %v3457_v50 = vld [vmem:[%s3978_s10 + $0x78] sm:$0x1]  ;;  %v3032_v56 = vrot.slane %v3550_v59, 1  ;;  %v3595_v13 = vld [vmem:[%s3978_s10 + $0xc0] sm:$0xff]   ;;  %v3594_v59 = vld [vmem:[%s3978_s10 + $0xb0] sm:$0xff]  }
 0x1ca   : > { %v3011_v39 = vsel %vm2996_vm4, %v3008_v33, %v3010_v20  ;;  %v3033_v53 = vrot.slane %v3551_v4, 1  ;;  %v2923_v35 = vunpack.c.l.bf16 %v3460_v10  ;;  %v3566_v4 = vunpack.c.l.bf16 %v3595_v13 }
 0x1cb   : > { %v3027_v33 = vrot.slane %v3546_v28, 1  ;;  %v3028_v18 = vrot.slane %v3547_v0, 1  ;;  %v3567_v10 = vunpack.c.h.bf16 %v3595_v13  ;;  %v3472_v28 = vld [vmem:[%s3978_s10 + $0xc8] sm:$0x1]  ;;  %v3562_v0 = vunpack.c.l.bf16 %v3594_v59 }
 0x1cc   : > { %v3034_v3 = vsel %vm2996_vm4, %v3032_v56, %v3033_v53  ;;  %v3469_v56 = vld [vmem:[%s3978_s10 + $0xb8] sm:$0x1] }
 0x1cd   : > { %v3029_v20 = vsel %vm2996_vm4, %v3027_v33, %v3028_v18  ;;  %v2935_v33 = vunpack.c.l.bf16 %v3472_v28 }
 0x1cf   : > { %v3860_v14 = vld [vmem:[#allocation3 + $0x60] sm:$0xff]  }
 0x1d0   : > { %3769 = vmatprep.mubr.msk.bf16.mxu1 %vm1150_vm1, %v3860_v14 }
 0x1d1   : > { %3770 = vmatmul.mubr.msk.bf16.gmra.mxu1 %vm1150_vm1, %v3861_v11  ;;  %v3588_v11 = vld [vmem:[%s3978_s10 + $0x50] sm:$0xff]  }
 0x1d2   : > { %3773 = vmatprep.mubr.msk.bf16.mxu1 %vm1150_vm1, %v3862_v9  ;;  %v3454_v9 = vld [vmem:[%s3978_s10 + $0x68] sm:$0x1]  ;;  %v3538_v27 = vunpack.c.l.bf16 %v3588_v11  ;;  %v3539_v46 = vunpack.c.h.bf16 %v3588_v11  ;;  %v3593_v11 = vld [vmem:[%s3978_s10 + $0xa0] sm:$0xff]  }
 0x1d3   : > { %v2917_v29 = vunpack.c.l.bf16 %v3454_v9  ;;  %v3558_v58 = vunpack.c.l.bf16 %v3593_v11  ;;  %v3559_v9 = vunpack.c.h.bf16 %v3593_v11  ;;  %v3478_v11 = vld [vmem:[%s3978_s10 + $0xe8] sm:$0x1] }
 0x1d4   : > { %v3017_v43 = vrot.slane %v3538_v27, 1  ;;  %v3466_v27 = vld [vmem:[%s3978_s10 + $0xa8] sm:$0x1] }
 0x1d9   : > { %3774 = vmatmul.mubr.msk.bf16.gmra.mxu1 %vm1150_vm1, %v3863_v37  ;;  %v3025_v37 = vrot.slane %v2917_v29, 1  ;;  %v3043_v29 = vrot.slane %v3559_v9, 1 }
 0x1da   : > { %v3747_v1 = vpop.f32.mrf.mxu1 }
 0x1db   : > { %v2730_v31 = vadd.f32 %v3747_v1, %v5073_v5  ;;  %v3018_v1 = vrot.slane %v3539_v46, 1  ;;  %v3554_v46 = vunpack.c.l.bf16 %v3592_v30 }
 0x1dc   : > { %v2721_v2 = vpop.f32.mrf.mxu1 }
 0x1dd   : > { %v3111_v44 = vadd.f32 %v3004_v6, %v2730_v31  ;;  %v2722_v24 = vadd.f32 %v5073_v5, %v2721_v2  ;;  %v2914_v6 = vunpack.c.l.bf16 %v3451_v49  ;;  %v3024_v31 = vsel %vm2996_vm4, %v3022_v62, %v3023_v8  ;;  %v3463_v62 = vld [vmem:[%s3978_s10 + $0x98] sm:$0x1] }
 0x1de   : > { %v3748_v54 = vpop.f32.mrf.mxu1  ;;  %v3019_v57 = vsel %vm2996_vm4, %v3017_v43, %v3018_v1  ;;  %v3555_v49 = vunpack.c.h.bf16 %v3592_v30  ;;  %v2929_v43 = vunpack.c.l.bf16 %v3466_v27 }
 0x1df   : > { %3143 = vst.msk [vmem:[%s5081_s22 + $0x10] sm:$0xff] %vm576_vm0, %v3111_v44  ;;  %v3109_v52 = vadd.f32 %v2999_v38, %v2722_v24  ;;  %v2733_v45 = vadd.f32 %v3748_v54, %v5073_v5  ;;  %v3020_v44 = vrot.slane %v2914_v6, 1 }
 0x1e0   : > { %v2724_v17 = vpop.f32.mrf.mxu1  ;;  %v3038_v6 = vrot.slane %v3555_v49, 1 }
 0x1e1   : > { %3141 = vst.msk [vmem:[%s5081_s22] sm:$0xff] %vm576_vm0, %v3109_v52  ;;  %v3112_v25 = vadd.f32 %v3006_v34, %v2733_v45  ;;  %v2725_v21 = vadd.f32 %v5073_v5, %v2724_v17  ;;  %v3026_v52 = vsel %vm2996_vm4, %v3023_v8, %v3025_v37  ;;  %v3042_v8 = vrot.slane %v3558_v58, 1 }
 0x1e3   : > { %3144 = vst.msk [vmem:[%s5081_s22 + $0x18] sm:$0xff] %vm576_vm0, %v3112_v25  ;;  %v3110_v61 = vadd.f32 %v3001_v15, %v2725_v21  ;;  %v3021_v25 = vsel %vm2996_vm4, %v3018_v1, %v3020_v44  ;;  %v3037_v1 = vrot.slane %v3554_v46, 1  ;;  %v3044_v37 = vsel %vm2996_vm4, %v3042_v8, %v3043_v29 }
 0x1e5   : > { %3142 = vst.msk [vmem:[%s5081_s22 + $0x8] sm:$0xff] %vm576_vm0, %v3110_v61  ;;  %v3039_v44 = vsel %vm2996_vm4, %v3037_v1, %v3038_v6 }
 0x1fa   : > { %v3751_v23 = vpop.f32.mrf.mxu1 }
 0x1fb   : > { %v2746_v63 = vadd.f32 %v3751_v23, %v5073_v5  ;;  %v2920_v23 = vunpack.c.l.bf16 %v3457_v50  ;;  %v3563_v50 = vunpack.c.h.bf16 %v3594_v59 }
 0x1fc   : > { %v2737_v26 = vpop.f32.mrf.mxu1 }
 0x1fd   : > { %v3115_v42 = vadd.f32 %v3014_v60, %v2746_v63  ;;  %v2738_v48 = vadd.f32 %v5073_v5, %v2737_v26  ;;  %v3035_v63 = vrot.slane %v2923_v35, 1  ;;  %v3053_v35 = vrot.slane %v3567_v10, 1 }
 0x1fe   : > { %v3752_v36 = vpop.f32.mrf.mxu1 }
 0x1ff   : > { %3147 = vst.msk [vmem:[%s5081_s22 + $0x30] sm:$0xff] %vm576_vm0, %v3115_v42  ;;  %v3113_v7 = vadd.f32 %v3009_v19, %v2738_v48  ;;  %v2749_v51 = vadd.f32 %v3752_v36, %v5073_v5  ;;  %v3030_v42 = vrot.slane %v2920_v23, 1  ;;  %v3048_v23 = vrot.slane %v3563_v50, 1 }
 0x200   : > { %v2740_v55 = vpop.f32.mrf.mxu1 }
 0x201   : > { %3145 = vst.msk [vmem:[%s5081_s22 + $0x20] sm:$0xff] %vm576_vm0, %v3113_v7  ;;  %v3116_v12 = vadd.f32 %v3016_v22, %v2749_v51  ;;  %v2741_v16 = vadd.f32 %v5073_v5, %v2740_v55  ;;  %v3036_v7 = vsel %vm2996_vm4, %v3033_v53, %v3035_v63  ;;  %v3052_v53 = vrot.slane %v3566_v4, 1 }
 0x203   : > { %3148 = vst.msk [vmem:[%s5081_s22 + $0x38] sm:$0xff] %vm576_vm0, %v3116_v12  ;;  %v3114_v14 = vadd.f32 %v3011_v39, %v2741_v16  ;;  %v3031_v12 = vsel %vm2996_vm4, %v3028_v18, %v3030_v42  ;;  %v3047_v18 = vrot.slane %v3562_v0, 1  ;;  %v3054_v63 = vsel %vm2996_vm4, %v3052_v53, %v3053_v35 }
 0x205   : > { %3146 = vst.msk [vmem:[%s5081_s22 + $0x28] sm:$0xff] %vm576_vm0, %v3114_v14 }
 0x219   : > { %v3755_v41 = vpop.f32.mrf.mxu1 }
 0x21a   : > { %v2762_v2 = vadd.f32 %v3755_v41, %v5073_v5  ;;  %v2926_v41 = vunpack.c.l.bf16 %v3463_v62  ;;  %v3475_v62 = vld [vmem:[%s3978_s10 + $0xd8] sm:$0x1] }
 0x21b   : > { %v2753_v38 = vpop.f32.mrf.mxu1 }
 0x21c   : > { %v3119_v24 = vadd.f32 %v3024_v31, %v2762_v2  ;;  %v2754_v54 = vadd.f32 %v5073_v5, %v2753_v38  ;;  %v3045_v2 = vrot.slane %v2929_v43, 1  ;;  %v2941_v43 = vunpack.c.l.bf16 %v3478_v11 }
 0x21d   : > { %v3756_v34 = vpop.f32.mrf.mxu1 }
 0x21e   : > { %3151 = vst.msk [vmem:[%s5081_s22 + $0x50] sm:$0xff] %vm576_vm0, %v3119_v24  ;;  %v3117_v45 = vadd.f32 %v3019_v57, %v2754_v54  ;;  %v2765_v17 = vadd.f32 %v3756_v34, %v5073_v5  ;;  %v3040_v24 = vrot.slane %v2926_v41, 1 }
 0x21f   : > { %v2756_v15 = vpop.f32.mrf.mxu1 }
 0x220   : > { %3149 = vst.msk [vmem:[%s5081_s22 + $0x40] sm:$0xff] %vm576_vm0, %v3117_v45  ;;  %v3120_v21 = vadd.f32 %v3026_v52, %v2765_v17  ;;  %v2757_v61 = vadd.f32 %v5073_v5, %v2756_v15  ;;  %v3046_v45 = vsel %vm2996_vm4, %v3043_v29, %v3045_v2  ;;  %v3598_v2 = vld [vmem:[%s3978_s10 + $0xf0] sm:$0xff]  }
 0x222   : > { %3152 = vst.msk [vmem:[%s5081_s22 + $0x58] sm:$0xff] %vm576_vm0, %v3120_v21  ;;  %v3118_v40 = vadd.f32 %v3021_v25, %v2757_v61  ;;  %v3041_v21 = vsel %vm2996_vm4, %v3038_v6, %v3040_v24  ;;  %v3599_v6 = vld [vmem:[%s3978_s10 + $0x100] sm:$0xff]  }
 0x223   : > { %v3582_v24 = vunpack.c.l.bf16 %v3599_v6 }
 0x224   : > { %3150 = vst.msk [vmem:[%s5081_s22 + $0x48] sm:$0xff] %vm576_vm0, %v3118_v40 }
 0x225   : > { %v3072_v4 = vrot.slane %v3582_v24, 1 }
 0x22e   : > { %v3759_v60 = vpop.f32.mrf.mxu1 }
 0x22f   : > { %v2778_v26 = vadd.f32 %v3759_v60, %v5073_v5  ;;  %v2932_v60 = vunpack.c.l.bf16 %v3469_v56 }
 0x230   : > { %v2769_v19 = vpop.f32.mrf.mxu1 }
 0x231   : > { %v3123_v48 = vadd.f32 %v3034_v3, %v2778_v26  ;;  %v2770_v36 = vadd.f32 %v5073_v5, %v2769_v19  ;;  %v3055_v26 = vrot.slane %v2935_v33, 1 }
 0x232   : > { %v3760_v22 = vpop.f32.mrf.mxu1 }
 0x233   : > { %3155 = vst.msk [vmem:[%s5081_s22 + $0x70] sm:$0xff] %vm576_vm0, %v3123_v48  ;;  %v3121_v51 = vadd.f32 %v3029_v20, %v2770_v36  ;;  %v2781_v55 = vadd.f32 %v3760_v22, %v5073_v5  ;;  %v3597_v20 = vld [vmem:[%s3978_s10 + $0xe0] sm:$0xff]   ;;  %v3049_v48 = vsel %vm2996_vm4, %v3047_v18, %v3048_v23  ;;  %v3050_v36 = vrot.slane %v2932_v60, 1 }
 0x234   : > { %v2772_v39 = vpop.f32.mrf.mxu1 }
 0x235   : > { %3153 = vst.msk [vmem:[%s5081_s22 + $0x60] sm:$0xff] %vm576_vm0, %v3121_v51  ;;  %v3124_v16 = vadd.f32 %v3036_v7, %v2781_v55  ;;  %v2773_v14 = vadd.f32 %v5073_v5, %v2772_v39  ;;  %v3596_v51 = vld [vmem:[%s3978_s10 + $0xd0] sm:$0xff]   ;;  %v3056_v39 = vsel %vm2996_vm4, %v3053_v35, %v3055_v26  ;;  %v3051_v58 = vsel %vm2996_vm4, %v3048_v23, %v3050_v36 }
 0x236   : > { %v3570_v9 = vunpack.c.l.bf16 %v3596_v51  ;;  %v3571_v27 = vunpack.c.h.bf16 %v3596_v51 }
 0x237   : > { %3156 = vst.msk [vmem:[%s5081_s22 + $0x78] sm:$0xff] %vm576_vm0, %v3124_v16  ;;  %v3122_v32 = vadd.f32 %v3031_v12, %v2773_v14  ;;  %v3574_v12 = vunpack.c.l.bf16 %v3597_v20  ;;  %v3575_v16 = vunpack.c.h.bf16 %v3597_v20 }
 0x238   : > { %v3057_v41 = vrot.slane %v3570_v9, 1 }
 0x239   : > { %3154 = vst.msk [vmem:[%s5081_s22 + $0x68] sm:$0xff] %vm576_vm0, %v3122_v32  ;;  %v3062_v8 = vrot.slane %v3574_v12, 1  ;;  %v3063_v29 = vrot.slane %v3575_v16, 1 }
 0x25e   : > { %v3763_v31 = vpop.f32.mrf.mxu1 }
 0x25f   : > { %v2794_v38 = vadd.f32 %v3763_v31, %v5073_v5  ;;  %v3058_v31 = vrot.slane %v3571_v27, 1 }
 0x260   : > { %v2785_v57 = vpop.f32.mrf.mxu1 }
 0x261   : > { %v3127_v54 = vadd.f32 %v3044_v37, %v2794_v38  ;;  %v2786_v34 = vadd.f32 %v5073_v5, %v2785_v57  ;;  %v2938_v37 = vunpack.c.l.bf16 %v3475_v62  ;;  %v3064_v57 = vsel %vm2996_vm4, %v3062_v8, %v3063_v29 }
 0x262   : > { %v3764_v52 = vpop.f32.mrf.mxu1 }
 0x263   : > { %3159 = vst.msk [vmem:[%s5081_s22 + $0x90] sm:$0xff] %vm576_vm0, %v3127_v54  ;;  %v3125_v17 = vadd.f32 %v3039_v44, %v2786_v34  ;;  %v2797_v15 = vadd.f32 %v3764_v52, %v5073_v5  ;;  %v3065_v44 = vrot.slane %v2941_v43, 1  ;;  %v3583_v54 = vunpack.c.h.bf16 %v3599_v6  ;;  %v3484_v52 = vld [vmem:[%s3978_s10 + $0x108] sm:$0x1] }
 0x264   : > { %v2788_v25 = vpop.f32.mrf.mxu1  ;;  %v2947_v28 = vunpack.c.l.bf16 %v3484_v52 }
 0x265   : > { %3157 = vst.msk [vmem:[%s5081_s22 + $0x80] sm:$0xff] %vm576_vm0, %v3125_v17  ;;  %v3128_v61 = vadd.f32 %v3046_v45, %v2797_v15  ;;  %v2789_v40 = vadd.f32 %v5073_v5, %v2788_v25  ;;  %v3059_v17 = vsel %vm2996_vm4, %v3057_v41, %v3058_v31  ;;  %v3060_v15 = vrot.slane %v2938_v37, 1 }
 0x266   : > { %v3578_v25 = vunpack.c.l.bf16 %v3598_v2  ;;  %v3066_v59 = vsel %vm2996_vm4, %v3063_v29, %v3065_v44  ;;  %v3073_v10 = vrot.slane %v3583_v54, 1  ;;  %v3075_v26 = vrot.slane %v2947_v28, 1 }
 0x267   : > { %3160 = vst.msk [vmem:[%s5081_s22 + $0x98] sm:$0xff] %vm576_vm0, %v3128_v61  ;;  %v3126_v47 = vadd.f32 %v3041_v21, %v2789_v40  ;;  %v3579_v21 = vunpack.c.h.bf16 %v3598_v2  ;;  %v3061_v53 = vsel %vm2996_vm4, %v3058_v31, %v3060_v15 }
 0x268   : > { %v3067_v35 = vrot.slane %v3578_v25, 1 }
 0x269   : > { %3158 = vst.msk [vmem:[%s5081_s22 + $0x88] sm:$0xff] %vm576_vm0, %v3126_v47  ;;  %v3481_v47 = vld [vmem:[%s3978_s10 + $0xf8] sm:$0x1]  ;;  %v3068_v33 = vrot.slane %v3579_v21, 1 }
 0x26a   : > { %v2944_v18 = vunpack.c.l.bf16 %v3481_v47 }
 0x26c   : > { %v3070_v36 = vrot.slane %v2944_v18, 1 }
 0x285   : > { %v3767_v3 = vpop.f32.mrf.mxu1 }
 0x286   : > { %v2810_v19 = vadd.f32 %v3767_v3, %v5073_v5 }
 0x287   : > { %v2801_v42 = vpop.f32.mrf.mxu1 }
 0x288   : > { %v3131_v22 = vadd.f32 %v3054_v63, %v2810_v19  ;;  %v2802_v7 = vadd.f32 %v5073_v5, %v2801_v42  ;;  %v3074_v63 = vsel %vm2996_vm4, %v3072_v4, %v3073_v10 }
 0x289   : > { %v3768_v55 = vpop.f32.mrf.mxu1 }
 0x28a   : > { %3163 = vst.msk [vmem:[%s5081_s22 + $0xb0] sm:$0xff] %vm576_vm0, %v3131_v22  ;;  %v3129_v14 = vadd.f32 %v3049_v48, %v2802_v7  ;;  %v2813_v32 = vadd.f32 %v3768_v55, %v5073_v5  ;;  %v3069_v48 = vsel %vm2996_vm4, %v3067_v35, %v3068_v33  ;;  %v3076_v55 = vsel %vm2996_vm4, %v3073_v10, %v3075_v26 }
 0x28b   : > { %v2804_v30 = vpop.f32.mrf.mxu1 }
 0x28c   : > { %3161 = vst.msk [vmem:[%s5081_s22 + $0xa0] sm:$0xff] %vm576_vm0, %v3129_v14  ;;  %v3132_v46 = vadd.f32 %v3056_v39, %v2813_v32  ;;  %v2805_v49 = vadd.f32 %v5073_v5, %v2804_v30  ;;  %v3071_v14 = vsel %vm2996_vm4, %v3068_v33, %v3070_v36 }
 0x28e   : > { %3164 = vst.msk [vmem:[%s5081_s22 + $0xb8] sm:$0xff] %vm576_vm0, %v3132_v46  ;;  %v3130_v1 = vadd.f32 %v3051_v58, %v2805_v49 }
 0x290   : > { %3162 = vst.msk [vmem:[%s5081_s22 + $0xa8] sm:$0xff] %vm576_vm0, %v3130_v1 }
 0x291   : > { %v3771_v38 = vpop.f32.mrf.mxu1 }
 0x292   : > { %v2826_v34 = vadd.f32 %v3771_v38, %v5073_v5 }
 0x293   : > { %v2817_v45 = vpop.f32.mrf.mxu1 }
 0x294   : > { %v3135_v61 = vadd.f32 %v3064_v57, %v2826_v34  ;;  %v2818_v40 = vadd.f32 %v5073_v5, %v2817_v45 }
 0x295   : > { %v3772_v13 = vpop.f32.mrf.mxu1 }
 0x296   : > { %3167 = vst.msk [vmem:[%s5081_s22 + $0xd0] sm:$0xff] %vm576_vm0, %v3135_v61  ;;  %v3133_v0 = vadd.f32 %v3059_v17, %v2818_v40  ;;  %v2829_v50 = vadd.f32 %v3772_v13, %v5073_v5 }
 0x297   : > { %v2820_v56 = vpop.f32.mrf.mxu1 }
 0x298   : > { %3165 = vst.msk [vmem:[%s5081_s22 + $0xc0] sm:$0xff] %vm576_vm0, %v3133_v0  ;;  %v3136_v23 = vadd.f32 %v3066_v59, %v2829_v50  ;;  %v2821_v60 = vadd.f32 %v5073_v5, %v2820_v56 }
 0x299   : > { %v3775_v3 = vpop.f32.mrf.mxu1 }
 0x29a   : > { %3168 = vst.msk [vmem:[%s5081_s22 + $0xd8] sm:$0xff] %vm576_vm0, %v3136_v23  ;;  %v3134_v19 = vadd.f32 %v3061_v53, %v2821_v60  ;;  %v2842_v20 = vadd.f32 %v3775_v3, %v5073_v5 }
 0x29b   : > { %v2833_v42 = vpop.f32.mrf.mxu1 }
 0x29c   : > { %3166 = vst.msk [vmem:[%s5081_s22 + $0xc8] sm:$0xff] %vm576_vm0, %v3134_v19  ;;  %v3139_v22 = vadd.f32 %v3074_v63, %v2842_v20  ;;  %v2834_v7 = vadd.f32 %v5073_v5, %v2833_v42 }
 0x29d   : > { %v3776_v51 = vpop.f32.mrf.mxu1 }
 0x29e   : > { %3171 = vst.msk [vmem:[%s5081_s22 + $0xf0] sm:$0xff] %vm576_vm0, %v3139_v22  ;;  %v3137_v39 = vadd.f32 %v3069_v48, %v2834_v7  ;;  %v2845_v12 = vadd.f32 %v3776_v51, %v5073_v5 }
 0x29f   : > { %v2836_v16 = vpop.f32.mrf.mxu1 }
 0x2a0   : > { %3169 = vst.msk [vmem:[%s5081_s22 + $0xe0] sm:$0xff] %vm576_vm0, %v3137_v39  ;;  %v3140_v32 = vadd.f32 %v3076_v55, %v2845_v12  ;;  %v2837_v11 = vadd.f32 %v5073_v5, %v2836_v16 }
 0x2a2   : > { %3172 = vst.msk [vmem:[%s5081_s22 + $0xf8] sm:$0xff] %vm576_vm0, %v3140_v32  ;;  %v3138_v30 = vadd.f32 %v3071_v14, %v2837_v11 }
 0x2a4   : > { %3170 = vst.msk [vmem:[%s5081_s22 + $0xe8] sm:$0xff] %vm576_vm0, %v3138_v30 }
 0x2a5 PF: > { %s17_s26 = sadd.s32 1, %s3908_s26   ;;  %s5278_s24 = smov %s3904_s25 }
 0x2a6   : > { %p14_p5 = scmp.ge.s32.totalorder %s17_s26, 4   ;;  %s5279_s25 = smov %s5281_s27 }
 0x2a8   :  { %16 = sbr.rel (!%p14_p5) target bundleno = 2 (0x2), region = 125 }

</bundles_post_ra>
